<compile_context>
chip_gen: v5e
topology: v5e:2x2
jax: 0.10.0
libtpu: 0.0.40
codegen_flags: <defaults>
</compile_context>

<pallas_src>
import jax
import jax.numpy as jnp
from jax.experimental import pallas as pl
from jax.experimental.pallas import tpu as pltpu


def _round_up(n, m):
    return ((n + m - 1) // m) * m


def _disc_kernel(x_ref, w1_ref, b1_ref, w2_ref, b2_ref, w3_ref, b3_ref, o_ref):
    # x:  (TM, D_in) f32       w1: (D_in, 1024) bf16   b1: (1, 1024) f32
    # w2: (1024, 512) bf16     b2: (1, 512)    f32
    # w3: (1, 512)   f32 (lane-dense row)      b3: (1, 1) f32
    x = x_ref[...]

    # Layer 1: Linear + LeakyReLU(0.2)
    h1 = jnp.dot(x.astype(jnp.bfloat16), w1_ref[...],
                 preferred_element_type=jnp.float32) + b1_ref[...]
    h1 = jnp.where(h1 > 0, h1, 0.2 * h1)
    # Dropout(0.3): identity in eval mode.

    # Layer 2: Linear + LeakyReLU(0.2)
    h2 = jnp.dot(h1.astype(jnp.bfloat16), w2_ref[...],
                 preferred_element_type=jnp.float32) + b2_ref[...]
    h2 = jnp.where(h2 > 0, h2, 0.2 * h2)
    # Dropout(0.3): identity in eval mode.

    # Layer 3: out_features=1 -> VPU reduction (avoids a wasted 1-column MXU matmul).
    logit = jnp.sum(h2 * w3_ref[...], axis=-1, keepdims=True) + b3_ref[...]
    o_ref[...] = jax.nn.sigmoid(logit)


def discriminator_forward(x_nchw, params, *, tile_m=256):
    """x_nchw: (B, C, H, W) float32.  params: dict of f32 weights/biases."""
    B = x_nchw.shape[0]
    d_in = x_nchw.shape[1] * x_nchw.shape[2] * x_nchw.shape[3]
    x2d = x_nchw.reshape(B, d_in).astype(jnp.float32)          # nn.Flatten (row-major)

    # Large weights in bf16 (halves dominant HBM traffic); biases + tiny w3 stay f32.
    w1 = params["w1"].astype(jnp.bfloat16)                      # (d_in, 1024)
    w2 = params["w2"].astype(jnp.bfloat16)                      # (1024, 512)
    b1 = params["b1"].reshape(1, 1024).astype(jnp.float32)
    b2 = params["b2"].reshape(1, 512).astype(jnp.float32)
    w3_row = params["w3"].reshape(1, 512).astype(jnp.float32)   # lane-dense row
    b3 = params["b3"].reshape(1, 1).astype(jnp.float32)

    # Batch tiling: weights stay resident, x/out tiles double-buffer across grid.
    tm = min(tile_m, _round_up(B, 8))
    b_pad = _round_up(B, tm)
    if b_pad != B:
        x2d = jnp.pad(x2d, ((0, b_pad - B), (0, 0)))
    grid = (b_pad // tm,)

    flops = 2 * b_pad * (d_in * 1024 + 1024 * 512 + 512)
    bytes_accessed = (x2d.size * 4 + w1.size * 2 + w2.size * 2
                      + (b1.size + b2.size + w3_row.size + b3.size) * 4
                      + b_pad * 4)

    out = pl.pallas_call(
        _disc_kernel,
        out_shape=jax.ShapeDtypeStruct((b_pad, 1), jnp.float32),
        grid_spec=pltpu.PrefetchScalarGridSpec(
            num_scalar_prefetch=0,
            grid=grid,
            in_specs=[
                pl.BlockSpec((tm, d_in), lambda i: (i, 0)),     # x tile moves with grid
                pl.BlockSpec(w1.shape, lambda i: (0, 0)),       # weights stay resident
                pl.BlockSpec(b1.shape, lambda i: (0, 0)),
                pl.BlockSpec(w2.shape, lambda i: (0, 0)),
                pl.BlockSpec(b2.shape, lambda i: (0, 0)),
                pl.BlockSpec(w3_row.shape, lambda i: (0, 0)),
                pl.BlockSpec(b3.shape, lambda i: (0, 0)),
            ],
            out_specs=pl.BlockSpec((tm, 1), lambda i: (i, 0)),
        ),
        compiler_params=pltpu.CompilerParams(
            dimension_semantics=("parallel",),                  # v7x: shard across 2 TCs
            vmem_limit_bytes=32 << 20,
        ),
        cost_estimate=pl.CostEstimate(
            flops=flops,
            transcendentals=b_pad,
            bytes_accessed=bytes_accessed,
        ),
    )(x2d, w1, b1, w2, b2, w3_row, b3)
    return out[:B]


def init_params(key, d_in):
    """Deterministic init mimicking PyTorch's default Linear init
    (uniform(-1/sqrt(fan_in), 1/sqrt(fan_in)))."""
    ks = jax.random.split(key, 6)

    def lin(kw, kb, fan_in, fan_out):
        bound = 1.0 / (fan_in ** 0.5)
        w = jax.random.uniform(kw, (fan_in, fan_out), jnp.float32, -bound, bound)
        b = jax.random.uniform(kb, (1, fan_out), jnp.float32, -bound, bound)
        return w, b

    w1, b1 = lin(ks[0], ks[1], d_in, 1024)
    w2, b2 = lin(ks[2], ks[3], 1024, 512)
    w3, b3 = lin(ks[4], ks[5], 512, 1)
    return {"w1": w1, "b1": b1, "w2": w2, "b2": b2, "w3": w3, "b3": b3}


if __name__ == "__main__":
    key = jax.random.PRNGKey(0)
    k_x, k_p = jax.random.split(key)

    # input_shape = (C, H, W) = (4, 16, 16)  ->  c*h*w = 1024
    B, C, H, W = 2, 4, 16, 16
    x = jax.random.normal(k_x, (B, C, H, W), dtype=jnp.float32)
    params = init_params(k_p, C * H * W)

    out = discriminator_forward(x, params)
    out = jax.block_until_ready(out)

    # Sanity check against a plain-JAX reference that mirrors the kernel's
    # bf16-weight / f32-accumulate numerics.
    x2d = x.reshape(B, -1)
    w1b = params["w1"].astype(jnp.bfloat16)
    w2b = params["w2"].astype(jnp.bfloat16)
    h1 = jnp.dot(x2d.astype(jnp.bfloat16), w1b,
                 preferred_element_type=jnp.float32) + params["b1"]
    h1 = jnp.where(h1 > 0, h1, 0.2 * h1)
    h2 = jnp.dot(h1.astype(jnp.bfloat16), w2b,
                 preferred_element_type=jnp.float32) + params["b2"]
    h2 = jnp.where(h2 > 0, h2, 0.2 * h2)
    ref = jax.nn.sigmoid(h2 @ params["w3"] + params["b3"])

    assert out.shape == (B, 1)
    assert bool(jnp.all(jnp.isfinite(out)))
    assert jnp.allclose(out, ref, atol=2e-3, rtol=2e-3)

    print("KERNEL_OK")
</pallas_src>

<mosaic_0001>
module attributes {stable_mosaic.version = 11 : i64} {
  func.func @_disc_kernel(%arg0: i32, %arg1: memref<8x1024xf32, #tpu.memory_space<vmem>>, %arg2: memref<1024x1024xbf16, #tpu.memory_space<vmem>>, %arg3: memref<1x1024xf32, #tpu.memory_space<vmem>>, %arg4: memref<1024x512xbf16, #tpu.memory_space<vmem>>, %arg5: memref<1x512xf32, #tpu.memory_space<vmem>>, %arg6: memref<1x512xf32, #tpu.memory_space<vmem>>, %arg7: memref<1x1xf32, #tpu.memory_space<vmem>>, %arg8: memref<8x1xf32, #tpu.memory_space<vmem>>) attributes {dimension_semantics = [#tpu.dimension_semantics<parallel>], iteration_bounds = array<i64: 1>, scalar_prefetch = 0 : i64, scratch_operands = 0 : i64, tpu.core_type = #tpu.core_type<tc>, window_params = [{transform_indices = @transform_0, window_bounds = array<i64: 8, 1024>}, {pipeline_mode = #tpu.pipeline_mode<synchronous>, transform_indices = @transform_1, window_bounds = array<i64: 1024, 1024>}, {pipeline_mode = #tpu.pipeline_mode<synchronous>, transform_indices = @transform_2, window_bounds = array<i64: 1, 1024>}, {pipeline_mode = #tpu.pipeline_mode<synchronous>, transform_indices = @transform_3, window_bounds = array<i64: 1024, 512>}, {pipeline_mode = #tpu.pipeline_mode<synchronous>, transform_indices = @transform_4, window_bounds = array<i64: 1, 512>}, {pipeline_mode = #tpu.pipeline_mode<synchronous>, transform_indices = @transform_5, window_bounds = array<i64: 1, 512>}, {pipeline_mode = #tpu.pipeline_mode<synchronous>, transform_indices = @transform_6, window_bounds = array<i64: 1, 1>}, {transform_indices = @transform_7, window_bounds = array<i64: 8, 1>}]} {
    %c0 = arith.constant 0 : index
    %c0_0 = arith.constant 0 : index
    %0 = vector.load %arg1[%c0, %c0_0] : memref<8x1024xf32, #tpu.memory_space<vmem>>, vector<8x1024xf32>
    %1 = arith.truncf %0 : vector<8x1024xf32> to vector<8x1024xbf16>
    %c0_1 = arith.constant 0 : index
    %c0_2 = arith.constant 0 : index
    %2 = vector.load %arg2[%c0_1, %c0_2] : memref<1024x1024xbf16, #tpu.memory_space<vmem>>, vector<1024x1024xbf16>
    %cst = arith.constant dense<0.000000e+00> : vector<8x1024xf32>
    %3 = tpu.matmul %1, %2, %cst {dimension_numbers = #tpu.dot_dimension_numbers<[1], [0], [0], [1], [0, 0, 1, 1], [], []>} : vector<8x1024xbf16>, vector<1024x1024xbf16>, vector<8x1024xf32> -> vector<8x1024xf32>
    %c0_3 = arith.constant 0 : index
    %c0_4 = arith.constant 0 : index
    %4 = vector.load %arg3[%c0_3, %c0_4] : memref<1x1024xf32, #tpu.memory_space<vmem>>, vector<1x1024xf32>
    %5 = vector.broadcast %4 : vector<1x1024xf32> to vector<8x1024xf32>
    %6 = arith.addf %3, %5 : vector<8x1024xf32>
    %cst_5 = arith.constant 0.000000e+00 : f32
    %7 = vector.broadcast %cst_5 : f32 to vector<8x1024xf32>
    %8 = arith.cmpf ogt, %6, %7 : vector<8x1024xf32>
    %cst_6 = arith.constant 2.000000e-01 : f32
    %9 = vector.broadcast %cst_6 : f32 to vector<8x1024xf32>
    %10 = arith.mulf %9, %6 : vector<8x1024xf32>
    %11 = arith.select %8, %6, %10 : vector<8x1024xi1>, vector<8x1024xf32>
    %12 = arith.truncf %11 : vector<8x1024xf32> to vector<8x1024xbf16>
    %c0_7 = arith.constant 0 : index
    %c0_8 = arith.constant 0 : index
    %13 = vector.load %arg4[%c0_7, %c0_8] : memref<1024x512xbf16, #tpu.memory_space<vmem>>, vector<1024x512xbf16>
    %cst_9 = arith.constant dense<0.000000e+00> : vector<8x512xf32>
    %14 = tpu.matmul %12, %13, %cst_9 {dimension_numbers = #tpu.dot_dimension_numbers<[1], [0], [0], [1], [0, 0, 1, 1], [], []>} : vector<8x1024xbf16>, vector<1024x512xbf16>, vector<8x512xf32> -> vector<8x512xf32>
    %c0_10 = arith.constant 0 : index
    %c0_11 = arith.constant 0 : index
    %15 = vector.load %arg5[%c0_10, %c0_11] : memref<1x512xf32, #tpu.memory_space<vmem>>, vector<1x512xf32>
    %16 = vector.broadcast %15 : vector<1x512xf32> to vector<8x512xf32>
    %17 = arith.addf %14, %16 : vector<8x512xf32>
    %cst_12 = arith.constant 0.000000e+00 : f32
    %18 = vector.broadcast %cst_12 : f32 to vector<8x512xf32>
    %19 = arith.cmpf ogt, %17, %18 : vector<8x512xf32>
    %cst_13 = arith.constant 2.000000e-01 : f32
    %20 = vector.broadcast %cst_13 : f32 to vector<8x512xf32>
    %21 = arith.mulf %20, %17 : vector<8x512xf32>
    %22 = arith.select %19, %17, %21 : vector<8x512xi1>, vector<8x512xf32>
    %c0_14 = arith.constant 0 : index
    %c0_15 = arith.constant 0 : index
    %23 = vector.load %arg6[%c0_14, %c0_15] : memref<1x512xf32, #tpu.memory_space<vmem>>, vector<1x512xf32>
    %24 = vector.broadcast %23 : vector<1x512xf32> to vector<8x512xf32>
    %25 = arith.mulf %22, %24 : vector<8x512xf32>
    %cst_16 = arith.constant dense<0.000000e+00> : vector<8xf32>
    %26 = vector.multi_reduction <add>, %25, %cst_16 [1] : vector<8x512xf32> to vector<8xf32>
    %27 = vector.shape_cast %26 : vector<8xf32> to vector<8x1xf32>
    %c0_17 = arith.constant 0 : index
    %c0_18 = arith.constant 0 : index
    %28 = vector.load %arg7[%c0_17, %c0_18] : memref<1x1xf32, #tpu.memory_space<vmem>>, vector<1x1xf32>
    %29 = vector.broadcast %28 : vector<1x1xf32> to vector<8x1xf32>
    %30 = arith.addf %27, %29 : vector<8x1xf32>
    %31 = arith.negf %30 : vector<8x1xf32>
    %32 = math.exp %31 : vector<8x1xf32>
    %cst_19 = arith.constant 1.000000e+00 : f32
    %33 = vector.broadcast %cst_19 : f32 to vector<8x1xf32>
    %34 = arith.addf %33, %32 : vector<8x1xf32>
    %35 = arith.divf %33, %34 : vector<8x1xf32>
    %c0_20 = arith.constant 0 : index
    %c0_21 = arith.constant 0 : index
    %36 = vector.load %arg8[%c0_20, %c0_21] : memref<8x1xf32, #tpu.memory_space<vmem>>, vector<8x1xf32>
    tpu.vector_store %arg8[%c0_20, %c0_21], %35 {strides = array<i32>} : memref<8x1xf32, #tpu.memory_space<vmem>>, vector<8x1xf32>,
    return
  }
  func.func @transform_0(%arg0: i32) -> (i32, i32) {
    %c0_i32 = arith.constant 0 : i32
    %c0_i32_0 = arith.constant 0 : i32
    return %arg0, %c0_i32 : i32, i32
  }
  func.func @transform_1(%arg0: i32) -> (i32, i32) {
    %c0_i32 = arith.constant 0 : i32
    %c0_i32_0 = arith.constant 0 : i32
    %c0_i32_1 = arith.constant 0 : i32
    return %c0_i32, %c0_i32_0 : i32, i32
  }
  func.func @transform_2(%arg0: i32) -> (i32, i32) {
    %c0_i32 = arith.constant 0 : i32
    %c0_i32_0 = arith.constant 0 : i32
    %c0_i32_1 = arith.constant 0 : i32
    return %c0_i32, %c0_i32_0 : i32, i32
  }
  func.func @transform_3(%arg0: i32) -> (i32, i32) {
    %c0_i32 = arith.constant 0 : i32
    %c0_i32_0 = arith.constant 0 : i32
    %c0_i32_1 = arith.constant 0 : i32
    return %c0_i32, %c0_i32_0 : i32, i32
  }
  func.func @transform_4(%arg0: i32) -> (i32, i32) {
    %c0_i32 = arith.constant 0 : i32
    %c0_i32_0 = arith.constant 0 : i32
    %c0_i32_1 = arith.constant 0 : i32
    return %c0_i32, %c0_i32_0 : i32, i32
  }
  func.func @transform_5(%arg0: i32) -> (i32, i32) {
    %c0_i32 = arith.constant 0 : i32
    %c0_i32_0 = arith.constant 0 : i32
    %c0_i32_1 = arith.constant 0 : i32
    return %c0_i32, %c0_i32_0 : i32, i32
  }
  func.func @transform_6(%arg0: i32) -> (i32, i32) {
    %c0_i32 = arith.constant 0 : i32
    %c0_i32_0 = arith.constant 0 : i32
    %c0_i32_1 = arith.constant 0 : i32
    return %c0_i32, %c0_i32_0 : i32, i32
  }
  func.func @transform_7(%arg0: i32) -> (i32, i32) {
    %c0_i32 = arith.constant 0 : i32
    %c0_i32_0 = arith.constant 0 : i32
    return %arg0, %c0_i32 : i32, i32
  }
}

</mosaic_0001>

<bundles_post_ra>
// kernel: tpu_custom_call.1
= control target key start
LH: loop header
LB: loop body
LE: loop exit
PB: predicated region body
PF: predicated region fallthrough
CT: control target
= control target key end

     0   :  { %s10463_s0 = inlined_call_operand.hbm [shape: f32[8,1024], index: 0, kind: input, shape index: {}]   ;;  %s10464_s1 = inlined_call_operand.hbm [shape: bf16[1024,1024], index: 1, kind: input, shape index: {}]   ;;  %s10465_s2 = inlined_call_operand.hbm [shape: f32[1,1024], index: 2, kind: input, shape index: {}]   ;;  %s10466_s3 = inlined_call_operand.hbm [shape: bf16[1024,512], index: 3, kind: input, shape index: {}]   ;;  %s10467_s4 = inlined_call_operand.hbm [shape: f32[1,512], index: 4, kind: input, shape index: {}]   ;;  %s10468_s5 = inlined_call_operand.hbm [shape: f32[1,512], index: 5, kind: input, shape index: {}]   ;;  %s10469_s6 = inlined_call_operand.<no memory space> [shape: f32[1,1], index: 6, kind: input, shape index: {}]   ;;  %s10470_s7 = inlined_call_operand.vmem [shape: f32[8,1], index: 7, kind: output, shape index: {}]  }
   0x1   :  { %v12_v0 = vstv %s10469_s6 }
   0x2   :  { %13 = vst [vmem:[#allocation2] sm:$0x1] %v12_v0 }
   0x3   :  { %14 = vsyncpa [#allocation4], 0 }
   0x4   :  { %15 = vsyncpa [#allocation6], 0 }
   0x5   :  { %16 = vsyncpa [#allocation9], 0  ;;  %s33_s28 = sshll.u32 %s10464_s1, 4  ;;  %s34_s28 = int_to_ptr.hbm [resolvable:$true] %s33_s28 }
   0x6   :  { %17 = vsyncpa [#allocation12], 0  ;;  %s10122_s29 = smov [#allocation5]   ;;  %s57_s10 = sshll.u32 %s10466_s3, 4  ;;  %s58_s10 = int_to_ptr.hbm [resolvable:$true] %s57_s10 }
   0x7   :  { %s35_s30 = sshll.u32 %s10122_s29, 4  ;;  %s10123_s11 = smov 512   ;;  %s36_s30 = int_to_ptr.vmem [resolvable:$true] %s35_s30 }
   0x8   :  { %s10124_s12 = smov 32   ;;  %s10125_s6 = smov [#allocation8]  }
   0x9   :  { %41 = dma.hbm_to_vmem [thread:$0]  %s34_s28, 65536, %s36_s30, [#allocation6], %s10123_s11, %s10123_s11, %s10124_s12  }
   0xa   :  { %s59_s13 = sshll.u32 %s10125_s6, 4  ;;  %s10126_s14 = smov 256   ;;  %s60_s13 = int_to_ptr.vmem [resolvable:$true] %s59_s13 }
   0xb   :  { %s10127_s15 = smov 16   ;;  %s23_s17 = sshll.u32 %s10463_s0, 4  ;;  %s24_s17 = int_to_ptr.hbm [resolvable:$true] %s23_s17 }
   0xc   :  { %65 = dma.hbm_to_vmem [thread:$0]  %s58_s10, 32768, %s60_s13, [#allocation9], %s10126_s14, %s10126_s14, %s10127_s15  }
   0xd   :  { %s10128_s18 = smov [#allocation3]   ;;  %s47_s21 = sshll.u32 %s10465_s2, 4  ;;  %s48_s21 = int_to_ptr.hbm [resolvable:$true] %s47_s21 }
   0xe   :  { %s25_s19 = sshll.u32 %s10128_s18, 4  ;;  %s10129_s22 = smov [#allocation7]   ;;  %s26_s19 = int_to_ptr.vmem [resolvable:$true] %s25_s19 }
   0xf   :  { %28 = dma.hbm_to_vmem [thread:$0]  %s24_s17, 1024, %s26_s19, [#allocation4]  }
  0x10   :  { %s49_s23 = sshll.u32 %s10129_s22, 4  ;;  %s71_s26 = sshll.u32 %s10467_s4, 4  ;;  %s50_s23 = int_to_ptr.vmem [resolvable:$true] %s49_s23  ;;  %s72_s26 = int_to_ptr.hbm [resolvable:$true] %s71_s26 }
  0x11   :  { %52 = dma.hbm_to_vmem [thread:$0]  %s48_s21, 128, %s50_s23, [#allocation6]  }
  0x12   :  { %s82_s28 = sshll.u32 %s10468_s5, 4  ;;  %s10130_s29 = smov [#allocation10]   ;;  %s83_s28 = int_to_ptr.hbm [resolvable:$true] %s82_s28 }
  0x13   :  { %s73_s30 = sshll.u32 %s10130_s29, 4  ;;  %s10131_s2 = smov [#allocation11]   ;;  %s74_s30 = int_to_ptr.vmem [resolvable:$true] %s73_s30 }
  0x14   :  { %76 = dma.hbm_to_vmem [thread:$0]  %s72_s26, 64, %s74_s30, [#allocation9]  }
  0x15   :  { %s84_s8 = sshll.u32 %s10131_s2, 4  ;;  %s85_s8 = int_to_ptr.vmem [resolvable:$true] %s84_s8 }
  0x16   :  { %87 = dma.hbm_to_vmem [thread:$0]  %s83_s28, 64, %s85_s8, [#allocation12]  }
  0x17   :  { %10114 = dma.done.wait [#allocation4], 1024  }
  0x18   :  { %10115 = vsyncadd [#allocation4], 4294966272 }
  0x19   :  { %10116 = dma.done.wait [#allocation6], 65664  }
  0x1a   :  { %10117 = vsyncadd [#allocation6], 4294901632 }
  0x1b   :  { %10118 = dma.done.wait [#allocation9], 32832  }
  0x1c   :  { %10119 = vsyncadd [#allocation9], 4294934464 }
  0x1d   :  { %10120 = dma.done.wait [#allocation12], 64  }
  0x1e   :  { %10121 = vsyncadd [#allocation12], 4294967232  ;;  %v6337_v1 = vld [vmem:[#allocation5 + $0x1c0] sm:$0xf]  ;;  %vm6101_vm15 = vcmask 7168  }
  0x1f   :  { %v9244_v2 = vld [vmem:[#allocation5 + $0x1dc] sm:$0xf0] }
  0x20   :  { %v6593_v3 = vld [vmem:[#allocation5 + $0x3c0] sm:$0xf]  ;;  %v6338_v4 = vor.u32 %v9244_v2, %v6337_v1 }
  0x21   :  { %v9308_v5 = vld [vmem:[#allocation5 + $0x3dc] sm:$0xf0] }
  0x22   :  { %v6849_v6 = vld [vmem:[#allocation5 + $0x5c0] sm:$0xf]  ;;  %v6594_v8 = vor.u32 %v9308_v5, %v6593_v3  ;;  %3220 = vmatpush.bf16.msra.mxu0 %v6338_v4 }
  0x23   :  { %v9372_v7 = vld [vmem:[#allocation5 + $0x5dc] sm:$0xf0] }
  0x24   :  { %v6850_v9 = vor.u32 %v9372_v7, %v6849_v6  ;;  %v7105_v10 = vld [vmem:[#allocation5 + $0x7c0] sm:$0xf]  ;;  %3233 = vmatpush.bf16.msra.mxu1 %v6594_v8 }
  0x25   :  { %v9436_v11 = vld [vmem:[#allocation5 + $0x7dc] sm:$0xf0] }
  0x26   :  { %v6305_v12 = vld [vmem:[#allocation5 + $0x180] sm:$0xf]  ;;  %v7106_v13 = vor.u32 %v9436_v11, %v7105_v10  ;;  %3246 = vmatpush.bf16.msra.mxu2 %v6850_v9 }
  0x27   :  { %v9236_v14 = vld [vmem:[#allocation5 + $0x19c] sm:$0xf0] }
  0x28   :  { %v6561_v15 = vld [vmem:[#allocation5 + $0x380] sm:$0xf]  ;;  %v6306_v17 = vor.u32 %v9236_v14, %v6305_v12  ;;  %3259 = vmatpush.bf16.msra.mxu3 %v7106_v13 }
  0x29   :  { %v9300_v16 = vld [vmem:[#allocation5 + $0x39c] sm:$0xf0] }
  0x2a   :  { %v6562_v18 = vor.u32 %v9300_v16, %v6561_v15  ;;  %v6817_v19 = vld [vmem:[#allocation5 + $0x580] sm:$0xf]  ;;  %3221 = vmatpush.bf16.msra.mxu0 %v6306_v17 }
  0x2b   :  { %v9364_v20 = vld [vmem:[#allocation5 + $0x59c] sm:$0xf0] }
  0x2c   :  { %v7073_v21 = vld [vmem:[#allocation5 + $0x780] sm:$0xf]  ;;  %v6818_v22 = vor.u32 %v9364_v20, %v6817_v19  ;;  %3234 = vmatpush.bf16.msra.mxu1 %v6562_v18 }
  0x2d   :  { %v9428_v23 = vld [vmem:[#allocation5 + $0x79c] sm:$0xf0] }
  0x2e   :  { %v6273_v24 = vld [vmem:[#allocation5 + $0x140] sm:$0xf]  ;;  %v7074_v26 = vor.u32 %v9428_v23, %v7073_v21  ;;  %3247 = vmatpush.bf16.msra.mxu2 %v6818_v22 }
  0x2f   :  { %v9228_v25 = vld [vmem:[#allocation5 + $0x15c] sm:$0xf0] }
  0x30   :  { %v6529_v27 = vld [vmem:[#allocation5 + $0x340] sm:$0xf]  ;;  %v6274_v30 = vor.u32 %v9228_v25, %v6273_v24  ;;  %3260 = vmatpush.bf16.msra.mxu3 %v7074_v26 }
  0x31   :  { %v9292_v28 = vld [vmem:[#allocation5 + $0x35c] sm:$0xf0] }
  0x32   :  { %v6785_v29 = vld [vmem:[#allocation5 + $0x540] sm:$0xf]  ;;  %v6530_v34 = vor.u32 %v9292_v28, %v6529_v27  ;;  %3222 = vmatpush.bf16.msra.mxu0 %v6274_v30 }
  0x33   :  { %v9356_v31 = vld [vmem:[#allocation5 + $0x55c] sm:$0xf0] }
  0x34   :  { %v7041_v32 = vld [vmem:[#allocation5 + $0x740] sm:$0xf]  ;;  %v6786_v35 = vor.u32 %v9356_v31, %v6785_v29  ;;  %3235 = vmatpush.bf16.msra.mxu1 %v6530_v34 }
  0x35   :  { %v9420_v33 = vld [vmem:[#allocation5 + $0x75c] sm:$0xf0] }
  0x36   :  { %v6241_v36 = vld [vmem:[#allocation5 + $0x100] sm:$0xf]  ;;  %v7042_v39 = vor.u32 %v9420_v33, %v7041_v32  ;;  %3248 = vmatpush.bf16.msra.mxu2 %v6786_v35 }
  0x37   :  { %v9220_v37 = vld [vmem:[#allocation5 + $0x11c] sm:$0xf0] }
  0x38   :  { %v6497_v38 = vld [vmem:[#allocation5 + $0x300] sm:$0xf]  ;;  %v6242_v45 = vor.u32 %v9220_v37, %v6241_v36  ;;  %3261 = vmatpush.bf16.msra.mxu3 %v7042_v39 }
  0x39   :  { %v9284_v40 = vld [vmem:[#allocation5 + $0x31c] sm:$0xf0] }
  0x3a   :  { %v6753_v41 = vld [vmem:[#allocation5 + $0x500] sm:$0xf]  ;;  %v6498_v46 = vor.u32 %v9284_v40, %v6497_v38  ;;  %3223 = vmatpush.bf16.msra.mxu0 %v6242_v45 }
  0x3b   :  { %v9348_v42 = vld [vmem:[#allocation5 + $0x51c] sm:$0xf0] }
  0x3c   :  { %v7009_v43 = vld [vmem:[#allocation5 + $0x700] sm:$0xf]  ;;  %v6754_v47 = vor.u32 %v9348_v42, %v6753_v41  ;;  %3236 = vmatpush.bf16.msra.mxu1 %v6498_v46 }
  0x3d   :  { %v9412_v44 = vld [vmem:[#allocation5 + $0x71c] sm:$0xf0] }
  0x3e   :  { %v6209_v48 = vld [vmem:[#allocation5 + $0xc0] sm:$0xf]  ;;  %v7010_v51 = vor.u32 %v9412_v44, %v7009_v43  ;;  %3249 = vmatpush.bf16.msra.mxu2 %v6754_v47 }
  0x3f   :  { %v9212_v49 = vld [vmem:[#allocation5 + $0xdc] sm:$0xf0] }
  0x40   :  { %v6465_v50 = vld [vmem:[#allocation5 + $0x2c0] sm:$0xf]  ;;  %v6210_v57 = vor.u32 %v9212_v49, %v6209_v48  ;;  %3262 = vmatpush.bf16.msra.mxu3 %v7010_v51 }
  0x41   :  { %v9276_v52 = vld [vmem:[#allocation5 + $0x2dc] sm:$0xf0] }
  0x42   :  { %v6721_v53 = vld [vmem:[#allocation5 + $0x4c0] sm:$0xf]  ;;  %v6466_v58 = vor.u32 %v9276_v52, %v6465_v50  ;;  %3224 = vmatpush.bf16.msra.mxu0 %v6210_v57 }
  0x43   :  { %v9340_v54 = vld [vmem:[#allocation5 + $0x4dc] sm:$0xf0] }
  0x44   :  { %v6977_v55 = vld [vmem:[#allocation5 + $0x6c0] sm:$0xf]  ;;  %v6722_v59 = vor.u32 %v9340_v54, %v6721_v53  ;;  %3237 = vmatpush.bf16.msra.mxu1 %v6466_v58 }
  0x45   :  { %v9404_v56 = vld [vmem:[#allocation5 + $0x6dc] sm:$0xf0] }
  0x46   :  { %v6177_v60 = vld [vmem:[#allocation5 + $0x80] sm:$0xf]  ;;  %v6978_v63 = vor.u32 %v9404_v56, %v6977_v55  ;;  %3250 = vmatpush.bf16.msra.mxu2 %v6722_v59  ;;  %v116_v59 = vld [vmem:[#allocation3 + $0x10] sm:$0xff] }
  0x47   :  { %v9204_v61 = vld [vmem:[#allocation5 + $0x9c] sm:$0xf0] }
  0x48   :  { %v6433_v62 = vld [vmem:[#allocation5 + $0x280] sm:$0xf]  ;;  %v6178_v5 = vor.u32 %v9204_v61, %v6177_v60  ;;  %3263 = vmatpush.bf16.msra.mxu3 %v6978_v63 }
  0x49   :  { %v9268_v0 = vld [vmem:[#allocation5 + $0x29c] sm:$0xf0] }
  0x4a   :  { %v6689_v1 = vld [vmem:[#allocation5 + $0x480] sm:$0xf]  ;;  %v6434_v6 = vor.u32 %v9268_v0, %v6433_v62  ;;  %3225 = vmatpush.bf16.msra.mxu0 %v6178_v5  ;;  %v10193_v0 = vpack.c.bf16 %v116_v59, %v116_v59 }
  0x4b   :  { %v9332_v2 = vld [vmem:[#allocation5 + $0x49c] sm:$0xf0] }
  0x4c   :  { %v6945_v3 = vld [vmem:[#allocation5 + $0x680] sm:$0xf]  ;;  %v6690_v7 = vor.u32 %v9332_v2, %v6689_v1  ;;  %3238 = vmatpush.bf16.msra.mxu1 %v6434_v6 }
  0x4d   :  { %v9396_v4 = vld [vmem:[#allocation5 + $0x69c] sm:$0xf0] }
  0x4e   :  { %v6145_v8 = vld [vmem:[#allocation5 + $0x40] sm:$0xf]  ;;  %v6946_v11 = vor.u32 %v9396_v4, %v6945_v3  ;;  %3251 = vmatpush.bf16.msra.mxu2 %v6690_v7 }
  0x4f   :  { %v9196_v9 = vld [vmem:[#allocation5 + $0x5c] sm:$0xf0] }
  0x50   :  { %v6401_v10 = vld [vmem:[#allocation5 + $0x240] sm:$0xf]  ;;  %v6146_v17 = vor.u32 %v9196_v9, %v6145_v8  ;;  %3264 = vmatpush.bf16.msra.mxu3 %v6946_v11  ;;  %v117_v11 = vld [vmem:[#allocation3 + $0x18] sm:$0xff] }
  0x51   :  { %v9260_v12 = vld [vmem:[#allocation5 + $0x25c] sm:$0xf0] }
  0x52   :  { %v6657_v13 = vld [vmem:[#allocation5 + $0x440] sm:$0xf]  ;;  %v6402_v20 = vor.u32 %v9260_v12, %v6401_v10  ;;  %3226 = vmatpush.bf16.msra.mxu0 %v6146_v17  ;;  %v115_v12 = vld [vmem:[#allocation3 + $0x8] sm:$0xff]  ;;  %v10198_v17 = vpack.c.bf16 %v117_v11, %v117_v11  ;;  %v6595_v11 = vld [vmem:[#allocation5 + $0x3e0] sm:$0xf0] }
  0x53   :  { %v9324_v14 = vld [vmem:[#allocation5 + $0x45c] sm:$0xf0] }
  0x54   :  { %v6913_v15 = vld [vmem:[#allocation5 + $0x640] sm:$0xf]  ;;  %v6658_v21 = vor.u32 %v9324_v14, %v6657_v13  ;;  %3239 = vmatpush.bf16.msra.mxu1 %v6402_v20 }
  0x55   :  { %v9388_v16 = vld [vmem:[#allocation5 + $0x65c] sm:$0xf0] }
  0x56   :  { %v6113_v18 = vld [vmem:[#allocation5] sm:$0xf]  ;;  %v6914_v25 = vor.u32 %v9388_v16, %v6913_v15  ;;  %3252 = vmatpush.bf16.msra.mxu2 %v6658_v21 }
  0x57   :  { %v9188_v19 = vld [vmem:[#allocation5 + $0x1c] sm:$0xf0] }
  0x58   :  { %v6369_v22 = vld [vmem:[#allocation5 + $0x200] sm:$0xf]  ;;  %v6114_v32 = vor.u32 %v9188_v19, %v6113_v18  ;;  %3265 = vmatpush.bf16.msra.mxu3 %v6914_v25  ;;  %v10200_v18 = vpack.c.bf16 %v115_v12, %v115_v12  ;;  %v9368_v12 = vld [vmem:[#allocation5 + $0x5c4] sm:$0xf] }
  0x59   :  { %v9252_v23 = vld [vmem:[#allocation5 + $0x21c] sm:$0xf0] }
  0x5a   :  { %v6625_v24 = vld [vmem:[#allocation5 + $0x400] sm:$0xf]  ;;  %v6370_v36 = vor.u32 %v9252_v23, %v6369_v22  ;;  %3227 = vmatpush.bf16.msra.mxu0 %v6114_v32 }
  0x5b   :  { %v9316_v26 = vld [vmem:[#allocation5 + $0x41c] sm:$0xf0] }
  0x5c   :  { %v6881_v27 = vld [vmem:[#allocation5 + $0x600] sm:$0xf]  ;;  %v6626_v37 = vor.u32 %v9316_v26, %v6625_v24  ;;  %3240 = vmatpush.bf16.msra.mxu1 %v6370_v36 }
  0x5d   :  { %v9380_v28 = vld [vmem:[#allocation5 + $0x61c] sm:$0xf0] }
  0x5e   :  { %v7361_v29 = vld [vmem:[#allocation5 + $0x9c0] sm:$0xf]  ;;  %v6882_v40 = vor.u32 %v9380_v28, %v6881_v27  ;;  %3253 = vmatpush.bf16.msra.mxu2 %v6626_v37 }
  0x5f   :  { %v9500_v30 = vld [vmem:[#allocation5 + $0x9dc] sm:$0xf0]  ;;  %3241 = vmatmul.bf16.vlgmr.msra.gmra.mxu1 %v10200_v18 }
  0x60   :  { %v7617_v31 = vld [vmem:[#allocation5 + $0xbc0] sm:$0xf]  ;;  %v7362_v41 = vor.u32 %v9500_v30, %v7361_v29  ;;  %3266 = vmatpush.bf16.msra.mxu3 %v6882_v40 }
  0x61   :  { %v9564_v33 = vld [vmem:[#allocation5 + $0xbdc] sm:$0xf0]  ;;  %3254 = vmatmul.bf16.vlgmr.msra.gmra.mxu2 %v10193_v0 }
  0x62   :  { %v7873_v34 = vld [vmem:[#allocation5 + $0xdc0] sm:$0xf]  ;;  %v7618_v42 = vor.u32 %v9564_v33, %v7617_v31  ;;  %3272 = vmatpush.bf16.msrb.mxu0 %v7362_v41 }
  0x63   :  { %v9628_v35 = vld [vmem:[#allocation5 + $0xddc] sm:$0xf0]  ;;  %3267 = vmatmul.bf16.vlgmr.msra.gmra.mxu3 %v10198_v17 }
  0x64   :  { %v8129_v38 = vld [vmem:[#allocation5 + $0xfc0] sm:$0xf]  ;;  %v7874_v43 = vor.u32 %v9628_v35, %v7873_v34  ;;  %3285 = vmatpush.bf16.msrb.mxu1 %v7618_v42 }
  0x65   :  { %v9692_v39 = vld [vmem:[#allocation5 + $0xfdc] sm:$0xf0] }
  0x66   :  { %v7329_v44 = vld [vmem:[#allocation5 + $0x980] sm:$0xf]  ;;  %v8130_v47 = vor.u32 %v9692_v39, %v8129_v38  ;;  %3298 = vmatpush.bf16.msrb.mxu2 %v7874_v43 }
  0x67   :  { %v9492_v45 = vld [vmem:[#allocation5 + $0x99c] sm:$0xf0] }
  0x68   :  { %v7585_v46 = vld [vmem:[#allocation5 + $0xb80] sm:$0xf]  ;;  %v7330_v53 = vor.u32 %v9492_v45, %v7329_v44  ;;  %3311 = vmatpush.bf16.msrb.mxu3 %v8130_v47 }
  0x69   :  { %v9556_v48 = vld [vmem:[#allocation5 + $0xb9c] sm:$0xf0] }
  0x6a   :  { %v7841_v49 = vld [vmem:[#allocation5 + $0xd80] sm:$0xf]  ;;  %v7586_v55 = vor.u32 %v9556_v48, %v7585_v46  ;;  %3273 = vmatpush.bf16.msrb.mxu0 %v7330_v53 }
  0x6b   :  { %v9620_v50 = vld [vmem:[#allocation5 + $0xd9c] sm:$0xf0] }
  0x6c   :  { %v8097_v51 = vld [vmem:[#allocation5 + $0xf80] sm:$0xf]  ;;  %v7842_v56 = vor.u32 %v9620_v50, %v7841_v49  ;;  %3286 = vmatpush.bf16.msrb.mxu1 %v7586_v55 }
  0x6d   :  { %v9684_v52 = vld [vmem:[#allocation5 + $0xf9c] sm:$0xf0] }
  0x6e   :  { %v7297_v54 = vld [vmem:[#allocation5 + $0x940] sm:$0xf]  ;;  %v8098_v60 = vor.u32 %v9684_v52, %v8097_v51  ;;  %3299 = vmatpush.bf16.msrb.mxu2 %v7842_v56 }
  0x6f   :  { %v9484_v57 = vld [vmem:[#allocation5 + $0x95c] sm:$0xf0] }
  0x70   :  { %v7553_v58 = vld [vmem:[#allocation5 + $0xb40] sm:$0xf]  ;;  %v7298_v3 = vor.u32 %v9484_v57, %v7297_v54  ;;  %3312 = vmatpush.bf16.msrb.mxu3 %v8098_v60 }
  0x71   :  { %v9548_v61 = vld [vmem:[#allocation5 + $0xb5c] sm:$0xf0] }
  0x72   :  { %v7809_v62 = vld [vmem:[#allocation5 + $0xd40] sm:$0xf]  ;;  %v7554_v7 = vor.u32 %v9548_v61, %v7553_v58  ;;  %3274 = vmatpush.bf16.msrb.mxu0 %v7298_v3 }
  0x73   :  { %v9612_v63 = vld [vmem:[#allocation5 + $0xd5c] sm:$0xf0] }
  0x74   :  { %v8065_v1 = vld [vmem:[#allocation5 + $0xf40] sm:$0xf]  ;;  %v7810_v8 = vor.u32 %v9612_v63, %v7809_v62  ;;  %3287 = vmatpush.bf16.msrb.mxu1 %v7554_v7  ;;  %v6339_v7 = vld [vmem:[#allocation5 + $0x1e0] sm:$0xf0] }
  0x75   :  { %v9676_v2 = vld [vmem:[#allocation5 + $0xf5c] sm:$0xf0] }
  0x76   :  { %v7265_v4 = vld [vmem:[#allocation5 + $0x900] sm:$0xf]  ;;  %v8066_v13 = vor.u32 %v9676_v2, %v8065_v1  ;;  %3300 = vmatpush.bf16.msrb.mxu2 %v7810_v8  ;;  %v9304_v8 = vld [vmem:[#allocation5 + $0x3c4] sm:$0xf] }
  0x77   :  { %v9476_v5 = vld [vmem:[#allocation5 + $0x91c] sm:$0xf0] }
  0x78   :  { %v114_v6 = vld [vmem:[#allocation3] sm:$0xff]  ;;  %v7266_v21 = vor.u32 %v9476_v5, %v7265_v4  ;;  %3313 = vmatpush.bf16.msrb.mxu3 %v8066_v13 }
  0x79   :  { %v7521_v9 = vld [vmem:[#allocation5 + $0xb00] sm:$0xf]  ;;  %v10196_v10 = vpack.c.bf16 %v114_v6, %v114_v6  ;;  %v9240_v6 = vld [vmem:[#allocation5 + $0x1c4] sm:$0xf] }
  0x7a   :  { %v9540_v14 = vld [vmem:[#allocation5 + $0xb1c] sm:$0xf0]  ;;  %3275 = vmatpush.bf16.msrb.mxu0 %v7266_v21  ;;  %v6851_v13 = vld [vmem:[#allocation5 + $0x5e0] sm:$0xf0] }
  0x7b   :  { %v7777_v15 = vld [vmem:[#allocation5 + $0xd00] sm:$0xf]  ;;  %3228 = vmatmul.bf16.vlgmr.msra.gmra.mxu0 %v10196_v10  ;;  %v7522_v22 = vor.u32 %v9540_v14, %v7521_v9 }
  0x7c   :  { %v9604_v16 = vld [vmem:[#allocation5 + $0xd1c] sm:$0xf0] }
  0x7d   :  { %v8033_v19 = vld [vmem:[#allocation5 + $0xf00] sm:$0xf]  ;;  %v7778_v23 = vor.u32 %v9604_v16, %v7777_v15  ;;  %3288 = vmatpush.bf16.msrb.mxu1 %v7522_v22  ;;  %v9432_v16 = vld [vmem:[#allocation5 + $0x7c4] sm:$0xf]  ;;  %v6342_v22 = vor.u32 %v9240_v6, %v6339_v7 }
  0x7e   :  { %v9668_v20 = vld [vmem:[#allocation5 + $0xf1c] sm:$0xf0]  ;;  %v6211_v6 = vld [vmem:[#allocation5 + $0xe0] sm:$0xf0] }
  0x7f   :  { %v7233_v24 = vld [vmem:[#allocation5 + $0x8c0] sm:$0xf]  ;;  %v8034_v27 = vor.u32 %v9668_v20, %v8033_v19  ;;  %3301 = vmatpush.bf16.msrb.mxu2 %v7778_v23  ;;  %v7107_v19 = vld [vmem:[#allocation5 + $0x7e0] sm:$0xf0]  ;;  %v120_v20 = vld [vmem:[#allocation3 + $0x30] sm:$0xff] }
  0x80   :  { %v9468_v25 = vld [vmem:[#allocation5 + $0x8dc] sm:$0xf0]  ;;  %v9232_v23 = vld [vmem:[#allocation5 + $0x184] sm:$0xf] }
  0x81   :  { %v7489_v26 = vld [vmem:[#allocation5 + $0xac0] sm:$0xf]  ;;  %v7234_v33 = vor.u32 %v9468_v25, %v7233_v24  ;;  %3314 = vmatpush.bf16.msrb.mxu3 %v8034_v27  ;;  %v121_v25 = vld [vmem:[#allocation3 + $0x38] sm:$0xff]  ;;  %v6854_v27 = vor.u32 %v9368_v12, %v6851_v13  ;;  %v9272_v7 = vld [vmem:[#allocation5 + $0x2c4] sm:$0xf] }
  0x82   :  { %v9532_v28 = vld [vmem:[#allocation5 + $0xadc] sm:$0xf0]  ;;  %v6723_v12 = vld [vmem:[#allocation5 + $0x4e0] sm:$0xf0] }
  0x83   :  { %v7745_v29 = vld [vmem:[#allocation5 + $0xcc0] sm:$0xf]  ;;  %v7490_v34 = vor.u32 %v9532_v28, %v7489_v26  ;;  %3276 = vmatpush.bf16.msrb.mxu0 %v7234_v33  ;;  %v6598_v26 = vor.u32 %v9304_v8, %v6595_v11  ;;  %v6307_v28 = vld [vmem:[#allocation5 + $0x1a0] sm:$0xf0] }
  0x84   :  { %v9596_v30 = vld [vmem:[#allocation5 + $0xcdc] sm:$0xf0]  ;;  %v9360_v33 = vld [vmem:[#allocation5 + $0x584] sm:$0xf] }
  0x85   :  { %v8001_v31 = vld [vmem:[#allocation5 + $0xec0] sm:$0xf]  ;;  %v7746_v35 = vor.u32 %v9596_v30, %v7745_v29  ;;  %3289 = vmatpush.bf16.msrb.mxu1 %v7490_v34  ;;  %v9296_v29 = vld [vmem:[#allocation5 + $0x384] sm:$0xf]  ;;  %v119_v30 = vld [vmem:[#allocation3 + $0x28] sm:$0xff] }
  0x86   :  { %v9660_v32 = vld [vmem:[#allocation5 + $0xedc] sm:$0xf0]  ;;  %v6819_v34 = vld [vmem:[#allocation5 + $0x5a0] sm:$0xf0] }
  0x87   :  { %v7201_v36 = vld [vmem:[#allocation5 + $0x880] sm:$0xf]  ;;  %v8002_v39 = vor.u32 %v9660_v32, %v8001_v31  ;;  %3302 = vmatpush.bf16.msrb.mxu2 %v7746_v35  ;;  %v7110_v31 = vor.u32 %v9432_v16, %v7107_v19  ;;  %v6563_v32 = vld [vmem:[#allocation5 + $0x3a0] sm:$0xf0]  ;;  %v10205_v35 = vpack.c.bf16 %v120_v20, %v120_v20 }
  0x88   :  { %v9460_v37 = vld [vmem:[#allocation5 + $0x89c] sm:$0xf0]  ;;  %v9336_v11 = vld [vmem:[#allocation5 + $0x4c4] sm:$0xf] }
  0x89   :  { %v7457_v38 = vld [vmem:[#allocation5 + $0xa80] sm:$0xf]  ;;  %v7202_v45 = vor.u32 %v9460_v37, %v7201_v36  ;;  %3315 = vmatpush.bf16.msrb.mxu3 %v8002_v39  ;;  %v9424_v36 = vld [vmem:[#allocation5 + $0x784] sm:$0xf]  ;;  %v10209_v39 = vpack.c.bf16 %v121_v25, %v121_v25  ;;  %v6726_v19 = vor.u32 %v9336_v11, %v6723_v12 }
  0x8a   :  { %v9524_v40 = vld [vmem:[#allocation5 + $0xa9c] sm:$0xf0]  ;;  %v7075_v37 = vld [vmem:[#allocation5 + $0x7a0] sm:$0xf0] }
  0x8b   :  { %v7713_v41 = vld [vmem:[#allocation5 + $0xc80] sm:$0xf]  ;;  %v7458_v46 = vor.u32 %v9524_v40, %v7457_v38  ;;  %3277 = vmatpush.bf16.msrb.mxu0 %v7202_v45  ;;  %v6310_v40 = vor.u32 %v9232_v23, %v6307_v28  ;;  %v6275_v45 = vld [vmem:[#allocation5 + $0x160] sm:$0xf0] }
  0x8c   :  { %v9588_v42 = vld [vmem:[#allocation5 + $0xc9c] sm:$0xf0]  ;;  %v9400_v13 = vld [vmem:[#allocation5 + $0x6c4] sm:$0xf] }
  0x8d   :  { %v7969_v43 = vld [vmem:[#allocation5 + $0xe80] sm:$0xf]  ;;  %v7714_v47 = vor.u32 %v9588_v42, %v7713_v41  ;;  %3290 = vmatpush.bf16.msrb.mxu1 %v7458_v46  ;;  %v10211_v41 = vpack.c.bf16 %v119_v30, %v119_v30  ;;  %v6566_v42 = vor.u32 %v9296_v29, %v6563_v32  ;;  %v9288_v46 = vld [vmem:[#allocation5 + $0x344] sm:$0xf] }
  0x8e   :  { %v9652_v44 = vld [vmem:[#allocation5 + $0xe9c] sm:$0xf0]  ;;  %v9200_v20 = vld [vmem:[#allocation5 + $0x84] sm:$0xf] }
  0x8f   :  { %v7169_v48 = vld [vmem:[#allocation5 + $0x840] sm:$0xf]  ;;  %v7970_v51 = vor.u32 %v9652_v44, %v7969_v43  ;;  %3303 = vmatpush.bf16.msrb.mxu2 %v7714_v47  ;;  %v6822_v43 = vor.u32 %v9360_v33, %v6819_v34  ;;  %v9224_v44 = vld [vmem:[#allocation5 + $0x144] sm:$0xf]  ;;  %v7078_v47 = vor.u32 %v9424_v36, %v7075_v37 }
  0x90   :  { %v9452_v49 = vld [vmem:[#allocation5 + $0x85c] sm:$0xf0]  ;;  %v9328_v25 = vld [vmem:[#allocation5 + $0x484] sm:$0xf] }
  0x91   :  { %v7425_v50 = vld [vmem:[#allocation5 + $0xa40] sm:$0xf]  ;;  %v7170_v57 = vor.u32 %v9452_v49, %v7169_v48  ;;  %3316 = vmatpush.bf16.msrb.mxu3 %v7970_v51  ;;  %v6531_v48 = vld [vmem:[#allocation5 + $0x360] sm:$0xf0] }
  0x92   :  { %v9516_v52 = vld [vmem:[#allocation5 + $0xa5c] sm:$0xf0]  ;;  %v9352_v49 = vld [vmem:[#allocation5 + $0x544] sm:$0xf] }
  0x93   :  { %v7681_v53 = vld [vmem:[#allocation5 + $0xc40] sm:$0xf]  ;;  %v7426_v60 = vor.u32 %v9516_v52, %v7425_v50  ;;  %3278 = vmatpush.bf16.msrb.mxu0 %v7170_v57  ;;  %v6787_v50 = vld [vmem:[#allocation5 + $0x560] sm:$0xf0] }
  0x94   :  { %v9580_v54 = vld [vmem:[#allocation5 + $0xc5c] sm:$0xf0]  ;;  %v9416_v51 = vld [vmem:[#allocation5 + $0x744] sm:$0xf] }
  0x95   :  { %v7937_v55 = vld [vmem:[#allocation5 + $0xe40] sm:$0xf]  ;;  %v7682_v61 = vor.u32 %v9580_v54, %v7681_v53  ;;  %3291 = vmatpush.bf16.msrb.mxu1 %v7426_v60  ;;  %v7043_v52 = vld [vmem:[#allocation5 + $0x760] sm:$0xf0]  ;;  %v6278_v53 = vor.u32 %v9224_v44, %v6275_v45  ;;  %v6534_v54 = vor.u32 %v9288_v46, %v6531_v48 }
  0x96   :  { %v9644_v56 = vld [vmem:[#allocation5 + $0xe5c] sm:$0xf0]  ;;  %v6243_v57 = vld [vmem:[#allocation5 + $0x120] sm:$0xf0] }
  0x97   :  { %v7137_v58 = vld [vmem:[#allocation5 + $0x800] sm:$0xf]  ;;  %v7938_v2 = vor.u32 %v9644_v56, %v7937_v55  ;;  %3304 = vmatpush.bf16.msrb.mxu2 %v7682_v61  ;;  %v6790_v55 = vor.u32 %v9352_v49, %v6787_v50  ;;  %v9216_v56 = vld [vmem:[#allocation5 + $0x104] sm:$0xf] }
  0x98   :  { %v9444_v59 = vld [vmem:[#allocation5 + $0x81c] sm:$0xf0]  ;;  %v6499_v60 = vld [vmem:[#allocation5 + $0x320] sm:$0xf0] }
  0x99   :  { %v7393_v62 = vld [vmem:[#allocation5 + $0xa00] sm:$0xf]  ;;  %v7138_v9 = vor.u32 %v9444_v59, %v7137_v58  ;;  %3317 = vmatpush.bf16.msrb.mxu3 %v7938_v2  ;;  %v9280_v58 = vld [vmem:[#allocation5 + $0x304] sm:$0xf]  ;;  %v7046_v59 = vor.u32 %v9416_v51, %v7043_v52  ;;  %v6246_v2 = vor.u32 %v9216_v56, %v6243_v57 }
  0x9a   :  { %v9508_v63 = vld [vmem:[#allocation5 + $0xa1c] sm:$0xf0]  ;;  %v9344_v61 = vld [vmem:[#allocation5 + $0x504] sm:$0xf] }
  0x9b   :  { %v7649_v1 = vld [vmem:[#allocation5 + $0xc00] sm:$0xf]  ;;  %v7394_v14 = vor.u32 %v9508_v63, %v7393_v62  ;;  %3279 = vmatpush.bf16.msrb.mxu0 %v7138_v9  ;;  %v6755_v62 = vld [vmem:[#allocation5 + $0x520] sm:$0xf0] }
  0x9c   :  { %v9572_v3 = vld [vmem:[#allocation5 + $0xc1c] sm:$0xf0]  ;;  %v9408_v63 = vld [vmem:[#allocation5 + $0x704] sm:$0xf] }
  0x9d   :  { %v7905_v4 = vld [vmem:[#allocation5 + $0xe00] sm:$0xf]  ;;  %v7650_v15 = vor.u32 %v9572_v3, %v7649_v1  ;;  %3292 = vmatpush.bf16.msrb.mxu1 %v7394_v14  ;;  %v7011_v1 = vld [vmem:[#allocation5 + $0x720] sm:$0xf0]  ;;  %v6502_v3 = vor.u32 %v9280_v58, %v6499_v60 }
  0x9e   :  { %v9636_v5 = vld [vmem:[#allocation5 + $0xe1c] sm:$0xf0]  ;;  %v7014_v8 = vor.u32 %v9408_v63, %v7011_v1  ;;  %v6467_v9 = vld [vmem:[#allocation5 + $0x2e0] sm:$0xf0] }
  0x9f   :  { %v7906_v21 = vor.u32 %v9636_v5, %v7905_v4  ;;  %v118_v24 = vld [vmem:[#allocation3 + $0x20] sm:$0xff]  ;;  %3305 = vmatpush.bf16.msrb.mxu2 %v7650_v15  ;;  %3324 = vmatpush.bf16.msra.mxu0 %v6342_v22  ;;  %v6758_v4 = vor.u32 %v9344_v61, %v6755_v62  ;;  %v6470_v16 = vor.u32 %v9272_v7, %v6467_v9 }
  0xa0   :  { %v10207_v38 = vpack.c.bf16 %v118_v24, %v118_v24  ;;  %3293 = vmatmul.bf16.vlgmr.msrb.gmra.mxu1 %v10211_v41  ;;  %v9208_v5 = vld [vmem:[#allocation5 + $0xc4] sm:$0xf] }
  0xa1   :  { %3318 = vmatpush.bf16.msrb.mxu3 %v7906_v21  ;;  %3337 = vmatpush.bf16.msra.mxu1 %v6598_v26  ;;  %v6979_v14 = vld [vmem:[#allocation5 + $0x6e0] sm:$0xf0]  ;;  %v6214_v15 = vor.u32 %v9208_v5, %v6211_v6 }
  0xa2   :  { %3306 = vmatmul.bf16.vlgmr.msrb.gmra.mxu2 %v10205_v35  ;;  %3280 = vmatmul.bf16.vlgmr.msrb.gmra.mxu0 %v10207_v38  ;;  %v6179_v21 = vld [vmem:[#allocation5 + $0xa0] sm:$0xf0]  ;;  %v6982_v23 = vor.u32 %v9400_v13, %v6979_v14 }
  0xa3   :  { %3350 = vmatpush.bf16.msra.mxu2 %v6854_v27  ;;  %3325 = vmatpush.bf16.msra.mxu0 %v6310_v40  ;;  %v9264_v22 = vld [vmem:[#allocation5 + $0x284] sm:$0xf]  ;;  %v6182_v29 = vor.u32 %v9200_v20, %v6179_v21 }
  0xa4   :  { %3319 = vmatmul.bf16.vlgmr.msrb.gmra.mxu3 %v10209_v39  ;;  %v6435_v24 = vld [vmem:[#allocation5 + $0x2a0] sm:$0xf0] }
  0xa5   :  { %3363 = vmatpush.bf16.msra.mxu3 %v7110_v31  ;;  %3338 = vmatpush.bf16.msra.mxu1 %v6566_v42  ;;  %v6691_v26 = vld [vmem:[#allocation5 + $0x4a0] sm:$0xf0]  ;;  %v6438_v30 = vor.u32 %v9264_v22, %v6435_v24 }
  0xa6   :  { %v9392_v27 = vld [vmem:[#allocation5 + $0x684] sm:$0xf]  ;;  %v6694_v31 = vor.u32 %v9328_v25, %v6691_v26 }
  0xa7   :  { %3351 = vmatpush.bf16.msra.mxu2 %v6822_v43  ;;  %3326 = vmatpush.bf16.msra.mxu0 %v6278_v53  ;;  %v6947_v28 = vld [vmem:[#allocation5 + $0x6a0] sm:$0xf0] }
  0xa8   :  { %v9192_v32 = vld [vmem:[#allocation5 + $0x44] sm:$0xf]  ;;  %v6950_v36 = vor.u32 %v9392_v27, %v6947_v28 }
  0xa9   :  { %3364 = vmatpush.bf16.msra.mxu3 %v7078_v47  ;;  %3339 = vmatpush.bf16.msra.mxu1 %v6534_v54  ;;  %v6147_v33 = vld [vmem:[#allocation5 + $0x60] sm:$0xf0] }
  0xaa   :  { %v9256_v34 = vld [vmem:[#allocation5 + $0x244] sm:$0xf]  ;;  %v6150_v45 = vor.u32 %v9192_v32, %v6147_v33 }
  0xab   :  { %3352 = vmatpush.bf16.msra.mxu2 %v6790_v55  ;;  %3327 = vmatpush.bf16.msra.mxu0 %v6246_v2  ;;  %v6403_v37 = vld [vmem:[#allocation5 + $0x260] sm:$0xf0] }
  0xac   :  { %v9320_v40 = vld [vmem:[#allocation5 + $0x444] sm:$0xf]  ;;  %v6406_v48 = vor.u32 %v9256_v34, %v6403_v37 }
  0xad   :  { %3365 = vmatpush.bf16.msra.mxu3 %v7046_v59  ;;  %3340 = vmatpush.bf16.msra.mxu1 %v6502_v3  ;;  %v6659_v42 = vld [vmem:[#allocation5 + $0x460] sm:$0xf0] }
  0xae   :  { %v9384_v43 = vld [vmem:[#allocation5 + $0x644] sm:$0xf]  ;;  %v6662_v49 = vor.u32 %v9320_v40, %v6659_v42 }
  0xaf   :  { %3353 = vmatpush.bf16.msra.mxu2 %v6758_v4  ;;  %3328 = vmatpush.bf16.msra.mxu0 %v6214_v15  ;;  %v6915_v44 = vld [vmem:[#allocation5 + $0x660] sm:$0xf0] }
  0xb0   :  { %v9184_v46 = vld [vmem:[#allocation5 + $0x4] sm:$0xf]  ;;  %v6918_v53 = vor.u32 %v9384_v43, %v6915_v44 }
  0xb1   :  { %3366 = vmatpush.bf16.msra.mxu3 %v7014_v8  ;;  %3341 = vmatpush.bf16.msra.mxu1 %v6470_v16  ;;  %v6115_v47 = vld [vmem:[#allocation5 + $0x20] sm:$0xf0] }
  0xb2   :  { %v9248_v50 = vld [vmem:[#allocation5 + $0x204] sm:$0xf]  ;;  %v6118_v60 = vor.u32 %v9184_v46, %v6115_v47 }
  0xb3   :  { %3354 = vmatpush.bf16.msra.mxu2 %v6726_v19  ;;  %3329 = vmatpush.bf16.msra.mxu0 %v6182_v29  ;;  %v6371_v51 = vld [vmem:[#allocation5 + $0x220] sm:$0xf0] }
  0xb4   :  { %v9312_v52 = vld [vmem:[#allocation5 + $0x404] sm:$0xf]  ;;  %v6374_v1 = vor.u32 %v9248_v50, %v6371_v51 }
  0xb5   :  { %3367 = vmatpush.bf16.msra.mxu3 %v6982_v23  ;;  %3342 = vmatpush.bf16.msra.mxu1 %v6438_v30  ;;  %v6627_v54 = vld [vmem:[#allocation5 + $0x420] sm:$0xf0] }
  0xb6   :  { %v9376_v55 = vld [vmem:[#allocation5 + $0x604] sm:$0xf]  ;;  %v6630_v2 = vor.u32 %v9312_v52, %v6627_v54 }
  0xb7   :  { %3355 = vmatpush.bf16.msra.mxu2 %v6694_v31  ;;  %v6883_v56 = vld [vmem:[#allocation5 + $0x620] sm:$0xf0]  ;;  %3330 = vmatpush.bf16.msra.mxu0 %v6150_v45 }
  0xb8   :  { %v9496_v57 = vld [vmem:[#allocation5 + $0x9c4] sm:$0xf]  ;;  %v6886_v5 = vor.u32 %v9376_v55, %v6883_v56 }
  0xb9   :  { %3368 = vmatpush.bf16.msra.mxu3 %v6950_v36  ;;  %v7363_v58 = vld [vmem:[#allocation5 + $0x9e0] sm:$0xf0]  ;;  %3343 = vmatpush.bf16.msra.mxu1 %v6406_v48 }
  0xba   :  { %v9560_v59 = vld [vmem:[#allocation5 + $0xbc4] sm:$0xf]  ;;  %v7366_v6 = vor.u32 %v9496_v57, %v7363_v58 }
  0xbb   :  { %v7619_v61 = vld [vmem:[#allocation5 + $0xbe0] sm:$0xf0]  ;;  %3356 = vmatpush.bf16.msra.mxu2 %v6662_v49  ;;  %3331 = vmatpush.bf16.msra.mxu0 %v6118_v60 }
  0xbc   :  { %v9624_v62 = vld [vmem:[#allocation5 + $0xdc4] sm:$0xf]  ;;  %v7622_v7 = vor.u32 %v9560_v59, %v7619_v61 }
  0xbd   :  { %v7875_v63 = vld [vmem:[#allocation5 + $0xde0] sm:$0xf0]  ;;  %3369 = vmatpush.bf16.msra.mxu3 %v6918_v53  ;;  %3344 = vmatpush.bf16.msra.mxu1 %v6374_v1 }
  0xbe   :  { %v9688_v3 = vld [vmem:[#allocation5 + $0xfc4] sm:$0xf]  ;;  %v7878_v8 = vor.u32 %v9624_v62, %v7875_v63  ;;  %3332 = vmatmul.bf16.vlgmr.msra.gmra.mxu0 %v10196_v10 }
  0xbf   :  { %v8131_v4 = vld [vmem:[#allocation5 + $0xfe0] sm:$0xf0]  ;;  %3357 = vmatpush.bf16.msra.mxu2 %v6630_v2  ;;  %3376 = vmatpush.bf16.msrb.mxu0 %v7366_v6 }
  0xc0   :  { %v9488_v9 = vld [vmem:[#allocation5 + $0x984] sm:$0xf]  ;;  %v8134_v13 = vor.u32 %v9688_v3, %v8131_v4  ;;  %3345 = vmatmul.bf16.vlgmr.msra.gmra.mxu1 %v10200_v18 }
  0xc1   :  { %v7331_v11 = vld [vmem:[#allocation5 + $0x9a0] sm:$0xf0]  ;;  %3370 = vmatpush.bf16.msra.mxu3 %v6886_v5  ;;  %3389 = vmatpush.bf16.msrb.mxu1 %v7622_v7 }
  0xc2   :  { %v9552_v12 = vld [vmem:[#allocation5 + $0xb84] sm:$0xf]  ;;  %v7334_v21 = vor.u32 %v9488_v9, %v7331_v11  ;;  %3358 = vmatmul.bf16.vlgmr.msra.gmra.mxu2 %v10193_v0 }
  0xc3   :  { %v7587_v14 = vld [vmem:[#allocation5 + $0xba0] sm:$0xf0]  ;;  %3402 = vmatpush.bf16.msrb.mxu2 %v7878_v8 }
  0xc4   :  { %v9616_v15 = vld [vmem:[#allocation5 + $0xd84] sm:$0xf]  ;;  %v7590_v22 = vor.u32 %v9552_v12, %v7587_v14  ;;  %3371 = vmatmul.bf16.vlgmr.msra.gmra.mxu3 %v10198_v17  ;;  %3377 = vmatpush.bf16.msrb.mxu0 %v7334_v21 }
  0xc5   :  { %v7843_v16 = vld [vmem:[#allocation5 + $0xda0] sm:$0xf0]  ;;  %3415 = vmatpush.bf16.msrb.mxu3 %v8134_v13 }
  0xc6   :  { %v9680_v19 = vld [vmem:[#allocation5 + $0xf84] sm:$0xf]  ;;  %v7846_v23 = vor.u32 %v9616_v15, %v7843_v16  ;;  %3390 = vmatpush.bf16.msrb.mxu1 %v7590_v22 }
  0xc7   :  { %v8099_v20 = vld [vmem:[#allocation5 + $0xfa0] sm:$0xf0] }
  0xc8   :  { %v9480_v24 = vld [vmem:[#allocation5 + $0x944] sm:$0xf]  ;;  %v8102_v27 = vor.u32 %v9680_v19, %v8099_v20  ;;  %3403 = vmatpush.bf16.msrb.mxu2 %v7846_v23 }
  0xc9   :  { %v7299_v25 = vld [vmem:[#allocation5 + $0x960] sm:$0xf0] }
  0xca   :  { %v9544_v26 = vld [vmem:[#allocation5 + $0xb44] sm:$0xf]  ;;  %v7302_v33 = vor.u32 %v9480_v24, %v7299_v25  ;;  %3416 = vmatpush.bf16.msrb.mxu3 %v8102_v27 }
  0xcb   :  { %v7555_v28 = vld [vmem:[#allocation5 + $0xb60] sm:$0xf0] }
  0xcc   :  { %v9608_v29 = vld [vmem:[#allocation5 + $0xd44] sm:$0xf]  ;;  %v7558_v34 = vor.u32 %v9544_v26, %v7555_v28  ;;  %3378 = vmatpush.bf16.msrb.mxu0 %v7302_v33 }
  0xcd   :  { %v7811_v30 = vld [vmem:[#allocation5 + $0xd60] sm:$0xf0] }
  0xce   :  { %v9672_v31 = vld [vmem:[#allocation5 + $0xf44] sm:$0xf]  ;;  %v7814_v36 = vor.u32 %v9608_v29, %v7811_v30  ;;  %3391 = vmatpush.bf16.msrb.mxu1 %v7558_v34 }
  0xcf   :  { %v8067_v32 = vld [vmem:[#allocation5 + $0xf60] sm:$0xf0] }
  0xd0   :  { %v9472_v37 = vld [vmem:[#allocation5 + $0x904] sm:$0xf]  ;;  %v8070_v43 = vor.u32 %v9672_v31, %v8067_v32  ;;  %3404 = vmatpush.bf16.msrb.mxu2 %v7814_v36 }
  0xd1   :  { %v7267_v40 = vld [vmem:[#allocation5 + $0x920] sm:$0xf0] }
  0xd2   :  { %v9536_v42 = vld [vmem:[#allocation5 + $0xb04] sm:$0xf]  ;;  %v7270_v49 = vor.u32 %v9472_v37, %v7267_v40  ;;  %3417 = vmatpush.bf16.msrb.mxu3 %v8070_v43  ;;  %v6345_v40 = vld [vmem:[#allocation5 + $0x1c8] sm:$0xf] }
  0xd3   :  { %v7523_v44 = vld [vmem:[#allocation5 + $0xb20] sm:$0xf0]  ;;  %v6601_v43 = vld [vmem:[#allocation5 + $0x3c8] sm:$0xf] }
  0xd4   :  { %v9600_v45 = vld [vmem:[#allocation5 + $0xd04] sm:$0xf]  ;;  %v7526_v50 = vor.u32 %v9536_v42, %v7523_v44  ;;  %3379 = vmatpush.bf16.msrb.mxu0 %v7270_v49  ;;  %v9245_v42 = vld [vmem:[#allocation5 + $0x1e4] sm:$0xf0] }
  0xd5   :  { %v7779_v46 = vld [vmem:[#allocation5 + $0xd20] sm:$0xf0] }
  0xd6   :  { %v9664_v47 = vld [vmem:[#allocation5 + $0xf04] sm:$0xf]  ;;  %v7782_v51 = vor.u32 %v9600_v45, %v7779_v46  ;;  %3392 = vmatpush.bf16.msrb.mxu1 %v7526_v50  ;;  %v9309_v45 = vld [vmem:[#allocation5 + $0x3e4] sm:$0xf0] }
  0xd7   :  { %v8035_v48 = vld [vmem:[#allocation5 + $0xf20] sm:$0xf0]  ;;  %v6857_v46 = vld [vmem:[#allocation5 + $0x5c8] sm:$0xf] }
  0xd8   :  { %v9464_v52 = vld [vmem:[#allocation5 + $0x8c4] sm:$0xf]  ;;  %v8038_v55 = vor.u32 %v9664_v47, %v8035_v48  ;;  %3405 = vmatpush.bf16.msrb.mxu2 %v7782_v51  ;;  %v9373_v47 = vld [vmem:[#allocation5 + $0x5e4] sm:$0xf0] }
  0xd9   :  { %v7235_v53 = vld [vmem:[#allocation5 + $0x8e0] sm:$0xf0]  ;;  %v7113_v50 = vld [vmem:[#allocation5 + $0x7c8] sm:$0xf] }
  0xda   :  { %v9528_v54 = vld [vmem:[#allocation5 + $0xac4] sm:$0xf]  ;;  %v7238_v61 = vor.u32 %v9464_v52, %v7235_v53  ;;  %3418 = vmatpush.bf16.msrb.mxu3 %v8038_v55  ;;  %v9437_v51 = vld [vmem:[#allocation5 + $0x7e4] sm:$0xf0]  ;;  %v6346_v53 = vor.u32 %v9245_v42, %v6345_v40  ;;  %v6858_v55 = vor.u32 %v9373_v47, %v6857_v46 }
  0xdb   :  { %v7491_v56 = vld [vmem:[#allocation5 + $0xae0] sm:$0xf0]  ;;  %v6729_v40 = vld [vmem:[#allocation5 + $0x4c8] sm:$0xf] }
  0xdc   :  { %v9592_v57 = vld [vmem:[#allocation5 + $0xcc4] sm:$0xf]  ;;  %v7494_v62 = vor.u32 %v9528_v54, %v7491_v56  ;;  %3380 = vmatpush.bf16.msrb.mxu0 %v7238_v61  ;;  %v6602_v54 = vor.u32 %v9309_v45, %v6601_v43  ;;  %v6313_v56 = vld [vmem:[#allocation5 + $0x188] sm:$0xf] }
  0xdd   :  { %v7747_v58 = vld [vmem:[#allocation5 + $0xce0] sm:$0xf0]  ;;  %v6825_v61 = vld [vmem:[#allocation5 + $0x588] sm:$0xf] }
  0xde   :  { %v9656_v59 = vld [vmem:[#allocation5 + $0xec4] sm:$0xf]  ;;  %v7750_v63 = vor.u32 %v9592_v57, %v7747_v58  ;;  %3393 = vmatpush.bf16.msrb.mxu1 %v7494_v62  ;;  %v9237_v57 = vld [vmem:[#allocation5 + $0x1a4] sm:$0xf0] }
  0xdf   :  { %v8003_v60 = vld [vmem:[#allocation5 + $0xee0] sm:$0xf0]  ;;  %v6569_v58 = vld [vmem:[#allocation5 + $0x388] sm:$0xf] }
  0xe0   :  { %v9456_v1 = vld [vmem:[#allocation5 + $0x884] sm:$0xf]  ;;  %v8006_v4 = vor.u32 %v9656_v59, %v8003_v60  ;;  %3406 = vmatpush.bf16.msrb.mxu2 %v7750_v63  ;;  %v7114_v59 = vor.u32 %v9437_v51, %v7113_v50  ;;  %v9301_v60 = vld [vmem:[#allocation5 + $0x3a4] sm:$0xf0] }
  0xe1   :  { %v7203_v2 = vld [vmem:[#allocation5 + $0x8a0] sm:$0xf0]  ;;  %v9365_v62 = vld [vmem:[#allocation5 + $0x5a4] sm:$0xf0] }
  0xe2   :  { %v9520_v3 = vld [vmem:[#allocation5 + $0xa84] sm:$0xf]  ;;  %v7206_v11 = vor.u32 %v9456_v1, %v7203_v2  ;;  %3419 = vmatpush.bf16.msrb.mxu3 %v8006_v4  ;;  %v7081_v63 = vld [vmem:[#allocation5 + $0x788] sm:$0xf]  ;;  %v6314_v2 = vor.u32 %v9237_v57, %v6313_v56  ;;  %v6826_v4 = vor.u32 %v9365_v62, %v6825_v61 }
  0xe3   :  { %v7459_v5 = vld [vmem:[#allocation5 + $0xaa0] sm:$0xf0]  ;;  %v9429_v1 = vld [vmem:[#allocation5 + $0x7a4] sm:$0xf0] }
  0xe4   :  { %v9584_v6 = vld [vmem:[#allocation5 + $0xc84] sm:$0xf]  ;;  %v7462_v12 = vor.u32 %v9520_v3, %v7459_v5  ;;  %3381 = vmatpush.bf16.msrb.mxu0 %v7206_v11  ;;  %v6570_v3 = vor.u32 %v9301_v60, %v6569_v58  ;;  %v6281_v5 = vld [vmem:[#allocation5 + $0x148] sm:$0xf] }
  0xe5   :  { %v7715_v7 = vld [vmem:[#allocation5 + $0xca0] sm:$0xf0]  ;;  %v6793_v11 = vld [vmem:[#allocation5 + $0x548] sm:$0xf] }
  0xe6   :  { %v9648_v8 = vld [vmem:[#allocation5 + $0xe84] sm:$0xf]  ;;  %v7718_v13 = vor.u32 %v9584_v6, %v7715_v7  ;;  %3394 = vmatpush.bf16.msrb.mxu1 %v7462_v12  ;;  %v9229_v6 = vld [vmem:[#allocation5 + $0x164] sm:$0xf0] }
  0xe7   :  { %v7971_v9 = vld [vmem:[#allocation5 + $0xea0] sm:$0xf0]  ;;  %v6537_v7 = vld [vmem:[#allocation5 + $0x348] sm:$0xf] }
  0xe8   :  { %v9448_v14 = vld [vmem:[#allocation5 + $0x844] sm:$0xf]  ;;  %v7974_v19 = vor.u32 %v9648_v8, %v7971_v9  ;;  %3407 = vmatpush.bf16.msrb.mxu2 %v7718_v13  ;;  %v7082_v8 = vor.u32 %v9429_v1, %v7081_v63  ;;  %v9293_v9 = vld [vmem:[#allocation5 + $0x364] sm:$0xf0] }
  0xe9   :  { %v7171_v15 = vld [vmem:[#allocation5 + $0x860] sm:$0xf0]  ;;  %v9357_v12 = vld [vmem:[#allocation5 + $0x564] sm:$0xf0] }
  0xea   :  { %v9512_v16 = vld [vmem:[#allocation5 + $0xa44] sm:$0xf]  ;;  %v7174_v25 = vor.u32 %v9448_v14, %v7171_v15  ;;  %3420 = vmatpush.bf16.msrb.mxu3 %v7974_v19  ;;  %v7049_v13 = vld [vmem:[#allocation5 + $0x748] sm:$0xf]  ;;  %v6282_v15 = vor.u32 %v9229_v6, %v6281_v5  ;;  %v6794_v19 = vor.u32 %v9357_v12, %v6793_v11 }
  0xeb   :  { %v7427_v20 = vld [vmem:[#allocation5 + $0xa60] sm:$0xf0]  ;;  %v9421_v14 = vld [vmem:[#allocation5 + $0x764] sm:$0xf0] }
  0xec   :  { %v9576_v21 = vld [vmem:[#allocation5 + $0xc44] sm:$0xf]  ;;  %v7430_v28 = vor.u32 %v9512_v16, %v7427_v20  ;;  %3382 = vmatpush.bf16.msrb.mxu0 %v7174_v25  ;;  %v6538_v16 = vor.u32 %v9293_v9, %v6537_v7  ;;  %v6249_v20 = vld [vmem:[#allocation5 + $0x108] sm:$0xf] }
  0xed   :  { %v7683_v22 = vld [vmem:[#allocation5 + $0xc60] sm:$0xf0]  ;;  %v6761_v25 = vld [vmem:[#allocation5 + $0x508] sm:$0xf] }
  0xee   :  { %v9640_v23 = vld [vmem:[#allocation5 + $0xe44] sm:$0xf]  ;;  %v7686_v29 = vor.u32 %v9576_v21, %v7683_v22  ;;  %3395 = vmatpush.bf16.msrb.mxu1 %v7430_v28  ;;  %v9221_v21 = vld [vmem:[#allocation5 + $0x124] sm:$0xf0] }
  0xef   :  { %v7939_v24 = vld [vmem:[#allocation5 + $0xe60] sm:$0xf0]  ;;  %v6505_v22 = vld [vmem:[#allocation5 + $0x308] sm:$0xf] }
  0xf0   :  { %v9440_v26 = vld [vmem:[#allocation5 + $0x804] sm:$0xf]  ;;  %v7942_v33 = vor.u32 %v9640_v23, %v7939_v24  ;;  %3408 = vmatpush.bf16.msrb.mxu2 %v7686_v29  ;;  %v7050_v23 = vor.u32 %v9421_v14, %v7049_v13  ;;  %v9285_v24 = vld [vmem:[#allocation5 + $0x324] sm:$0xf0]  ;;  %v6250_v29 = vor.u32 %v9221_v21, %v6249_v20 }
  0xf1   :  { %v7139_v27 = vld [vmem:[#allocation5 + $0x820] sm:$0xf0]  ;;  %v9413_v28 = vld [vmem:[#allocation5 + $0x724] sm:$0xf0] }
  0xf2   :  { %v9504_v30 = vld [vmem:[#allocation5 + $0xa04] sm:$0xf]  ;;  %v7142_v44 = vor.u32 %v9440_v26, %v7139_v27  ;;  %3421 = vmatpush.bf16.msrb.mxu3 %v7942_v33  ;;  %v9349_v26 = vld [vmem:[#allocation5 + $0x524] sm:$0xf0] }
  0xf3   :  { %v7395_v31 = vld [vmem:[#allocation5 + $0xa20] sm:$0xf0]  ;;  %v7017_v27 = vld [vmem:[#allocation5 + $0x708] sm:$0xf] }
  0xf4   :  { %v9568_v32 = vld [vmem:[#allocation5 + $0xc04] sm:$0xf]  ;;  %v7398_v48 = vor.u32 %v9504_v30, %v7395_v31  ;;  %3383 = vmatpush.bf16.msrb.mxu0 %v7142_v44  ;;  %v6506_v30 = vor.u32 %v9285_v24, %v6505_v22  ;;  %v6762_v31 = vor.u32 %v9349_v26, %v6761_v25  ;;  %v9213_v33 = vld [vmem:[#allocation5 + $0xe4] sm:$0xf0] }
  0xf5   :  { %v7651_v34 = vld [vmem:[#allocation5 + $0xc20] sm:$0xf0]  ;;  %v9341_v42 = vld [vmem:[#allocation5 + $0x4e4] sm:$0xf0] }
  0xf6   :  { %v9632_v36 = vld [vmem:[#allocation5 + $0xe04] sm:$0xf]  ;;  %v7654_v49 = vor.u32 %v9568_v32, %v7651_v34  ;;  %3396 = vmatpush.bf16.msrb.mxu1 %v7398_v48  ;;  %v6217_v32 = vld [vmem:[#allocation5 + $0xc8] sm:$0xf]  ;;  %v6730_v47 = vor.u32 %v9341_v42, %v6729_v40 }
  0xf7   :  { %v7907_v37 = vld [vmem:[#allocation5 + $0xe20] sm:$0xf0]  ;;  %3384 = vmatmul.bf16.vlgmr.msrb.gmra.mxu0 %v10207_v38  ;;  %v6473_v34 = vld [vmem:[#allocation5 + $0x2c8] sm:$0xf]  ;;  %v6218_v45 = vor.u32 %v9213_v33, %v6217_v32 }
  0xf8   :  { %v7910_v52 = vor.u32 %v9632_v36, %v7907_v37  ;;  %3409 = vmatpush.bf16.msrb.mxu2 %v7654_v49  ;;  %3428 = vmatpush.bf16.msra.mxu0 %v6346_v53  ;;  %v7018_v36 = vor.u32 %v9413_v28, %v7017_v27  ;;  %v9277_v37 = vld [vmem:[#allocation5 + $0x2e4] sm:$0xf0] }
  0xf9   :  { %3397 = vmatmul.bf16.vlgmr.msrb.gmra.mxu1 %v10211_v41  ;;  %v6985_v43 = vld [vmem:[#allocation5 + $0x6c8] sm:$0xf]  ;;  %v6474_v46 = vor.u32 %v9277_v37, %v6473_v34 }
  0xfa   :  { %3422 = vmatpush.bf16.msrb.mxu3 %v7910_v52  ;;  %3441 = vmatpush.bf16.msra.mxu1 %v6602_v54  ;;  %v9405_v44 = vld [vmem:[#allocation5 + $0x6e4] sm:$0xf0] }
  0xfb   :  { %3410 = vmatmul.bf16.vlgmr.msrb.gmra.mxu2 %v10205_v35  ;;  %v6185_v48 = vld [vmem:[#allocation5 + $0x88] sm:$0xf]  ;;  %v6986_v51 = vor.u32 %v9405_v44, %v6985_v43 }
  0xfc   :  { %3454 = vmatpush.bf16.msra.mxu2 %v6858_v55  ;;  %3429 = vmatpush.bf16.msra.mxu0 %v6314_v2  ;;  %v9205_v49 = vld [vmem:[#allocation5 + $0xa4] sm:$0xf0] }
  0xfd   :  { %3423 = vmatmul.bf16.vlgmr.msrb.gmra.mxu3 %v10209_v39  ;;  %v6441_v50 = vld [vmem:[#allocation5 + $0x288] sm:$0xf]  ;;  %v6186_v57 = vor.u32 %v9205_v49, %v6185_v48 }
  0xfe   :  { %3467 = vmatpush.bf16.msra.mxu3 %v7114_v59  ;;  %3442 = vmatpush.bf16.msra.mxu1 %v6570_v3  ;;  %v9269_v52 = vld [vmem:[#allocation5 + $0x2a4] sm:$0xf0] }
  0xff   :  { %v6697_v53 = vld [vmem:[#allocation5 + $0x488] sm:$0xf]  ;;  %v6442_v58 = vor.u32 %v9269_v52, %v6441_v50 }
 0x100   :  { %3455 = vmatpush.bf16.msra.mxu2 %v6826_v4  ;;  %3430 = vmatpush.bf16.msra.mxu0 %v6282_v15  ;;  %v9333_v54 = vld [vmem:[#allocation5 + $0x4a4] sm:$0xf0] }
 0x101   :  { %v6953_v55 = vld [vmem:[#allocation5 + $0x688] sm:$0xf]  ;;  %v6698_v59 = vor.u32 %v9333_v54, %v6697_v53 }
 0x102   :  { %3468 = vmatpush.bf16.msra.mxu3 %v7082_v8  ;;  %3443 = vmatpush.bf16.msra.mxu1 %v6538_v16  ;;  %v9397_v56 = vld [vmem:[#allocation5 + $0x6a4] sm:$0xf0] }
 0x103   :  { %v6153_v60 = vld [vmem:[#allocation5 + $0x48] sm:$0xf]  ;;  %v6954_v63 = vor.u32 %v9397_v56, %v6953_v55 }
 0x104   :  { %3456 = vmatpush.bf16.msra.mxu2 %v6794_v19  ;;  %3431 = vmatpush.bf16.msra.mxu0 %v6250_v29  ;;  %v9197_v61 = vld [vmem:[#allocation5 + $0x64] sm:$0xf0] }
 0x105   :  { %v6409_v62 = vld [vmem:[#allocation5 + $0x248] sm:$0xf]  ;;  %v6154_v6 = vor.u32 %v9197_v61, %v6153_v60 }
 0x106   :  { %3469 = vmatpush.bf16.msra.mxu3 %v7050_v23  ;;  %3444 = vmatpush.bf16.msra.mxu1 %v6506_v30  ;;  %v9261_v1 = vld [vmem:[#allocation5 + $0x264] sm:$0xf0] }
 0x107   :  { %v6665_v2 = vld [vmem:[#allocation5 + $0x448] sm:$0xf]  ;;  %v6410_v9 = vor.u32 %v9261_v1, %v6409_v62 }
 0x108   :  { %3457 = vmatpush.bf16.msra.mxu2 %v6762_v31  ;;  %3432 = vmatpush.bf16.msra.mxu0 %v6218_v45  ;;  %v9325_v3 = vld [vmem:[#allocation5 + $0x464] sm:$0xf0] }
 0x109   :  { %v6921_v4 = vld [vmem:[#allocation5 + $0x648] sm:$0xf]  ;;  %v6666_v11 = vor.u32 %v9325_v3, %v6665_v2 }
 0x10a   :  { %3470 = vmatpush.bf16.msra.mxu3 %v7018_v36  ;;  %3445 = vmatpush.bf16.msra.mxu1 %v6474_v46  ;;  %v9389_v5 = vld [vmem:[#allocation5 + $0x664] sm:$0xf0] }
 0x10b   :  { %v6121_v7 = vld [vmem:[#allocation5 + $0x8] sm:$0xf]  ;;  %v6922_v15 = vor.u32 %v9389_v5, %v6921_v4 }
 0x10c   :  { %3458 = vmatpush.bf16.msra.mxu2 %v6730_v47  ;;  %3433 = vmatpush.bf16.msra.mxu0 %v6186_v57  ;;  %v9189_v8 = vld [vmem:[#allocation5 + $0x24] sm:$0xf0] }
 0x10d   :  { %v6377_v12 = vld [vmem:[#allocation5 + $0x208] sm:$0xf]  ;;  %v6122_v24 = vor.u32 %v9189_v8, %v6121_v7  ;;  %v10229_v8 = vld [vmem:[#allocation7] sm:$0xff] }
 0x10e   :  { %3471 = vmatpush.bf16.msra.mxu3 %v6986_v51  ;;  %3446 = vmatpush.bf16.msra.mxu1 %v6442_v58  ;;  %v9253_v13 = vld [vmem:[#allocation5 + $0x224] sm:$0xf0] }
 0x10f   :  { %v6633_v14 = vld [vmem:[#allocation5 + $0x408] sm:$0xf]  ;;  %v6378_v28 = vor.u32 %v9253_v13, %v6377_v12 }
 0x110   :  { %3459 = vmatpush.bf16.msra.mxu2 %v6698_v59  ;;  %v9317_v16 = vld [vmem:[#allocation5 + $0x424] sm:$0xf0]  ;;  %3434 = vmatpush.bf16.msra.mxu0 %v6154_v6 }
 0x111   :  { %v6889_v19 = vld [vmem:[#allocation5 + $0x608] sm:$0xf]  ;;  %v6634_v29 = vor.u32 %v9317_v16, %v6633_v14 }
 0x112   :  { %3472 = vmatpush.bf16.msra.mxu3 %v6954_v63  ;;  %v9381_v20 = vld [vmem:[#allocation5 + $0x624] sm:$0xf0]  ;;  %3447 = vmatpush.bf16.msra.mxu1 %v6410_v9 }
 0x113   :  { %v7369_v21 = vld [vmem:[#allocation5 + $0x9c8] sm:$0xf]  ;;  %v6890_v32 = vor.u32 %v9381_v20, %v6889_v19  ;;  %v644_v20 = vperm.slane %v10229_v8, 0 }
 0x114   :  { %v9501_v22 = vld [vmem:[#allocation5 + $0x9e4] sm:$0xf0]  ;;  %3460 = vmatpush.bf16.msra.mxu2 %v6666_v11  ;;  %3435 = vmatpush.bf16.msra.mxu0 %v6122_v24 }
 0x115   :  { %v7625_v23 = vld [vmem:[#allocation5 + $0xbc8] sm:$0xf]  ;;  %v7370_v33 = vor.u32 %v9501_v22, %v7369_v21 }
 0x116   :  { %v9565_v25 = vld [vmem:[#allocation5 + $0xbe4] sm:$0xf0]  ;;  %3473 = vmatpush.bf16.msra.mxu3 %v6922_v15  ;;  %3448 = vmatpush.bf16.msra.mxu1 %v6378_v28  ;;  %v3229_v28 = vpop.f32.mrf.mxu0 }
 0x117   :  { %v7881_v26 = vld [vmem:[#allocation5 + $0xdc8] sm:$0xf]  ;;  %v7626_v34 = vor.u32 %v9565_v25, %v7625_v23  ;;  %3436 = vmatmul.bf16.vlgmr.msra.gmra.mxu0 %v10196_v10 }
 0x118   :  { %v9629_v27 = vld [vmem:[#allocation5 + $0xde4] sm:$0xf0]  ;;  %3461 = vmatpush.bf16.msra.mxu2 %v6634_v29  ;;  %3480 = vmatpush.bf16.msrb.mxu0 %v7370_v33 }
 0x119   :  { %v8137_v30 = vld [vmem:[#allocation5 + $0xfc8] sm:$0xf]  ;;  %v7882_v36 = vor.u32 %v9629_v27, %v7881_v26  ;;  %3449 = vmatmul.bf16.vlgmr.msra.gmra.mxu1 %v10200_v18 }
 0x11a   :  { %v9693_v31 = vld [vmem:[#allocation5 + $0xfe4] sm:$0xf0]  ;;  %3474 = vmatpush.bf16.msra.mxu3 %v6890_v32  ;;  %3493 = vmatpush.bf16.msrb.mxu1 %v7626_v34  ;;  %v3230_v34 = vadd.f32 %v3229_v28, %v644_v20  ;;  %v9433_v28 = vld [vmem:[#allocation5 + $0x7cc] sm:$0xf] }
 0x11b   :  { %v7337_v37 = vld [vmem:[#allocation5 + $0x988] sm:$0xf]  ;;  %v8138_v43 = vor.u32 %v9693_v31, %v8137_v30  ;;  %3462 = vmatmul.bf16.vlgmr.msra.gmra.mxu2 %v10193_v0 }
 0x11c   :  { %v9493_v40 = vld [vmem:[#allocation5 + $0x9a4] sm:$0xf0]  ;;  %3506 = vmatpush.bf16.msrb.mxu2 %v7882_v36 }
 0x11d   :  { %v7593_v42 = vld [vmem:[#allocation5 + $0xb88] sm:$0xf]  ;;  %v7338_v49 = vor.u32 %v9493_v40, %v7337_v37  ;;  %3475 = vmatmul.bf16.vlgmr.msra.gmra.mxu3 %v10198_v17 }
 0x11e   :  { %v9557_v44 = vld [vmem:[#allocation5 + $0xba4] sm:$0xf0]  ;;  %3519 = vmatpush.bf16.msrb.mxu3 %v8138_v43 }
 0x11f   :  { %v7849_v45 = vld [vmem:[#allocation5 + $0xd88] sm:$0xf]  ;;  %v7594_v50 = vor.u32 %v9557_v44, %v7593_v42  ;;  %3481 = vmatpush.bf16.msrb.mxu0 %v7338_v49 }
 0x120   :  { %v9621_v46 = vld [vmem:[#allocation5 + $0xda4] sm:$0xf0] }
 0x121   :  { %v8105_v47 = vld [vmem:[#allocation5 + $0xf88] sm:$0xf]  ;;  %v7850_v51 = vor.u32 %v9621_v46, %v7849_v45  ;;  %3494 = vmatpush.bf16.msrb.mxu1 %v7594_v50  ;;  %v3242_v45 = vpop.f32.mrf.mxu1  ;;  %v3255_v46 = vpop.f32.mrf.mxu2 }
 0x122   :  { %v9685_v48 = vld [vmem:[#allocation5 + $0xfa4] sm:$0xf0] }
 0x123   :  { %v7305_v52 = vld [vmem:[#allocation5 + $0x948] sm:$0xf]  ;;  %v8106_v55 = vor.u32 %v9685_v48, %v8105_v47  ;;  %3507 = vmatpush.bf16.msrb.mxu2 %v7850_v51  ;;  %v3243_v48 = vadd.f32 %v3242_v45, %v3230_v34  ;;  %v9233_v34 = vld [vmem:[#allocation5 + $0x18c] sm:$0xf] }
 0x124   :  { %v9485_v53 = vld [vmem:[#allocation5 + $0x964] sm:$0xf0]  ;;  %v6827_v45 = vld [vmem:[#allocation5 + $0x5a8] sm:$0xf0] }
 0x125   :  { %v7561_v54 = vld [vmem:[#allocation5 + $0xb48] sm:$0xf]  ;;  %v7306_v61 = vor.u32 %v9485_v53, %v7305_v52  ;;  %3520 = vmatpush.bf16.msrb.mxu3 %v8106_v55 }
 0x126   :  { %v9549_v56 = vld [vmem:[#allocation5 + $0xb64] sm:$0xf0] }
 0x127   :  { %v7817_v57 = vld [vmem:[#allocation5 + $0xd48] sm:$0xf]  ;;  %v7562_v63 = vor.u32 %v9549_v56, %v7561_v54  ;;  %3482 = vmatpush.bf16.msrb.mxu0 %v7306_v61  ;;  %v3268_v61 = vpop.f32.mrf.mxu3 }
 0x128   :  { %v9613_v58 = vld [vmem:[#allocation5 + $0xd64] sm:$0xf0] }
 0x129   :  { %v8073_v59 = vld [vmem:[#allocation5 + $0xf48] sm:$0xf]  ;;  %v7818_v1 = vor.u32 %v9613_v58, %v7817_v57  ;;  %3495 = vmatpush.bf16.msrb.mxu1 %v7562_v63  ;;  %v3256_v58 = vadd.f32 %v3255_v46, %v3243_v48  ;;  %v3244_v20 = vpop.f32.mrf.mxu1  ;;  %v9425_v46 = vld [vmem:[#allocation5 + $0x78c] sm:$0xf] }
 0x12a   :  { %v9677_v60 = vld [vmem:[#allocation5 + $0xf64] sm:$0xf0]  ;;  %v9273_v20 = vld [vmem:[#allocation5 + $0x2cc] sm:$0xf] }
 0x12b   :  { %v7273_v62 = vld [vmem:[#allocation5 + $0x908] sm:$0xf]  ;;  %v8074_v5 = vor.u32 %v9677_v60, %v8073_v59  ;;  %3508 = vmatpush.bf16.msrb.mxu2 %v7818_v1 }
 0x12c   :  { %v9477_v2 = vld [vmem:[#allocation5 + $0x924] sm:$0xf0] }
 0x12d   :  { %v7529_v3 = vld [vmem:[#allocation5 + $0xb08] sm:$0xf]  ;;  %v7274_v12 = vor.u32 %v9477_v2, %v7273_v62  ;;  %3521 = vmatpush.bf16.msrb.mxu3 %v8074_v5  ;;  %v10232_v2 = vadd.f32 %v3268_v61, %v3256_v58  ;;  %v9417_v58 = vld [vmem:[#allocation5 + $0x74c] sm:$0xf] }
 0x12e   :  { %v9541_v4 = vld [vmem:[#allocation5 + $0xb24] sm:$0xf0] }
 0x12f   :  { %v7785_v6 = vld [vmem:[#allocation5 + $0xd08] sm:$0xf]  ;;  %v7530_v14 = vor.u32 %v9541_v4, %v7529_v3  ;;  %3483 = vmatpush.bf16.msrb.mxu0 %v7274_v12  ;;  %v3231_v3 = vpop.f32.mrf.mxu0 }
 0x130   :  { %v9605_v7 = vld [vmem:[#allocation5 + $0xd24] sm:$0xf0]  ;;  %v9281_v3 = vld [vmem:[#allocation5 + $0x30c] sm:$0xf] }
 0x131   :  { %v8041_v9 = vld [vmem:[#allocation5 + $0xf08] sm:$0xf]  ;;  %v7786_v15 = vor.u32 %v9605_v7, %v7785_v6  ;;  %3496 = vmatpush.bf16.msrb.mxu1 %v7530_v14 }
 0x132   :  { %v9669_v11 = vld [vmem:[#allocation5 + $0xf24] sm:$0xf0] }
 0x133   :  { %v7241_v13 = vld [vmem:[#allocation5 + $0x8c8] sm:$0xf]  ;;  %v8042_v21 = vor.u32 %v9669_v11, %v8041_v9  ;;  %3509 = vmatpush.bf16.msrb.mxu2 %v7786_v15  ;;  %v9241_v15 = vld [vmem:[#allocation5 + $0x1cc] sm:$0xf] }
 0x134   :  { %v9469_v16 = vld [vmem:[#allocation5 + $0x8e4] sm:$0xf0] }
 0x135   :  { %v7497_v19 = vld [vmem:[#allocation5 + $0xac8] sm:$0xf]  ;;  %v7242_v27 = vor.u32 %v9469_v16, %v7241_v13  ;;  %3522 = vmatpush.bf16.msrb.mxu3 %v8042_v21  ;;  %v6347_v16 = vld [vmem:[#allocation5 + $0x1e8] sm:$0xf0]  ;;  %v3257_v21 = vpop.f32.mrf.mxu2 }
 0x136   :  { %v9533_v22 = vld [vmem:[#allocation5 + $0xae4] sm:$0xf0] }
 0x137   :  { %v7753_v23 = vld [vmem:[#allocation5 + $0xcc8] sm:$0xf]  ;;  %v7498_v29 = vor.u32 %v9533_v22, %v7497_v19  ;;  %3484 = vmatpush.bf16.msrb.mxu0 %v7242_v27  ;;  %v9305_v19 = vld [vmem:[#allocation5 + $0x3cc] sm:$0xf] }
 0x138   :  { %v9597_v24 = vld [vmem:[#allocation5 + $0xce4] sm:$0xf0] }
 0x139   :  { %v8009_v25 = vld [vmem:[#allocation5 + $0xec8] sm:$0xf]  ;;  %v7754_v30 = vor.u32 %v9597_v24, %v7753_v23  ;;  %3497 = vmatpush.bf16.msrb.mxu1 %v7498_v29  ;;  %v6603_v23 = vld [vmem:[#allocation5 + $0x3e8] sm:$0xf0] }
 0x13a   :  { %v9661_v26 = vld [vmem:[#allocation5 + $0xee4] sm:$0xf0]  ;;  %v9369_v24 = vld [vmem:[#allocation5 + $0x5cc] sm:$0xf] }
 0x13b   :  { %v7209_v31 = vld [vmem:[#allocation5 + $0x888] sm:$0xf]  ;;  %v8010_v36 = vor.u32 %v9661_v26, %v8009_v25  ;;  %3510 = vmatpush.bf16.msrb.mxu2 %v7754_v30  ;;  %v6859_v25 = vld [vmem:[#allocation5 + $0x5e8] sm:$0xf0] }
 0x13c   :  { %v9461_v32 = vld [vmem:[#allocation5 + $0x8a4] sm:$0xf0]  ;;  %v7115_v29 = vld [vmem:[#allocation5 + $0x7e8] sm:$0xf0] }
 0x13d   :  { %v7465_v33 = vld [vmem:[#allocation5 + $0xa88] sm:$0xf]  ;;  %v7210_v47 = vor.u32 %v9461_v32, %v7209_v31  ;;  %3523 = vmatpush.bf16.msrb.mxu3 %v8010_v36  ;;  %v6350_v31 = vor.u32 %v9241_v15, %v6347_v16  ;;  %v6606_v32 = vor.u32 %v9305_v19, %v6603_v23  ;;  %v6315_v36 = vld [vmem:[#allocation5 + $0x1a8] sm:$0xf0] }
 0x13e   :  { %v9525_v37 = vld [vmem:[#allocation5 + $0xaa4] sm:$0xf0]  ;;  %v6318_v48 = vor.u32 %v9233_v34, %v6315_v36  ;;  %v9209_v16 = vld [vmem:[#allocation5 + $0xcc] sm:$0xf] }
 0x13f   :  { %v7721_v40 = vld [vmem:[#allocation5 + $0xc88] sm:$0xf]  ;;  %v7466_v49 = vor.u32 %v9525_v37, %v7465_v33  ;;  %3485 = vmatpush.bf16.msrb.mxu0 %v7210_v47  ;;  %v6862_v33 = vor.u32 %v9369_v24, %v6859_v25  ;;  %v9297_v37 = vld [vmem:[#allocation5 + $0x38c] sm:$0xf] }
 0x140   :  { %v9589_v42 = vld [vmem:[#allocation5 + $0xca4] sm:$0xf0]  ;;  %v7083_v47 = vld [vmem:[#allocation5 + $0x7a8] sm:$0xf0] }
 0x141   :  { %v7977_v43 = vld [vmem:[#allocation5 + $0xe88] sm:$0xf]  ;;  %v7722_v50 = vor.u32 %v9589_v42, %v7721_v40  ;;  %3498 = vmatpush.bf16.msrb.mxu1 %v7466_v49  ;;  %v3270_v40 = vpop.f32.mrf.mxu3  ;;  %v7118_v42 = vor.u32 %v9433_v28, %v7115_v29  ;;  %v6219_v19 = vld [vmem:[#allocation5 + $0xe8] sm:$0xf0] }
 0x142   :  { %v9653_v44 = vld [vmem:[#allocation5 + $0xea4] sm:$0xf0]  ;;  %v6475_v24 = vld [vmem:[#allocation5 + $0x2e8] sm:$0xf0] }
 0x143   :  { %v7177_v51 = vld [vmem:[#allocation5 + $0x848] sm:$0xf]  ;;  %v7978_v54 = vor.u32 %v9653_v44, %v7977_v43  ;;  %3511 = vmatpush.bf16.msrb.mxu2 %v7722_v50  ;;  %v6571_v43 = vld [vmem:[#allocation5 + $0x3a8] sm:$0xf0] }
 0x144   :  { %v9453_v52 = vld [vmem:[#allocation5 + $0x864] sm:$0xf0]  ;;  %v9361_v44 = vld [vmem:[#allocation5 + $0x58c] sm:$0xf]  ;;  %v6574_v49 = vor.u32 %v9297_v37, %v6571_v43  ;;  %v3307_v37 = vpop.f32.mrf.mxu2 }
 0x145   :  { %v7433_v53 = vld [vmem:[#allocation5 + $0xa48] sm:$0xf]  ;;  %v7178_v62 = vor.u32 %v9453_v52, %v7177_v51  ;;  %3524 = vmatpush.bf16.msrb.mxu3 %v7978_v54  ;;  %v6830_v50 = vor.u32 %v9361_v44, %v6827_v45  ;;  %v9225_v51 = vld [vmem:[#allocation5 + $0x14c] sm:$0xf]  ;;  %v7086_v54 = vor.u32 %v9425_v46, %v7083_v47 }
 0x146   :  { %v9517_v55 = vld [vmem:[#allocation5 + $0xa64] sm:$0xf0]  ;;  %v6283_v52 = vld [vmem:[#allocation5 + $0x168] sm:$0xf0] }
 0x147   :  { %v7689_v56 = vld [vmem:[#allocation5 + $0xc48] sm:$0xf]  ;;  %v7434_v4 = vor.u32 %v9517_v55, %v7433_v53  ;;  %3486 = vmatpush.bf16.msrb.mxu0 %v7178_v62  ;;  %v9289_v53 = vld [vmem:[#allocation5 + $0x34c] sm:$0xf] }
 0x148   :  { %v9581_v57 = vld [vmem:[#allocation5 + $0xc64] sm:$0xf0]  ;;  %v6539_v55 = vld [vmem:[#allocation5 + $0x368] sm:$0xf0] }
 0x149   :  { %v7945_v59 = vld [vmem:[#allocation5 + $0xe48] sm:$0xf]  ;;  %v7690_v5 = vor.u32 %v9581_v57, %v7689_v56  ;;  %3499 = vmatpush.bf16.msrb.mxu1 %v7434_v4  ;;  %v9353_v56 = vld [vmem:[#allocation5 + $0x54c] sm:$0xf]  ;;  %v6542_v61 = vor.u32 %v9289_v53, %v6539_v55  ;;  %v3320_v45 = vpop.f32.mrf.mxu3 }
 0x14a   :  { %v9645_v60 = vld [vmem:[#allocation5 + $0xe64] sm:$0xf0]  ;;  %v6795_v57 = vld [vmem:[#allocation5 + $0x568] sm:$0xf0] }
 0x14b   :  { %v7145_v63 = vld [vmem:[#allocation5 + $0x808] sm:$0xf]  ;;  %v7946_v11 = vor.u32 %v9645_v60, %v7945_v59  ;;  %3512 = vmatpush.bf16.msrb.mxu2 %v7690_v5  ;;  %v7051_v59 = vld [vmem:[#allocation5 + $0x768] sm:$0xf0]  ;;  %v6286_v60 = vor.u32 %v9225_v51, %v6283_v52  ;;  %v6798_v62 = vor.u32 %v9353_v56, %v6795_v57 }
 0x14c   :  { %v9445_v1 = vld [vmem:[#allocation5 + $0x824] sm:$0xf0]  ;;  %v7054_v4 = vor.u32 %v9417_v58, %v7051_v59  ;;  %v6507_v5 = vld [vmem:[#allocation5 + $0x328] sm:$0xf0] }
 0x14d   :  { %v7401_v6 = vld [vmem:[#allocation5 + $0xa08] sm:$0xf]  ;;  %v7146_v22 = vor.u32 %v9445_v1, %v7145_v63  ;;  %3525 = vmatpush.bf16.msrb.mxu3 %v7946_v11  ;;  %v9217_v63 = vld [vmem:[#allocation5 + $0x10c] sm:$0xf] }
 0x14e   :  { %v9509_v7 = vld [vmem:[#allocation5 + $0xa24] sm:$0xf0]  ;;  %v6251_v1 = vld [vmem:[#allocation5 + $0x128] sm:$0xf0] }
 0x14f   :  { %v7657_v9 = vld [vmem:[#allocation5 + $0xc08] sm:$0xf]  ;;  %v7402_v26 = vor.u32 %v9509_v7, %v7401_v6  ;;  %3487 = vmatpush.bf16.msrb.mxu0 %v7146_v22  ;;  %v9345_v6 = vld [vmem:[#allocation5 + $0x50c] sm:$0xf]  ;;  %v3294_v22 = vpop.f32.mrf.mxu1 }
 0x150   :  { %v9573_v12 = vld [vmem:[#allocation5 + $0xc24] sm:$0xf0]  ;;  %v6763_v7 = vld [vmem:[#allocation5 + $0x528] sm:$0xf0] }
 0x151   :  { %v7913_v13 = vld [vmem:[#allocation5 + $0xe08] sm:$0xf]  ;;  %v7658_v27 = vor.u32 %v9573_v12, %v7657_v9  ;;  %3500 = vmatpush.bf16.msrb.mxu1 %v7402_v26  ;;  %v9409_v9 = vld [vmem:[#allocation5 + $0x70c] sm:$0xf]  ;;  %v6254_v12 = vor.u32 %v9217_v63, %v6251_v1  ;;  %v6766_v15 = vor.u32 %v9345_v6, %v6763_v7 }
 0x152   :  { %v9637_v14 = vld [vmem:[#allocation5 + $0xe24] sm:$0xf0]  ;;  %3488 = vmatmul.bf16.vlgmr.msrb.gmra.mxu0 %v10207_v38  ;;  %v7019_v11 = vld [vmem:[#allocation5 + $0x728] sm:$0xf0] }
 0x153   :  { %v7914_v30 = vor.u32 %v9637_v14, %v7913_v13  ;;  %3513 = vmatpush.bf16.msrb.mxu2 %v7658_v27  ;;  %3532 = vmatpush.bf16.msra.mxu0 %v6350_v31  ;;  %v3281_v13 = vpop.f32.mrf.mxu0  ;;  %v6510_v14 = vor.u32 %v9281_v3, %v6507_v5  ;;  %v7022_v23 = vor.u32 %v9409_v9, %v7019_v11  ;;  %v9337_v25 = vld [vmem:[#allocation5 + $0x4cc] sm:$0xf]  ;;  %v3309_v11 = vpop.f32.mrf.mxu2 }
 0x154   :  { %3501 = vmatmul.bf16.vlgmr.msrb.gmra.mxu1 %v10211_v41  ;;  %v3282_v21 = vadd.f32 %v3281_v13, %v10232_v2  ;;  %v6731_v26 = vld [vmem:[#allocation5 + $0x4e8] sm:$0xf0]  ;;  %v6478_v31 = vor.u32 %v9273_v20, %v6475_v24 }
 0x155   :  { %3526 = vmatpush.bf16.msrb.mxu3 %v7914_v30  ;;  %3545 = vmatpush.bf16.msra.mxu1 %v6606_v32  ;;  %v9401_v27 = vld [vmem:[#allocation5 + $0x6cc] sm:$0xf]  ;;  %v6222_v30 = vor.u32 %v9209_v16, %v6219_v19  ;;  %v6734_v32 = vor.u32 %v9337_v25, %v6731_v26  ;;  %v3322_v16 = vpop.f32.mrf.mxu3 }
 0x156   :  { %3514 = vmatmul.bf16.vlgmr.msrb.gmra.mxu2 %v10205_v35  ;;  %v6987_v28 = vld [vmem:[#allocation5 + $0x6e8] sm:$0xf0]  ;;  %v3295_v29 = vadd.f32 %v3294_v22, %v3282_v21 }
 0x157   :  { %3558 = vmatpush.bf16.msra.mxu2 %v6862_v33  ;;  %3533 = vmatpush.bf16.msra.mxu0 %v6318_v48  ;;  %v9201_v33 = vld [vmem:[#allocation5 + $0x8c] sm:$0xf]  ;;  %v6990_v2 = vor.u32 %v9401_v27, %v6987_v28  ;;  %v3296_v56 = vpop.f32.mrf.mxu1 }
 0x158   :  { %3527 = vmatmul.bf16.vlgmr.msrb.gmra.mxu3 %v10209_v39  ;;  %v6187_v34 = vld [vmem:[#allocation5 + $0xa8] sm:$0xf0]  ;;  %v3308_v44 = vadd.f32 %v3307_v37, %v3295_v29 }
 0x159   :  { %3571 = vmatpush.bf16.msra.mxu3 %v7118_v42  ;;  %3546 = vmatpush.bf16.msra.mxu1 %v6574_v49  ;;  %v9265_v36 = vld [vmem:[#allocation5 + $0x28c] sm:$0xf]  ;;  %v6190_v48 = vor.u32 %v9201_v33, %v6187_v34 }
 0x15a   :  { %v6443_v40 = vld [vmem:[#allocation5 + $0x2a8] sm:$0xf0]  ;;  %v10239_v49 = vadd.f32 %v3320_v45, %v3308_v44 }
 0x15b   :  { %3559 = vmatpush.bf16.msra.mxu2 %v6830_v50  ;;  %3534 = vmatpush.bf16.msra.mxu0 %v6286_v60  ;;  %v9329_v42 = vld [vmem:[#allocation5 + $0x48c] sm:$0xf]  ;;  %v3283_v50 = vpop.f32.mrf.mxu0  ;;  %v6446_v51 = vor.u32 %v9265_v36, %v6443_v40 }
 0x15c   :  { %v6699_v43 = vld [vmem:[#allocation5 + $0x4a8] sm:$0xf0]  ;;  %vm4052_vm0 = vcmp.gt.f32.partialorder %v10239_v49, 0.0 }
 0x15d   :  { %3572 = vmatpush.bf16.msra.mxu3 %v7086_v54  ;;  %3547 = vmatpush.bf16.msra.mxu1 %v6542_v61  ;;  %v9393_v46 = vld [vmem:[#allocation5 + $0x68c] sm:$0xf]  ;;  %v6702_v52 = vor.u32 %v9329_v42, %v6699_v43 }
 0x15e   :  { %v6955_v47 = vld [vmem:[#allocation5 + $0x6a8] sm:$0xf0] }
 0x15f   :  { %3560 = vmatpush.bf16.msra.mxu2 %v6798_v62  ;;  %3535 = vmatpush.bf16.msra.mxu0 %v6254_v12  ;;  %v9193_v53 = vld [vmem:[#allocation5 + $0x4c] sm:$0xf]  ;;  %v6958_v57 = vor.u32 %v9393_v46, %v6955_v47 }
 0x160   :  { %v6155_v54 = vld [vmem:[#allocation5 + $0x68] sm:$0xf0] }
 0x161   :  { %3573 = vmatpush.bf16.msra.mxu3 %v7054_v4  ;;  %3548 = vmatpush.bf16.msra.mxu1 %v6510_v14  ;;  %v9257_v55 = vld [vmem:[#allocation5 + $0x24c] sm:$0xf]  ;;  %v6158_v63 = vor.u32 %v9193_v53, %v6155_v54 }
 0x162   :  { %v6411_v58 = vld [vmem:[#allocation5 + $0x268] sm:$0xf0] }
 0x163   :  { %3561 = vmatpush.bf16.msra.mxu2 %v6766_v15  ;;  %3536 = vmatpush.bf16.msra.mxu0 %v6222_v30  ;;  %v9321_v59 = vld [vmem:[#allocation5 + $0x44c] sm:$0xf]  ;;  %v6414_v4 = vor.u32 %v9257_v55, %v6411_v58 }
 0x164   :  { %v6667_v60 = vld [vmem:[#allocation5 + $0x468] sm:$0xf0] }
 0x165   :  { %3574 = vmatpush.bf16.msra.mxu3 %v7022_v23  ;;  %3549 = vmatpush.bf16.msra.mxu1 %v6478_v31  ;;  %v9385_v61 = vld [vmem:[#allocation5 + $0x64c] sm:$0xf]  ;;  %v6670_v5 = vor.u32 %v9321_v59, %v6667_v60 }
 0x166   :  { %v6923_v62 = vld [vmem:[#allocation5 + $0x668] sm:$0xf0] }
 0x167   :  { %3562 = vmatpush.bf16.msra.mxu2 %v6734_v32  ;;  %3537 = vmatpush.bf16.msra.mxu0 %v6190_v48  ;;  %v9185_v1 = vld [vmem:[#allocation5 + $0xc] sm:$0xf]  ;;  %v6926_v12 = vor.u32 %v9385_v61, %v6923_v62 }
 0x168   :  { %v6123_v3 = vld [vmem:[#allocation5 + $0x28] sm:$0xf0] }
 0x169   :  { %3575 = vmatpush.bf16.msra.mxu3 %v6990_v2  ;;  %3550 = vmatpush.bf16.msra.mxu1 %v6446_v51  ;;  %v9249_v6 = vld [vmem:[#allocation5 + $0x20c] sm:$0xf]  ;;  %v6126_v22 = vor.u32 %v9185_v1, %v6123_v3  ;;  %v645_v3 = vperm.slane %v10229_v8, 1 }
 0x16a   :  { %v6379_v7 = vld [vmem:[#allocation5 + $0x228] sm:$0xf0] }
 0x16b   :  { %3563 = vmatpush.bf16.msra.mxu2 %v6702_v52  ;;  %v9313_v9 = vld [vmem:[#allocation5 + $0x40c] sm:$0xf]  ;;  %3538 = vmatpush.bf16.msra.mxu0 %v6158_v63  ;;  %v6382_v26 = vor.u32 %v9249_v6, %v6379_v7 }
 0x16c   :  { %v6635_v13 = vld [vmem:[#allocation5 + $0x428] sm:$0xf0] }
 0x16d   :  { %3576 = vmatpush.bf16.msra.mxu3 %v6958_v57  ;;  %v9377_v14 = vld [vmem:[#allocation5 + $0x60c] sm:$0xf]  ;;  %3551 = vmatpush.bf16.msra.mxu1 %v6414_v4  ;;  %v6638_v27 = vor.u32 %v9313_v9, %v6635_v13  ;;  %v3333_v13 = vpop.f32.mrf.mxu0 }
 0x16e   :  { %v6891_v15 = vld [vmem:[#allocation5 + $0x628] sm:$0xf0] }
 0x16f   :  { %v9497_v19 = vld [vmem:[#allocation5 + $0x9cc] sm:$0xf]  ;;  %3564 = vmatpush.bf16.msra.mxu2 %v6670_v5  ;;  %v6894_v30 = vor.u32 %v9377_v14, %v6891_v15  ;;  %3539 = vmatpush.bf16.msra.mxu0 %v6126_v22  ;;  %v3346_v22 = vpop.f32.mrf.mxu1 }
 0x170   :  { %v7371_v20 = vld [vmem:[#allocation5 + $0x9e8] sm:$0xf0] }
 0x171   :  { %v9561_v21 = vld [vmem:[#allocation5 + $0xbcc] sm:$0xf]  ;;  %3577 = vmatpush.bf16.msra.mxu3 %v6926_v12  ;;  %v7374_v31 = vor.u32 %v9497_v19, %v7371_v20  ;;  %3552 = vmatpush.bf16.msra.mxu1 %v6382_v26 }
 0x172   :  { %v7627_v23 = vld [vmem:[#allocation5 + $0xbe8] sm:$0xf0]  ;;  %3540 = vmatmul.bf16.vlgmr.msra.gmra.mxu0 %v10196_v10 }
 0x173   :  { %v9625_v24 = vld [vmem:[#allocation5 + $0xdcc] sm:$0xf]  ;;  %v7630_v32 = vor.u32 %v9561_v21, %v7627_v23  ;;  %3565 = vmatpush.bf16.msra.mxu2 %v6638_v27  ;;  %3584 = vmatpush.bf16.msrb.mxu0 %v7374_v31  ;;  %v3334_v21 = vadd.f32 %v3333_v13, %v645_v3 }
 0x174   :  { %v7883_v25 = vld [vmem:[#allocation5 + $0xde8] sm:$0xf0]  ;;  %3553 = vmatmul.bf16.vlgmr.msra.gmra.mxu1 %v10200_v18 }
 0x175   :  { %v9689_v28 = vld [vmem:[#allocation5 + $0xfcc] sm:$0xf]  ;;  %v7886_v33 = vor.u32 %v9625_v24, %v7883_v25  ;;  %3578 = vmatpush.bf16.msra.mxu3 %v6894_v30  ;;  %3597 = vmatpush.bf16.msrb.mxu1 %v7630_v32 }
 0x176   :  { %v8139_v29 = vld [vmem:[#allocation5 + $0xfe8] sm:$0xf0]  ;;  %3566 = vmatmul.bf16.vlgmr.msra.gmra.mxu2 %v10193_v0 }
 0x177   :  { %v9489_v34 = vld [vmem:[#allocation5 + $0x98c] sm:$0xf]  ;;  %v8142_v2 = vor.u32 %v9689_v28, %v8139_v29  ;;  %3610 = vmatpush.bf16.msrb.mxu2 %v7886_v33  ;;  %v3347_v28 = vadd.f32 %v3346_v22, %v3334_v21  ;;  %v6609_v21 = vld [vmem:[#allocation5 + $0x3d0] sm:$0xf] }
 0x178   :  { %v7339_v36 = vld [vmem:[#allocation5 + $0x9a8] sm:$0xf0]  ;;  %3579 = vmatmul.bf16.vlgmr.msra.gmra.mxu3 %v10198_v17 }
 0x179   :  { %v9553_v37 = vld [vmem:[#allocation5 + $0xb8c] sm:$0xf]  ;;  %v7342_v46 = vor.u32 %v9489_v34, %v7339_v36  ;;  %3623 = vmatpush.bf16.msrb.mxu3 %v8142_v2  ;;  %v3359_v36 = vpop.f32.mrf.mxu2 }
 0x17a   :  { %v7595_v40 = vld [vmem:[#allocation5 + $0xba8] sm:$0xf0] }
 0x17b   :  { %v9617_v42 = vld [vmem:[#allocation5 + $0xd8c] sm:$0xf]  ;;  %v7598_v47 = vor.u32 %v9553_v37, %v7595_v40  ;;  %3585 = vmatpush.bf16.msrb.mxu0 %v7342_v46 }
 0x17c   :  { %v7851_v43 = vld [vmem:[#allocation5 + $0xda8] sm:$0xf0] }
 0x17d   :  { %v9681_v44 = vld [vmem:[#allocation5 + $0xf8c] sm:$0xf]  ;;  %v7854_v48 = vor.u32 %v9617_v42, %v7851_v43  ;;  %3598 = vmatpush.bf16.msrb.mxu1 %v7598_v47  ;;  %v3360_v43 = vadd.f32 %v3359_v36, %v3347_v28  ;;  %v9438_v28 = vld [vmem:[#allocation5 + $0x7ec] sm:$0xf0] }
 0x17e   :  { %v8107_v45 = vld [vmem:[#allocation5 + $0xfa8] sm:$0xf0]  ;;  %v6577_v36 = vld [vmem:[#allocation5 + $0x390] sm:$0xf] }
 0x17f   :  { %v9481_v50 = vld [vmem:[#allocation5 + $0x94c] sm:$0xf]  ;;  %v8110_v53 = vor.u32 %v9681_v44, %v8107_v45  ;;  %3611 = vmatpush.bf16.msrb.mxu2 %v7854_v48  ;;  %v3372_v44 = vpop.f32.mrf.mxu3 }
 0x180   :  { %v7307_v51 = vld [vmem:[#allocation5 + $0x968] sm:$0xf0]  ;;  %v10246_v48 = vadd.f32 %v3372_v44, %v3360_v43  ;;  %v7089_v43 = vld [vmem:[#allocation5 + $0x790] sm:$0xf] }
 0x181   :  { %v9545_v52 = vld [vmem:[#allocation5 + $0xb4c] sm:$0xf]  ;;  %v7310_v59 = vor.u32 %v9481_v50, %v7307_v51  ;;  %3624 = vmatpush.bf16.msrb.mxu3 %v8110_v53  ;;  %v3335_v50 = vpop.f32.mrf.mxu0  ;;  %v9430_v44 = vld [vmem:[#allocation5 + $0x7ac] sm:$0xf0] }
 0x182   :  { %v7563_v54 = vld [vmem:[#allocation5 + $0xb68] sm:$0xf0]  ;;  %v6289_v50 = vld [vmem:[#allocation5 + $0x150] sm:$0xf] }
 0x183   :  { %v9609_v55 = vld [vmem:[#allocation5 + $0xd4c] sm:$0xf]  ;;  %v7566_v61 = vor.u32 %v9545_v52, %v7563_v54  ;;  %3586 = vmatpush.bf16.msrb.mxu0 %v7310_v59 }
 0x184   :  { %v7819_v56 = vld [vmem:[#allocation5 + $0xd68] sm:$0xf0] }
 0x185   :  { %v9673_v57 = vld [vmem:[#allocation5 + $0xf4c] sm:$0xf]  ;;  %v7822_v62 = vor.u32 %v9609_v55, %v7819_v56  ;;  %3599 = vmatpush.bf16.msrb.mxu1 %v7566_v61  ;;  %v3348_v56 = vpop.f32.mrf.mxu1 }
 0x186   :  { %v8075_v58 = vld [vmem:[#allocation5 + $0xf68] sm:$0xf0]  ;;  %v9358_v56 = vld [vmem:[#allocation5 + $0x56c] sm:$0xf0] }
 0x187   :  { %v9473_v60 = vld [vmem:[#allocation5 + $0x90c] sm:$0xf]  ;;  %v8078_v4 = vor.u32 %v9673_v57, %v8075_v58  ;;  %3612 = vmatpush.bf16.msrb.mxu2 %v7822_v62 }
 0x188   :  { %v7275_v63 = vld [vmem:[#allocation5 + $0x928] sm:$0xf0] }
 0x189   :  { %v9537_v1 = vld [vmem:[#allocation5 + $0xb0c] sm:$0xf]  ;;  %v7278_v12 = vor.u32 %v9473_v60, %v7275_v63  ;;  %3625 = vmatpush.bf16.msrb.mxu3 %v8078_v4 }
 0x18a   :  { %v7531_v5 = vld [vmem:[#allocation5 + $0xb28] sm:$0xf0] }
 0x18b   :  { %v9601_v6 = vld [vmem:[#allocation5 + $0xd0c] sm:$0xf]  ;;  %v7534_v14 = vor.u32 %v9537_v1, %v7531_v5  ;;  %3587 = vmatpush.bf16.msrb.mxu0 %v7278_v12 }
 0x18c   :  { %v7787_v7 = vld [vmem:[#allocation5 + $0xd28] sm:$0xf0] }
 0x18d   :  { %v9665_v9 = vld [vmem:[#allocation5 + $0xf0c] sm:$0xf]  ;;  %v7790_v15 = vor.u32 %v9601_v6, %v7787_v7  ;;  %3600 = vmatpush.bf16.msrb.mxu1 %v7534_v14 }
 0x18e   :  { %v8043_v11 = vld [vmem:[#allocation5 + $0xf28] sm:$0xf0] }
 0x18f   :  { %v9465_v16 = vld [vmem:[#allocation5 + $0x8cc] sm:$0xf]  ;;  %v8046_v8 = vor.u32 %v9665_v9, %v8043_v11  ;;  %3613 = vmatpush.bf16.msrb.mxu2 %v7790_v15  ;;  %v3361_v11 = vpop.f32.mrf.mxu2 }
 0x190   :  { %v7243_v19 = vld [vmem:[#allocation5 + $0x8e8] sm:$0xf0] }
 0x191   :  { %v9529_v20 = vld [vmem:[#allocation5 + $0xacc] sm:$0xf]  ;;  %v7246_v29 = vor.u32 %v9465_v16, %v7243_v19  ;;  %3626 = vmatpush.bf16.msrb.mxu3 %v8046_v8  ;;  %v3374_v16 = vpop.f32.mrf.mxu3  ;;  %v6353_v19 = vld [vmem:[#allocation5 + $0x1d0] sm:$0xf] }
 0x192   :  { %v7499_v23 = vld [vmem:[#allocation5 + $0xae8] sm:$0xf0]  ;;  %v9310_v8 = vld [vmem:[#allocation5 + $0x3ec] sm:$0xf0] }
 0x193   :  { %v9593_v24 = vld [vmem:[#allocation5 + $0xccc] sm:$0xf]  ;;  %v7502_v30 = vor.u32 %v9529_v20, %v7499_v23  ;;  %3588 = vmatpush.bf16.msrb.mxu0 %v7246_v29  ;;  %v9246_v20 = vld [vmem:[#allocation5 + $0x1ec] sm:$0xf0] }
 0x194   :  { %v7755_v25 = vld [vmem:[#allocation5 + $0xce8] sm:$0xf0]  ;;  %v6865_v23 = vld [vmem:[#allocation5 + $0x5d0] sm:$0xf] }
 0x195   :  { %v9657_v26 = vld [vmem:[#allocation5 + $0xecc] sm:$0xf]  ;;  %v7758_v31 = vor.u32 %v9593_v24, %v7755_v25  ;;  %3601 = vmatpush.bf16.msrb.mxu1 %v7502_v30  ;;  %v9374_v24 = vld [vmem:[#allocation5 + $0x5ec] sm:$0xf0]  ;;  %v6354_v30 = vor.u32 %v9246_v20, %v6353_v19 }
 0x196   :  { %v8011_v27 = vld [vmem:[#allocation5 + $0xee8] sm:$0xf0]  ;;  %v9214_v16 = vld [vmem:[#allocation5 + $0xec] sm:$0xf0] }
 0x197   :  { %v9457_v32 = vld [vmem:[#allocation5 + $0x88c] sm:$0xf]  ;;  %v8014_v37 = vor.u32 %v9657_v26, %v8011_v27  ;;  %3614 = vmatpush.bf16.msrb.mxu2 %v7758_v31  ;;  %v7121_v27 = vld [vmem:[#allocation5 + $0x7d0] sm:$0xf]  ;;  %v6610_v31 = vor.u32 %v9310_v8, %v6609_v21  ;;  %v3398_v21 = vpop.f32.mrf.mxu1 }
 0x198   :  { %v7211_v33 = vld [vmem:[#allocation5 + $0x8a8] sm:$0xf0]  ;;  %v6481_v19 = vld [vmem:[#allocation5 + $0x2d0] sm:$0xf] }
 0x199   :  { %v9521_v34 = vld [vmem:[#allocation5 + $0xa8c] sm:$0xf]  ;;  %v7214_v47 = vor.u32 %v9457_v32, %v7211_v33  ;;  %3627 = vmatpush.bf16.msrb.mxu3 %v8014_v37  ;;  %v6866_v32 = vor.u32 %v9374_v24, %v6865_v23  ;;  %v6321_v33 = vld [vmem:[#allocation5 + $0x190] sm:$0xf]  ;;  %v7122_v37 = vor.u32 %v9438_v28, %v7121_v27 }
 0x19a   :  { %v7467_v2 = vld [vmem:[#allocation5 + $0xaa8] sm:$0xf0]  ;;  %v9278_v8 = vld [vmem:[#allocation5 + $0x2ec] sm:$0xf0] }
 0x19b   :  { %v9585_v40 = vld [vmem:[#allocation5 + $0xc8c] sm:$0xf]  ;;  %v7470_v51 = vor.u32 %v9521_v34, %v7467_v2  ;;  %3589 = vmatpush.bf16.msrb.mxu0 %v7214_v47  ;;  %v9238_v34 = vld [vmem:[#allocation5 + $0x1ac] sm:$0xf0] }
 0x19c   :  { %v7723_v42 = vld [vmem:[#allocation5 + $0xca8] sm:$0xf0]  ;;  %v9302_v2 = vld [vmem:[#allocation5 + $0x3ac] sm:$0xf0] }
 0x19d   :  { %v9649_v45 = vld [vmem:[#allocation5 + $0xe8c] sm:$0xf]  ;;  %v7726_v52 = vor.u32 %v9585_v40, %v7723_v42  ;;  %3602 = vmatpush.bf16.msrb.mxu1 %v7470_v51  ;;  %v6833_v40 = vld [vmem:[#allocation5 + $0x590] sm:$0xf] }
 0x19e   :  { %v7979_v46 = vld [vmem:[#allocation5 + $0xea8] sm:$0xf0]  ;;  %v9366_v42 = vld [vmem:[#allocation5 + $0x5ac] sm:$0xf0] }
 0x19f   :  { %v9449_v53 = vld [vmem:[#allocation5 + $0x84c] sm:$0xf]  ;;  %v7982_v57 = vor.u32 %v9649_v45, %v7979_v46  ;;  %3615 = vmatpush.bf16.msrb.mxu2 %v7726_v52  ;;  %v6322_v45 = vor.u32 %v9238_v34, %v6321_v33  ;;  %v6578_v46 = vor.u32 %v9302_v2, %v6577_v36  ;;  %v6834_v47 = vor.u32 %v9366_v42, %v6833_v40  ;;  %v9230_v51 = vld [vmem:[#allocation5 + $0x16c] sm:$0xf0]  ;;  %v3411_v34 = vpop.f32.mrf.mxu2  ;;  %v3424_v42 = vpop.f32.mrf.mxu3 }
 0x1a0   :  { %v7179_v54 = vld [vmem:[#allocation5 + $0x868] sm:$0xf0]  ;;  %v6545_v52 = vld [vmem:[#allocation5 + $0x350] sm:$0xf] }
 0x1a1   :  { %v9513_v55 = vld [vmem:[#allocation5 + $0xa4c] sm:$0xf]  ;;  %v7182_v63 = vor.u32 %v9449_v53, %v7179_v54  ;;  %3628 = vmatpush.bf16.msrb.mxu3 %v7982_v57  ;;  %v7090_v53 = vor.u32 %v9430_v44, %v7089_v43  ;;  %v9294_v54 = vld [vmem:[#allocation5 + $0x36c] sm:$0xf0] }
 0x1a2   :  { %v7435_v58 = vld [vmem:[#allocation5 + $0xa68] sm:$0xf0]  ;;  %v7057_v57 = vld [vmem:[#allocation5 + $0x750] sm:$0xf] }
 0x1a3   :  { %v9577_v59 = vld [vmem:[#allocation5 + $0xc4c] sm:$0xf]  ;;  %v7438_v4 = vor.u32 %v9513_v55, %v7435_v58  ;;  %3590 = vmatpush.bf16.msrb.mxu0 %v7182_v63  ;;  %v6801_v55 = vld [vmem:[#allocation5 + $0x550] sm:$0xf] }
 0x1a4   :  { %v7691_v60 = vld [vmem:[#allocation5 + $0xc68] sm:$0xf0]  ;;  %v9422_v58 = vld [vmem:[#allocation5 + $0x76c] sm:$0xf0] }
 0x1a5   :  { %v9641_v61 = vld [vmem:[#allocation5 + $0xe4c] sm:$0xf]  ;;  %v7694_v5 = vor.u32 %v9577_v59, %v7691_v60  ;;  %3603 = vmatpush.bf16.msrb.mxu1 %v7438_v4  ;;  %v6290_v59 = vor.u32 %v9230_v51, %v6289_v50  ;;  %v6546_v60 = vor.u32 %v9294_v54, %v6545_v52  ;;  %v9222_v63 = vld [vmem:[#allocation5 + $0x12c] sm:$0xf0] }
 0x1a6   :  { %v7947_v62 = vld [vmem:[#allocation5 + $0xe68] sm:$0xf0]  ;;  %v9286_v4 = vld [vmem:[#allocation5 + $0x32c] sm:$0xf0] }
 0x1a7   :  { %v9441_v1 = vld [vmem:[#allocation5 + $0x80c] sm:$0xf]  ;;  %v7950_v12 = vor.u32 %v9641_v61, %v7947_v62  ;;  %3616 = vmatpush.bf16.msrb.mxu2 %v7694_v5  ;;  %v6802_v61 = vor.u32 %v9358_v56, %v6801_v55  ;;  %v6257_v62 = vld [vmem:[#allocation5 + $0x110] sm:$0xf]  ;;  %v3400_v55 = vpop.f32.mrf.mxu1 }
 0x1a8   :  { %v7147_v3 = vld [vmem:[#allocation5 + $0x828] sm:$0xf0]  ;;  %v6769_v5 = vld [vmem:[#allocation5 + $0x510] sm:$0xf]  ;;  %v6258_v11 = vor.u32 %v9222_v63, %v6257_v62 }
 0x1a9   :  { %v9505_v6 = vld [vmem:[#allocation5 + $0xa0c] sm:$0xf]  ;;  %v7150_v22 = vor.u32 %v9441_v1, %v7147_v3  ;;  %3629 = vmatpush.bf16.msrb.mxu3 %v7950_v12  ;;  %v6513_v1 = vld [vmem:[#allocation5 + $0x310] sm:$0xf]  ;;  %v7058_v3 = vor.u32 %v9422_v58, %v7057_v57  ;;  %v3385_v12 = vpop.f32.mrf.mxu0 }
 0x1aa   :  { %v7403_v7 = vld [vmem:[#allocation5 + $0xa28] sm:$0xf0]  ;;  %v3386_v20 = vadd.f32 %v3385_v12, %v10246_v48  ;;  %v6737_v23 = vld [vmem:[#allocation5 + $0x4d0] sm:$0xf] }
 0x1ab   :  { %v9569_v9 = vld [vmem:[#allocation5 + $0xc0c] sm:$0xf]  ;;  %v7406_v25 = vor.u32 %v9505_v6, %v7403_v7  ;;  %3591 = vmatpush.bf16.msrb.mxu0 %v7150_v22  ;;  %v9350_v6 = vld [vmem:[#allocation5 + $0x52c] sm:$0xf0] }
 0x1ac   :  { %v7659_v13 = vld [vmem:[#allocation5 + $0xc28] sm:$0xf0]  ;;  %v7025_v7 = vld [vmem:[#allocation5 + $0x710] sm:$0xf]  ;;  %v3399_v27 = vadd.f32 %v3398_v21, %v3386_v20 }
 0x1ad   :  { %v9633_v14 = vld [vmem:[#allocation5 + $0xe0c] sm:$0xf]  ;;  %v7662_v26 = vor.u32 %v9569_v9, %v7659_v13  ;;  %3604 = vmatpush.bf16.msrb.mxu1 %v7406_v25  ;;  %v9414_v9 = vld [vmem:[#allocation5 + $0x72c] sm:$0xf0]  ;;  %v6514_v13 = vor.u32 %v9286_v4, %v6513_v1 }
 0x1ae   :  { %v7915_v15 = vld [vmem:[#allocation5 + $0xe28] sm:$0xf0]  ;;  %3592 = vmatmul.bf16.vlgmr.msrb.gmra.mxu0 %v10207_v38  ;;  %v7026_v22 = vor.u32 %v9414_v9, %v7025_v7  ;;  %v9342_v24 = vld [vmem:[#allocation5 + $0x4ec] sm:$0xf0]  ;;  %v3412_v40 = vadd.f32 %v3411_v34, %v3399_v27  ;;  %v3413_v9 = vpop.f32.mrf.mxu2 }
 0x1af   :  { %v7918_v29 = vor.u32 %v9633_v14, %v7915_v15  ;;  %3617 = vmatpush.bf16.msrb.mxu2 %v7662_v26  ;;  %3636 = vmatpush.bf16.msra.mxu0 %v6354_v30  ;;  %v6770_v14 = vor.u32 %v9350_v6, %v6769_v5  ;;  %v6225_v15 = vld [vmem:[#allocation5 + $0xd0] sm:$0xf]  ;;  %v6738_v30 = vor.u32 %v9342_v24, %v6737_v23 }
 0x1b0   :  { %3605 = vmatmul.bf16.vlgmr.msrb.gmra.mxu1 %v10211_v41  ;;  %v6993_v25 = vld [vmem:[#allocation5 + $0x6d0] sm:$0xf]  ;;  %v6226_v28 = vor.u32 %v9214_v16, %v6225_v15  ;;  %v3426_v15 = vpop.f32.mrf.mxu3 }
 0x1b1   :  { %3630 = vmatpush.bf16.msrb.mxu3 %v7918_v29  ;;  %3649 = vmatpush.bf16.msra.mxu1 %v6610_v31  ;;  %v9406_v26 = vld [vmem:[#allocation5 + $0x6ec] sm:$0xf0]  ;;  %v6482_v29 = vor.u32 %v9278_v8, %v6481_v19 }
 0x1b2   :  { %3618 = vmatmul.bf16.vlgmr.msrb.gmra.mxu2 %v10205_v35  ;;  %v6193_v31 = vld [vmem:[#allocation5 + $0x90] sm:$0xf]  ;;  %v6994_v48 = vor.u32 %v9406_v26, %v6993_v25 }
 0x1b3   :  { %3662 = vmatpush.bf16.msra.mxu2 %v6866_v32  ;;  %3637 = vmatpush.bf16.msra.mxu0 %v6322_v45  ;;  %v9206_v32 = vld [vmem:[#allocation5 + $0xac] sm:$0xf0] }
 0x1b4   :  { %3631 = vmatmul.bf16.vlgmr.msrb.gmra.mxu3 %v10209_v39  ;;  %v6449_v33 = vld [vmem:[#allocation5 + $0x290] sm:$0xf]  ;;  %v6194_v45 = vor.u32 %v9206_v32, %v6193_v31 }
 0x1b5   :  { %3675 = vmatpush.bf16.msra.mxu3 %v7122_v37  ;;  %3650 = vmatpush.bf16.msra.mxu1 %v6578_v46  ;;  %v9270_v36 = vld [vmem:[#allocation5 + $0x2ac] sm:$0xf0]  ;;  %v10253_v46 = vadd.f32 %v3424_v42, %v3412_v40 }
 0x1b6   :  { %v6705_v37 = vld [vmem:[#allocation5 + $0x490] sm:$0xf]  ;;  %v6450_v50 = vor.u32 %v9270_v36, %v6449_v33 }
 0x1b7   :  { %3663 = vmatpush.bf16.msra.mxu2 %v6834_v47  ;;  %3638 = vmatpush.bf16.msra.mxu0 %v6290_v59  ;;  %v9334_v2 = vld [vmem:[#allocation5 + $0x4ac] sm:$0xf0]  ;;  %v3387_v47 = vpop.f32.mrf.mxu0  ;;  %vm4053_vm1 = vcmp.gt.f32.partialorder %v10253_v46, 0.0 }
 0x1b8   :  { %v6961_v43 = vld [vmem:[#allocation5 + $0x690] sm:$0xf]  ;;  %v6706_v51 = vor.u32 %v9334_v2, %v6705_v37 }
 0x1b9   :  { %3676 = vmatpush.bf16.msra.mxu3 %v7090_v53  ;;  %3651 = vmatpush.bf16.msra.mxu1 %v6546_v60  ;;  %v9398_v44 = vld [vmem:[#allocation5 + $0x6ac] sm:$0xf0] }
 0x1ba   :  { %v6161_v52 = vld [vmem:[#allocation5 + $0x50] sm:$0xf]  ;;  %v6962_v56 = vor.u32 %v9398_v44, %v6961_v43 }
 0x1bb   :  { %3664 = vmatpush.bf16.msra.mxu2 %v6802_v61  ;;  %3639 = vmatpush.bf16.msra.mxu0 %v6258_v11  ;;  %v9198_v53 = vld [vmem:[#allocation5 + $0x6c] sm:$0xf0] }
 0x1bc   :  { %v6417_v54 = vld [vmem:[#allocation5 + $0x250] sm:$0xf]  ;;  %v6162_v62 = vor.u32 %v9198_v53, %v6161_v52 }
 0x1bd   :  { %3677 = vmatpush.bf16.msra.mxu3 %v7058_v3  ;;  %3652 = vmatpush.bf16.msra.mxu1 %v6514_v13  ;;  %v9262_v57 = vld [vmem:[#allocation5 + $0x26c] sm:$0xf0] }
 0x1be   :  { %v6673_v58 = vld [vmem:[#allocation5 + $0x450] sm:$0xf]  ;;  %v6418_v3 = vor.u32 %v9262_v57, %v6417_v54 }
 0x1bf   :  { %3665 = vmatpush.bf16.msra.mxu2 %v6770_v14  ;;  %3640 = vmatpush.bf16.msra.mxu0 %v6226_v28  ;;  %v9326_v59 = vld [vmem:[#allocation5 + $0x46c] sm:$0xf0] }
 0x1c0   :  { %v6929_v60 = vld [vmem:[#allocation5 + $0x650] sm:$0xf]  ;;  %v6674_v4 = vor.u32 %v9326_v59, %v6673_v58 }
 0x1c1   :  { %3678 = vmatpush.bf16.msra.mxu3 %v7026_v22  ;;  %3653 = vmatpush.bf16.msra.mxu1 %v6482_v29  ;;  %v9390_v61 = vld [vmem:[#allocation5 + $0x66c] sm:$0xf0] }
 0x1c2   :  { %v6129_v63 = vld [vmem:[#allocation5 + $0x10] sm:$0xf]  ;;  %v6930_v11 = vor.u32 %v9390_v61, %v6929_v60 }
 0x1c3   :  { %3666 = vmatpush.bf16.msra.mxu2 %v6738_v30  ;;  %3641 = vmatpush.bf16.msra.mxu0 %v6194_v45  ;;  %v9190_v1 = vld [vmem:[#allocation5 + $0x2c] sm:$0xf0] }
 0x1c4   :  { %v6385_v5 = vld [vmem:[#allocation5 + $0x210] sm:$0xf]  ;;  %v6130_v21 = vor.u32 %v9190_v1, %v6129_v63  ;;  %v10259_v1 = vld [vmem:[#allocation7] sm:$0xff] }
 0x1c5   :  { %3679 = vmatpush.bf16.msra.mxu3 %v6994_v48  ;;  %3654 = vmatpush.bf16.msra.mxu1 %v6450_v50  ;;  %v9254_v6 = vld [vmem:[#allocation5 + $0x22c] sm:$0xf0] }
 0x1c6   :  { %v6641_v7 = vld [vmem:[#allocation5 + $0x410] sm:$0xf]  ;;  %v6386_v24 = vor.u32 %v9254_v6, %v6385_v5 }
 0x1c7   :  { %3667 = vmatpush.bf16.msra.mxu2 %v6706_v51  ;;  %v9318_v12 = vld [vmem:[#allocation5 + $0x42c] sm:$0xf0]  ;;  %3642 = vmatpush.bf16.msra.mxu0 %v6162_v62 }
 0x1c8   :  { %v6897_v13 = vld [vmem:[#allocation5 + $0x610] sm:$0xf]  ;;  %v6642_v25 = vor.u32 %v9318_v12, %v6641_v7 }
 0x1c9   :  { %3680 = vmatpush.bf16.msra.mxu3 %v6962_v56  ;;  %v9382_v14 = vld [vmem:[#allocation5 + $0x62c] sm:$0xf0]  ;;  %3655 = vmatpush.bf16.msra.mxu1 %v6418_v3  ;;  %v646_v3 = vperm.slane %v10259_v1, 2 }
 0x1ca   :  { %v7377_v16 = vld [vmem:[#allocation5 + $0x9d0] sm:$0xf]  ;;  %v6898_v28 = vor.u32 %v9382_v14, %v6897_v13  ;;  %v3437_v13 = vpop.f32.mrf.mxu0 }
 0x1cb   :  { %v9502_v19 = vld [vmem:[#allocation5 + $0x9ec] sm:$0xf0]  ;;  %3668 = vmatpush.bf16.msra.mxu2 %v6674_v4  ;;  %3643 = vmatpush.bf16.msra.mxu0 %v6130_v21  ;;  %v3438_v21 = vadd.f32 %v3437_v13, %v646_v3 }
 0x1cc   :  { %v7633_v20 = vld [vmem:[#allocation5 + $0xbd0] sm:$0xf]  ;;  %v7378_v29 = vor.u32 %v9502_v19, %v7377_v16 }
 0x1cd   :  { %v9566_v22 = vld [vmem:[#allocation5 + $0xbec] sm:$0xf0]  ;;  %3681 = vmatpush.bf16.msra.mxu3 %v6930_v11  ;;  %3656 = vmatpush.bf16.msra.mxu1 %v6386_v24 }
 0x1ce   :  { %v7889_v8 = vld [vmem:[#allocation5 + $0xdd0] sm:$0xf]  ;;  %v7634_v30 = vor.u32 %v9566_v22, %v7633_v20  ;;  %3644 = vmatmul.bf16.vlgmr.msra.gmra.mxu0 %v10196_v10  ;;  %v3450_v22 = vpop.f32.mrf.mxu1 }
 0x1cf   :  { %v9630_v23 = vld [vmem:[#allocation5 + $0xdec] sm:$0xf0]  ;;  %3669 = vmatpush.bf16.msra.mxu2 %v6642_v25  ;;  %3688 = vmatpush.bf16.msrb.mxu0 %v7378_v29 }
 0x1d0   :  { %v8145_v26 = vld [vmem:[#allocation5 + $0xfd0] sm:$0xf]  ;;  %v7890_v31 = vor.u32 %v9630_v23, %v7889_v8  ;;  %3657 = vmatmul.bf16.vlgmr.msra.gmra.mxu1 %v10200_v18 }
 0x1d1   :  { %v9694_v27 = vld [vmem:[#allocation5 + $0xfec] sm:$0xf0]  ;;  %3682 = vmatpush.bf16.msra.mxu3 %v6898_v28  ;;  %3701 = vmatpush.bf16.msrb.mxu1 %v7634_v30  ;;  %v3451_v28 = vadd.f32 %v3450_v22, %v3438_v21  ;;  %v9242_v21 = vld [vmem:[#allocation5 + $0x1d4] sm:$0xf] }
 0x1d2   :  { %v7345_v32 = vld [vmem:[#allocation5 + $0x990] sm:$0xf]  ;;  %v8146_v48 = vor.u32 %v9694_v27, %v8145_v26  ;;  %3670 = vmatmul.bf16.vlgmr.msra.gmra.mxu2 %v10193_v0  ;;  %v6355_v22 = vld [vmem:[#allocation5 + $0x1f0] sm:$0xf0] }
 0x1d3   :  { %v9494_v33 = vld [vmem:[#allocation5 + $0x9ac] sm:$0xf0]  ;;  %3714 = vmatpush.bf16.msrb.mxu2 %v7890_v31 }
 0x1d4   :  { %v7601_v34 = vld [vmem:[#allocation5 + $0xb90] sm:$0xf]  ;;  %v7346_v43 = vor.u32 %v9494_v33, %v7345_v32  ;;  %3683 = vmatmul.bf16.vlgmr.msra.gmra.mxu3 %v10198_v17 }
 0x1d5   :  { %v9558_v36 = vld [vmem:[#allocation5 + $0xbac] sm:$0xf0]  ;;  %3727 = vmatpush.bf16.msrb.mxu3 %v8146_v48  ;;  %v3463_v48 = vpop.f32.mrf.mxu2 }
 0x1d6   :  { %v7857_v37 = vld [vmem:[#allocation5 + $0xd90] sm:$0xf]  ;;  %v7602_v44 = vor.u32 %v9558_v36, %v7601_v34  ;;  %3689 = vmatpush.bf16.msrb.mxu0 %v7346_v43  ;;  %v3476_v43 = vpop.f32.mrf.mxu3 }
 0x1d7   :  { %v9622_v2 = vld [vmem:[#allocation5 + $0xdac] sm:$0xf0] }
 0x1d8   :  { %v8113_v40 = vld [vmem:[#allocation5 + $0xf90] sm:$0xf]  ;;  %v7858_v45 = vor.u32 %v9622_v2, %v7857_v37  ;;  %3702 = vmatpush.bf16.msrb.mxu1 %v7602_v44 }
 0x1d9   :  { %v9686_v42 = vld [vmem:[#allocation5 + $0xfac] sm:$0xf0] }
 0x1da   :  { %v7313_v47 = vld [vmem:[#allocation5 + $0x950] sm:$0xf]  ;;  %v8114_v52 = vor.u32 %v9686_v42, %v8113_v40  ;;  %3715 = vmatpush.bf16.msrb.mxu2 %v7858_v45  ;;  %v3464_v42 = vadd.f32 %v3463_v48, %v3451_v28  ;;  %v9234_v48 = vld [vmem:[#allocation5 + $0x194] sm:$0xf] }
 0x1db   :  { %v9486_v50 = vld [vmem:[#allocation5 + $0x96c] sm:$0xf0] }
 0x1dc   :  { %v7569_v51 = vld [vmem:[#allocation5 + $0xb50] sm:$0xf]  ;;  %v7314_v58 = vor.u32 %v9486_v50, %v7313_v47  ;;  %3728 = vmatpush.bf16.msrb.mxu3 %v8114_v52  ;;  %v10262_v50 = vadd.f32 %v3476_v43, %v3464_v42  ;;  %v9362_v42 = vld [vmem:[#allocation5 + $0x594] sm:$0xf] }
 0x1dd   :  { %v9550_v53 = vld [vmem:[#allocation5 + $0xb6c] sm:$0xf0]  ;;  %v3465_v13 = vpop.f32.mrf.mxu2  ;;  %v6835_v43 = vld [vmem:[#allocation5 + $0x5b0] sm:$0xf0] }
 0x1de   :  { %v7825_v54 = vld [vmem:[#allocation5 + $0xd50] sm:$0xf]  ;;  %v7570_v60 = vor.u32 %v9550_v53, %v7569_v51  ;;  %3690 = vmatpush.bf16.msrb.mxu0 %v7314_v58  ;;  %v3439_v51 = vpop.f32.mrf.mxu0  ;;  %v9410_v13 = vld [vmem:[#allocation5 + $0x714] sm:$0xf] }
 0x1df   :  { %v9614_v55 = vld [vmem:[#allocation5 + $0xd6c] sm:$0xf0] }
 0x1e0   :  { %v8081_v56 = vld [vmem:[#allocation5 + $0xf50] sm:$0xf]  ;;  %v7826_v61 = vor.u32 %v9614_v55, %v7825_v54  ;;  %3703 = vmatpush.bf16.msrb.mxu1 %v7570_v60 }
 0x1e1   :  { %v9678_v57 = vld [vmem:[#allocation5 + $0xf6c] sm:$0xf0] }
 0x1e2   :  { %v7281_v59 = vld [vmem:[#allocation5 + $0x910] sm:$0xf]  ;;  %v8082_v4 = vor.u32 %v9678_v57, %v8081_v56  ;;  %3716 = vmatpush.bf16.msrb.mxu2 %v7826_v61  ;;  %v3452_v57 = vpop.f32.mrf.mxu1 }
 0x1e3   :  { %v9478_v62 = vld [vmem:[#allocation5 + $0x92c] sm:$0xf0]  ;;  %v6547_v57 = vld [vmem:[#allocation5 + $0x370] sm:$0xf0] }
 0x1e4   :  { %v7537_v63 = vld [vmem:[#allocation5 + $0xb10] sm:$0xf]  ;;  %v7282_v12 = vor.u32 %v9478_v62, %v7281_v59  ;;  %3729 = vmatpush.bf16.msrb.mxu3 %v8082_v4 }
 0x1e5   :  { %v9542_v5 = vld [vmem:[#allocation5 + $0xb2c] sm:$0xf0] }
 0x1e6   :  { %v7793_v6 = vld [vmem:[#allocation5 + $0xd10] sm:$0xf]  ;;  %v7538_v14 = vor.u32 %v9542_v5, %v7537_v63  ;;  %3691 = vmatpush.bf16.msrb.mxu0 %v7282_v12 }
 0x1e7   :  { %v9606_v7 = vld [vmem:[#allocation5 + $0xd2c] sm:$0xf0] }
 0x1e8   :  { %v8049_v9 = vld [vmem:[#allocation5 + $0xf10] sm:$0xf]  ;;  %v7794_v15 = vor.u32 %v9606_v7, %v7793_v6  ;;  %3704 = vmatpush.bf16.msrb.mxu1 %v7538_v14 }
 0x1e9   :  { %v9670_v11 = vld [vmem:[#allocation5 + $0xf2c] sm:$0xf0] }
 0x1ea   :  { %v7249_v16 = vld [vmem:[#allocation5 + $0x8d0] sm:$0xf]  ;;  %v8050_v8 = vor.u32 %v9670_v11, %v8049_v9  ;;  %3717 = vmatpush.bf16.msrb.mxu2 %v7794_v15 }
 0x1eb   :  { %v9470_v19 = vld [vmem:[#allocation5 + $0x8ec] sm:$0xf0] }
 0x1ec   :  { %v7505_v20 = vld [vmem:[#allocation5 + $0xad0] sm:$0xf]  ;;  %v7250_v29 = vor.u32 %v9470_v19, %v7249_v16  ;;  %3730 = vmatpush.bf16.msrb.mxu3 %v8050_v8  ;;  %v9306_v8 = vld [vmem:[#allocation5 + $0x3d4] sm:$0xf] }
 0x1ed   :  { %v9534_v23 = vld [vmem:[#allocation5 + $0xaec] sm:$0xf0] }
 0x1ee   :  { %v7761_v24 = vld [vmem:[#allocation5 + $0xcd0] sm:$0xf]  ;;  %v7506_v30 = vor.u32 %v9534_v23, %v7505_v20  ;;  %3692 = vmatpush.bf16.msrb.mxu0 %v7250_v29  ;;  %v3478_v20 = vpop.f32.mrf.mxu3  ;;  %v9434_v29 = vld [vmem:[#allocation5 + $0x7d4] sm:$0xf] }
 0x1ef   :  { %v9598_v25 = vld [vmem:[#allocation5 + $0xcec] sm:$0xf0] }
 0x1f0   :  { %v8017_v26 = vld [vmem:[#allocation5 + $0xed0] sm:$0xf]  ;;  %v7762_v31 = vor.u32 %v9598_v25, %v7761_v24  ;;  %3705 = vmatpush.bf16.msrb.mxu1 %v7506_v30  ;;  %v6611_v24 = vld [vmem:[#allocation5 + $0x3f0] sm:$0xf0] }
 0x1f1   :  { %v9662_v27 = vld [vmem:[#allocation5 + $0xeec] sm:$0xf0]  ;;  %v9370_v25 = vld [vmem:[#allocation5 + $0x5d4] sm:$0xf] }
 0x1f2   :  { %v7217_v32 = vld [vmem:[#allocation5 + $0x890] sm:$0xf]  ;;  %v8018_v36 = vor.u32 %v9662_v27, %v8017_v26  ;;  %3718 = vmatpush.bf16.msrb.mxu2 %v7762_v31  ;;  %v6867_v26 = vld [vmem:[#allocation5 + $0x5f0] sm:$0xf0] }
 0x1f3   :  { %v9462_v33 = vld [vmem:[#allocation5 + $0x8ac] sm:$0xf0]  ;;  %v7123_v30 = vld [vmem:[#allocation5 + $0x7f0] sm:$0xf0] }
 0x1f4   :  { %v7473_v34 = vld [vmem:[#allocation5 + $0xa90] sm:$0xf]  ;;  %v7218_v47 = vor.u32 %v9462_v33, %v7217_v32  ;;  %3731 = vmatpush.bf16.msrb.mxu3 %v8018_v36  ;;  %v6358_v32 = vor.u32 %v9242_v21, %v6355_v22  ;;  %v6614_v33 = vor.u32 %v9306_v8, %v6611_v24  ;;  %v6323_v36 = vld [vmem:[#allocation5 + $0x1b0] sm:$0xf0]  ;;  %v3502_v24 = vpop.f32.mrf.mxu1 }
 0x1f5   :  { %v9526_v37 = vld [vmem:[#allocation5 + $0xaac] sm:$0xf0]  ;;  %v9210_v21 = vld [vmem:[#allocation5 + $0xd4] sm:$0xf] }
 0x1f6   :  { %v7729_v2 = vld [vmem:[#allocation5 + $0xc90] sm:$0xf]  ;;  %v7474_v52 = vor.u32 %v9526_v37, %v7473_v34  ;;  %3693 = vmatpush.bf16.msrb.mxu0 %v7218_v47  ;;  %v6870_v34 = vor.u32 %v9370_v25, %v6867_v26  ;;  %v9298_v37 = vld [vmem:[#allocation5 + $0x394] sm:$0xf]  ;;  %v6326_v47 = vor.u32 %v9234_v48, %v6323_v36 }
 0x1f7   :  { %v9590_v40 = vld [vmem:[#allocation5 + $0xcac] sm:$0xf0]  ;;  %v6227_v22 = vld [vmem:[#allocation5 + $0xf0] sm:$0xf0] }
 0x1f8   :  { %v7985_v44 = vld [vmem:[#allocation5 + $0xe90] sm:$0xf]  ;;  %v7730_v53 = vor.u32 %v9590_v40, %v7729_v2  ;;  %3706 = vmatpush.bf16.msrb.mxu1 %v7474_v52  ;;  %v7126_v2 = vor.u32 %v9434_v29, %v7123_v30  ;;  %v6579_v40 = vld [vmem:[#allocation5 + $0x3b0] sm:$0xf0]  ;;  %v6838_v52 = vor.u32 %v9362_v42, %v6835_v43 }
 0x1f9   :  { %v9654_v45 = vld [vmem:[#allocation5 + $0xeac] sm:$0xf0]  ;;  %v6582_v51 = vor.u32 %v9298_v37, %v6579_v40  ;;  %v9274_v8 = vld [vmem:[#allocation5 + $0x2d4] sm:$0xf] }
 0x1fa   :  { %v7185_v54 = vld [vmem:[#allocation5 + $0x850] sm:$0xf]  ;;  %v7986_v58 = vor.u32 %v9654_v45, %v7985_v44  ;;  %3719 = vmatpush.bf16.msrb.mxu2 %v7730_v53  ;;  %v9426_v44 = vld [vmem:[#allocation5 + $0x794] sm:$0xf] }
 0x1fb   :  { %v9454_v55 = vld [vmem:[#allocation5 + $0x86c] sm:$0xf0]  ;;  %v7091_v45 = vld [vmem:[#allocation5 + $0x7b0] sm:$0xf0] }
 0x1fc   :  { %v7441_v56 = vld [vmem:[#allocation5 + $0xa50] sm:$0xf]  ;;  %v7186_v3 = vor.u32 %v9454_v55, %v7185_v54  ;;  %3732 = vmatpush.bf16.msrb.mxu3 %v7986_v58  ;;  %v9226_v53 = vld [vmem:[#allocation5 + $0x154] sm:$0xf] }
 0x1fd   :  { %v9518_v59 = vld [vmem:[#allocation5 + $0xa6c] sm:$0xf0]  ;;  %v6291_v54 = vld [vmem:[#allocation5 + $0x170] sm:$0xf0] }
 0x1fe   :  { %v7697_v60 = vld [vmem:[#allocation5 + $0xc50] sm:$0xf]  ;;  %v7442_v6 = vor.u32 %v9518_v59, %v7441_v56  ;;  %3694 = vmatpush.bf16.msrb.mxu0 %v7186_v3  ;;  %v9290_v55 = vld [vmem:[#allocation5 + $0x354] sm:$0xf]  ;;  %v7094_v56 = vor.u32 %v9426_v44, %v7091_v45  ;;  %v3528_v45 = vpop.f32.mrf.mxu3 }
 0x1ff   :  { %v9582_v61 = vld [vmem:[#allocation5 + $0xc6c] sm:$0xf0]  ;;  %v9354_v58 = vld [vmem:[#allocation5 + $0x554] sm:$0xf] }
 0x200   :  { %v7953_v62 = vld [vmem:[#allocation5 + $0xe50] sm:$0xf]  ;;  %v7698_v7 = vor.u32 %v9582_v61, %v7697_v60  ;;  %3707 = vmatpush.bf16.msrb.mxu1 %v7442_v6  ;;  %v6803_v59 = vld [vmem:[#allocation5 + $0x570] sm:$0xf0] }
 0x201   :  { %v9646_v63 = vld [vmem:[#allocation5 + $0xe6c] sm:$0xf0]  ;;  %v9418_v60 = vld [vmem:[#allocation5 + $0x754] sm:$0xf]  ;;  %v6806_v3 = vor.u32 %v9354_v58, %v6803_v59 }
 0x202   :  { %v7153_v4 = vld [vmem:[#allocation5 + $0x810] sm:$0xf]  ;;  %v7954_v14 = vor.u32 %v9646_v63, %v7953_v62  ;;  %3720 = vmatpush.bf16.msrb.mxu2 %v7698_v7  ;;  %v7059_v61 = vld [vmem:[#allocation5 + $0x770] sm:$0xf0]  ;;  %v6294_v62 = vor.u32 %v9226_v53, %v6291_v54  ;;  %v6550_v63 = vor.u32 %v9290_v55, %v6547_v57 }
 0x203   :  { %v9446_v5 = vld [vmem:[#allocation5 + $0x82c] sm:$0xf0]  ;;  %v9282_v6 = vld [vmem:[#allocation5 + $0x314] sm:$0xf]  ;;  %v7062_v7 = vor.u32 %v9418_v60, %v7059_v61  ;;  %v3504_v60 = vpop.f32.mrf.mxu1 }
 0x204   :  { %v7409_v9 = vld [vmem:[#allocation5 + $0xa10] sm:$0xf]  ;;  %v7154_v23 = vor.u32 %v9446_v5, %v7153_v4  ;;  %3733 = vmatpush.bf16.msrb.mxu3 %v7954_v14  ;;  %v9218_v4 = vld [vmem:[#allocation5 + $0x114] sm:$0xf] }
 0x205   :  { %v9510_v11 = vld [vmem:[#allocation5 + $0xa2c] sm:$0xf0]  ;;  %v6259_v5 = vld [vmem:[#allocation5 + $0x130] sm:$0xf0] }
 0x206   :  { %v7665_v12 = vld [vmem:[#allocation5 + $0xc10] sm:$0xf]  ;;  %v7410_v27 = vor.u32 %v9510_v11, %v7409_v9  ;;  %3695 = vmatpush.bf16.msrb.mxu0 %v7154_v23  ;;  %v6515_v9 = vld [vmem:[#allocation5 + $0x330] sm:$0xf0] }
 0x207   :  { %v9574_v15 = vld [vmem:[#allocation5 + $0xc2c] sm:$0xf0]  ;;  %v9346_v11 = vld [vmem:[#allocation5 + $0x514] sm:$0xf] }
 0x208   :  { %v7921_v16 = vld [vmem:[#allocation5 + $0xe10] sm:$0xf]  ;;  %v7666_v28 = vor.u32 %v9574_v15, %v7665_v12  ;;  %3708 = vmatpush.bf16.msrb.mxu1 %v7410_v27  ;;  %v6771_v12 = vld [vmem:[#allocation5 + $0x530] sm:$0xf0]  ;;  %v6262_v15 = vor.u32 %v9218_v4, %v6259_v5 }
 0x209   :  { %v9638_v19 = vld [vmem:[#allocation5 + $0xe2c] sm:$0xf0]  ;;  %3696 = vmatmul.bf16.vlgmr.msrb.gmra.mxu0 %v10207_v38  ;;  %v7027_v14 = vld [vmem:[#allocation5 + $0x730] sm:$0xf0]  ;;  %v6774_v20 = vor.u32 %v9346_v11, %v6771_v12 }
 0x20a   :  { %v7922_v31 = vor.u32 %v9638_v19, %v7921_v16  ;;  %3721 = vmatpush.bf16.msrb.mxu2 %v7666_v28  ;;  %3740 = vmatpush.bf16.msra.mxu0 %v6358_v32  ;;  %v3489_v16 = vpop.f32.mrf.mxu0  ;;  %v6518_v19 = vor.u32 %v9282_v6, %v6515_v9  ;;  %v7030_v25 = vor.u32 %v9410_v13, %v7027_v14  ;;  %v6483_v26 = vld [vmem:[#allocation5 + $0x2f0] sm:$0xf0] }
 0x20b   :  { %3709 = vmatmul.bf16.vlgmr.msrb.gmra.mxu1 %v10211_v41  ;;  %v3490_v23 = vadd.f32 %v3489_v16, %v10262_v50  ;;  %v9338_v27 = vld [vmem:[#allocation5 + $0x4d4] sm:$0xf]  ;;  %v6230_v32 = vor.u32 %v9210_v21, %v6227_v22 }
 0x20c   :  { %3734 = vmatpush.bf16.msrb.mxu3 %v7922_v31  ;;  %3753 = vmatpush.bf16.msra.mxu1 %v6614_v33  ;;  %v6739_v28 = vld [vmem:[#allocation5 + $0x4f0] sm:$0xf0]  ;;  %v6486_v33 = vor.u32 %v9274_v8, %v6483_v26  ;;  %v3530_v8 = vpop.f32.mrf.mxu3 }
 0x20d   :  { %3722 = vmatmul.bf16.vlgmr.msrb.gmra.mxu2 %v10205_v35  ;;  %v9402_v29 = vld [vmem:[#allocation5 + $0x6d4] sm:$0xf]  ;;  %v3503_v31 = vadd.f32 %v3502_v24, %v3490_v23 }
 0x20e   :  { %3766 = vmatpush.bf16.msra.mxu2 %v6870_v34  ;;  %3741 = vmatpush.bf16.msra.mxu0 %v6326_v47  ;;  %v6995_v30 = vld [vmem:[#allocation5 + $0x6f0] sm:$0xf0]  ;;  %v6742_v34 = vor.u32 %v9338_v27, %v6739_v28 }
 0x20f   :  { %3735 = vmatmul.bf16.vlgmr.msrb.gmra.mxu3 %v10209_v39  ;;  %v9202_v48 = vld [vmem:[#allocation5 + $0x94] sm:$0xf]  ;;  %v6998_v50 = vor.u32 %v9402_v29, %v6995_v30 }
 0x210   :  { %3779 = vmatpush.bf16.msra.mxu3 %v7126_v2  ;;  %3754 = vmatpush.bf16.msra.mxu1 %v6582_v51  ;;  %v6195_v36 = vld [vmem:[#allocation5 + $0xb0] sm:$0xf0]  ;;  %v3515_v2 = vpop.f32.mrf.mxu2 }
 0x211   :  { %v9266_v37 = vld [vmem:[#allocation5 + $0x294] sm:$0xf]  ;;  %v3516_v44 = vadd.f32 %v3515_v2, %v3503_v31 }
 0x212   :  { %3767 = vmatpush.bf16.msra.mxu2 %v6838_v52  ;;  %3742 = vmatpush.bf16.msra.mxu0 %v6294_v62  ;;  %v6451_v40 = vld [vmem:[#allocation5 + $0x2b0] sm:$0xf0]  ;;  %v6198_v52 = vor.u32 %v9202_v48, %v6195_v36  ;;  %v3491_v54 = vpop.f32.mrf.mxu0 }
 0x213   :  { %v9330_v42 = vld [vmem:[#allocation5 + $0x494] sm:$0xf]  ;;  %v10269_v53 = vadd.f32 %v3528_v45, %v3516_v44  ;;  %v6454_v55 = vor.u32 %v9266_v37, %v6451_v40 }
 0x214   :  { %3780 = vmatpush.bf16.msra.mxu3 %v7094_v56  ;;  %3755 = vmatpush.bf16.msra.mxu1 %v6550_v63  ;;  %v6707_v43 = vld [vmem:[#allocation5 + $0x4b0] sm:$0xf0] }
 0x215   :  { %v9394_v47 = vld [vmem:[#allocation5 + $0x694] sm:$0xf]  ;;  %v6710_v56 = vor.u32 %v9330_v42, %v6707_v43  ;;  %vm4054_vm2 = vcmp.gt.f32.partialorder %v10269_v53, 0.0 }
 0x216   :  { %3768 = vmatpush.bf16.msra.mxu2 %v6806_v3  ;;  %3743 = vmatpush.bf16.msra.mxu0 %v6262_v15  ;;  %v6963_v51 = vld [vmem:[#allocation5 + $0x6b0] sm:$0xf0] }
 0x217   :  { %v9194_v57 = vld [vmem:[#allocation5 + $0x54] sm:$0xf]  ;;  %v6966_v61 = vor.u32 %v9394_v47, %v6963_v51 }
 0x218   :  { %3781 = vmatpush.bf16.msra.mxu3 %v7062_v7  ;;  %3756 = vmatpush.bf16.msra.mxu1 %v6518_v19  ;;  %v6163_v58 = vld [vmem:[#allocation5 + $0x70] sm:$0xf0]  ;;  %v3517_v16 = vpop.f32.mrf.mxu2 }
 0x219   :  { %v9258_v59 = vld [vmem:[#allocation5 + $0x254] sm:$0xf]  ;;  %v6166_v6 = vor.u32 %v9194_v57, %v6163_v58 }
 0x21a   :  { %3769 = vmatpush.bf16.msra.mxu2 %v6774_v20  ;;  %3744 = vmatpush.bf16.msra.mxu0 %v6230_v32  ;;  %v6419_v62 = vld [vmem:[#allocation5 + $0x270] sm:$0xf0] }
 0x21b   :  { %v9322_v63 = vld [vmem:[#allocation5 + $0x454] sm:$0xf]  ;;  %v6422_v11 = vor.u32 %v9258_v59, %v6419_v62 }
 0x21c   :  { %3782 = vmatpush.bf16.msra.mxu3 %v7030_v25  ;;  %3757 = vmatpush.bf16.msra.mxu1 %v6486_v33  ;;  %v6675_v3 = vld [vmem:[#allocation5 + $0x470] sm:$0xf0] }
 0x21d   :  { %v9386_v4 = vld [vmem:[#allocation5 + $0x654] sm:$0xf]  ;;  %v6678_v12 = vor.u32 %v9322_v63, %v6675_v3 }
 0x21e   :  { %3770 = vmatpush.bf16.msra.mxu2 %v6742_v34  ;;  %v6931_v5 = vld [vmem:[#allocation5 + $0x670] sm:$0xf0]  ;;  %3745 = vmatpush.bf16.msra.mxu0 %v6198_v52 }
 0x21f   :  { %v9186_v7 = vld [vmem:[#allocation5 + $0x14] sm:$0xf]  ;;  %v6934_v19 = vor.u32 %v9386_v4, %v6931_v5 }
 0x220   :  { %3783 = vmatpush.bf16.msra.mxu3 %v6998_v50  ;;  %v6131_v9 = vld [vmem:[#allocation5 + $0x30] sm:$0xf0]  ;;  %3758 = vmatpush.bf16.msra.mxu1 %v6454_v55 }
 0x221   :  { %v9250_v13 = vld [vmem:[#allocation5 + $0x214] sm:$0xf]  ;;  %v6134_v26 = vor.u32 %v9186_v7, %v6131_v9 }
 0x222   :  { %3771 = vmatpush.bf16.msra.mxu2 %v6710_v56  ;;  %v6387_v14 = vld [vmem:[#allocation5 + $0x230] sm:$0xf0]  ;;  %3746 = vmatpush.bf16.msra.mxu0 %v6166_v6 }
 0x223   :  { %v9314_v15 = vld [vmem:[#allocation5 + $0x414] sm:$0xf]  ;;  %v6390_v30 = vor.u32 %v9250_v13, %v6387_v14 }
 0x224   :  { %3784 = vmatpush.bf16.msra.mxu3 %v6966_v61  ;;  %v6643_v20 = vld [vmem:[#allocation5 + $0x430] sm:$0xf0]  ;;  %3759 = vmatpush.bf16.msra.mxu1 %v6422_v11 }
 0x225   :  { %v9378_v21 = vld [vmem:[#allocation5 + $0x614] sm:$0xf]  ;;  %v6646_v31 = vor.u32 %v9314_v15, %v6643_v20 }
 0x226   :  { %v6899_v22 = vld [vmem:[#allocation5 + $0x630] sm:$0xf0]  ;;  %3772 = vmatpush.bf16.msra.mxu2 %v6678_v12  ;;  %3747 = vmatpush.bf16.msra.mxu0 %v6134_v26  ;;  %v647_v12 = vperm.slane %v10259_v1, 3 }
 0x227   :  { %v9498_v23 = vld [vmem:[#allocation5 + $0x9d4] sm:$0xf]  ;;  %v6902_v34 = vor.u32 %v9378_v21, %v6899_v22  ;;  %v3541_v22 = vpop.f32.mrf.mxu0 }
 0x228   :  { %v7379_v24 = vld [vmem:[#allocation5 + $0x9f0] sm:$0xf0]  ;;  %3785 = vmatpush.bf16.msra.mxu3 %v6934_v19  ;;  %3760 = vmatpush.bf16.msra.mxu1 %v6390_v30 }
 0x229   :  { %v9562_v25 = vld [vmem:[#allocation5 + $0xbd4] sm:$0xf]  ;;  %v7382_v48 = vor.u32 %v9498_v23, %v7379_v24  ;;  %3748 = vmatmul.bf16.vlgmr.msra.gmra.mxu0 %v10196_v10 }
 0x22a   :  { %v7635_v27 = vld [vmem:[#allocation5 + $0xbf0] sm:$0xf0]  ;;  %3773 = vmatpush.bf16.msra.mxu2 %v6646_v31 }
 0x22b   :  { %v9626_v28 = vld [vmem:[#allocation5 + $0xdd4] sm:$0xf]  ;;  %v7638_v36 = vor.u32 %v9562_v25, %v7635_v27  ;;  %3792 = vmatpush.bf16.msrb.mxu0 %v7382_v48  ;;  %3761 = vmatmul.bf16.vlgmr.msra.gmra.mxu1 %v10200_v18  ;;  %v3542_v27 = vadd.f32 %v3541_v22, %v647_v12 }
 0x22c   :  { %v7891_v29 = vld [vmem:[#allocation5 + $0xdf0] sm:$0xf0]  ;;  %3786 = vmatpush.bf16.msra.mxu3 %v6902_v34 }
 0x22d   :  { %v9690_v32 = vld [vmem:[#allocation5 + $0xfd4] sm:$0xf]  ;;  %v7894_v37 = vor.u32 %v9626_v28, %v7891_v29  ;;  %3805 = vmatpush.bf16.msrb.mxu1 %v7638_v36  ;;  %3774 = vmatmul.bf16.vlgmr.msra.gmra.mxu2 %v10193_v0  ;;  %v3554_v28 = vpop.f32.mrf.mxu1 }
 0x22e   :  { %v8147_v33 = vld [vmem:[#allocation5 + $0xff0] sm:$0xf0]  ;;  %v3555_v34 = vadd.f32 %v3554_v28, %v3542_v27  ;;  %v6361_v27 = vld [vmem:[#allocation5 + $0x1d8] sm:$0xf] }
 0x22f   :  { %v9490_v2 = vld [vmem:[#allocation5 + $0x994] sm:$0xf]  ;;  %v8150_v42 = vor.u32 %v9690_v32, %v8147_v33  ;;  %3818 = vmatpush.bf16.msrb.mxu2 %v7894_v37  ;;  %3787 = vmatmul.bf16.vlgmr.msra.gmra.mxu3 %v10198_v17  ;;  %v9247_v28 = vld [vmem:[#allocation5 + $0x1f4] sm:$0xf0] }
 0x230   :  { %v7347_v50 = vld [vmem:[#allocation5 + $0x9b0] sm:$0xf0] }
 0x231   :  { %v9554_v40 = vld [vmem:[#allocation5 + $0xb94] sm:$0xf]  ;;  %v7350_v52 = vor.u32 %v9490_v2, %v7347_v50  ;;  %3831 = vmatpush.bf16.msrb.mxu3 %v8150_v42  ;;  %v3567_v42 = vpop.f32.mrf.mxu2 }
 0x232   :  { %v7603_v43 = vld [vmem:[#allocation5 + $0xbb0] sm:$0xf0] }
 0x233   :  { %v9618_v44 = vld [vmem:[#allocation5 + $0xd94] sm:$0xf]  ;;  %v7606_v54 = vor.u32 %v9554_v40, %v7603_v43  ;;  %3793 = vmatpush.bf16.msrb.mxu0 %v7350_v52  ;;  %v3580_v52 = vpop.f32.mrf.mxu3 }
 0x234   :  { %v7859_v45 = vld [vmem:[#allocation5 + $0xdb0] sm:$0xf0] }
 0x235   :  { %v9682_v47 = vld [vmem:[#allocation5 + $0xf94] sm:$0xf]  ;;  %v7862_v55 = vor.u32 %v9618_v44, %v7859_v45  ;;  %3806 = vmatpush.bf16.msrb.mxu1 %v7606_v54 }
 0x236   :  { %v8115_v51 = vld [vmem:[#allocation5 + $0xfb0] sm:$0xf0] }
 0x237   :  { %v9482_v56 = vld [vmem:[#allocation5 + $0x954] sm:$0xf]  ;;  %v8118_v59 = vor.u32 %v9682_v47, %v8115_v51  ;;  %3819 = vmatpush.bf16.msrb.mxu2 %v7862_v55  ;;  %v3568_v51 = vadd.f32 %v3567_v42, %v3555_v34  ;;  %v6329_v42 = vld [vmem:[#allocation5 + $0x198] sm:$0xf] }
 0x238   :  { %v7315_v57 = vld [vmem:[#allocation5 + $0x970] sm:$0xf0] }
 0x239   :  { %v9546_v58 = vld [vmem:[#allocation5 + $0xb54] sm:$0xf]  ;;  %v7318_v4 = vor.u32 %v9482_v56, %v7315_v57  ;;  %3832 = vmatpush.bf16.msrb.mxu3 %v8118_v59  ;;  %v10276_v57 = vadd.f32 %v3580_v52, %v3568_v51  ;;  %v3569_v22 = vpop.f32.mrf.mxu2  ;;  %v6841_v51 = vld [vmem:[#allocation5 + $0x598] sm:$0xf] }
 0x23a   :  { %v7571_v60 = vld [vmem:[#allocation5 + $0xb70] sm:$0xf0]  ;;  %v9367_v52 = vld [vmem:[#allocation5 + $0x5b4] sm:$0xf0] }
 0x23b   :  { %v9610_v61 = vld [vmem:[#allocation5 + $0xd54] sm:$0xf]  ;;  %v7574_v6 = vor.u32 %v9546_v58, %v7571_v60  ;;  %3794 = vmatpush.bf16.msrb.mxu0 %v7318_v4  ;;  %v3543_v58 = vpop.f32.mrf.mxu0  ;;  %v7033_v22 = vld [vmem:[#allocation5 + $0x718] sm:$0xf] }
 0x23c   :  { %v7827_v62 = vld [vmem:[#allocation5 + $0xd70] sm:$0xf0] }
 0x23d   :  { %v9674_v63 = vld [vmem:[#allocation5 + $0xf54] sm:$0xf]  ;;  %v7830_v7 = vor.u32 %v9610_v61, %v7827_v62  ;;  %3807 = vmatpush.bf16.msrb.mxu1 %v7574_v6 }
 0x23e   :  { %v8083_v3 = vld [vmem:[#allocation5 + $0xf70] sm:$0xf0] }
 0x23f   :  { %v9474_v5 = vld [vmem:[#allocation5 + $0x914] sm:$0xf]  ;;  %v8086_v13 = vor.u32 %v9674_v63, %v8083_v3  ;;  %3820 = vmatpush.bf16.msrb.mxu2 %v7830_v7  ;;  %v3556_v3 = vpop.f32.mrf.mxu1 }
 0x240   :  { %v7283_v9 = vld [vmem:[#allocation5 + $0x930] sm:$0xf0]  ;;  %v9295_v3 = vld [vmem:[#allocation5 + $0x374] sm:$0xf0] }
 0x241   :  { %v9538_v11 = vld [vmem:[#allocation5 + $0xb14] sm:$0xf]  ;;  %v7286_v21 = vor.u32 %v9474_v5, %v7283_v9  ;;  %3833 = vmatpush.bf16.msrb.mxu3 %v8086_v13 }
 0x242   :  { %v7539_v14 = vld [vmem:[#allocation5 + $0xb30] sm:$0xf0] }
 0x243   :  { %v9602_v15 = vld [vmem:[#allocation5 + $0xd14] sm:$0xf]  ;;  %v7542_v8 = vor.u32 %v9538_v11, %v7539_v14  ;;  %3795 = vmatpush.bf16.msrb.mxu0 %v7286_v21 }
 0x244   :  { %v7795_v16 = vld [vmem:[#allocation5 + $0xd30] sm:$0xf0] }
 0x245   :  { %v9666_v19 = vld [vmem:[#allocation5 + $0xf14] sm:$0xf]  ;;  %v7798_v23 = vor.u32 %v9602_v15, %v7795_v16  ;;  %3808 = vmatpush.bf16.msrb.mxu1 %v7542_v8 }
 0x246   :  { %v8051_v20 = vld [vmem:[#allocation5 + $0xf30] sm:$0xf0] }
 0x247   :  { %v9466_v24 = vld [vmem:[#allocation5 + $0x8d4] sm:$0xf]  ;;  %v8054_v1 = vor.u32 %v9666_v19, %v8051_v20  ;;  %3821 = vmatpush.bf16.msrb.mxu2 %v7798_v23 }
 0x248   :  { %v7251_v25 = vld [vmem:[#allocation5 + $0x8f0] sm:$0xf0] }
 0x249   :  { %v9530_v26 = vld [vmem:[#allocation5 + $0xad4] sm:$0xf]  ;;  %v7254_v48 = vor.u32 %v9466_v24, %v7251_v25  ;;  %3834 = vmatpush.bf16.msrb.mxu3 %v8054_v1  ;;  %v6617_v1 = vld [vmem:[#allocation5 + $0x3d8] sm:$0xf] }
 0x24a   :  { %v7507_v29 = vld [vmem:[#allocation5 + $0xaf0] sm:$0xf0] }
 0x24b   :  { %v9594_v30 = vld [vmem:[#allocation5 + $0xcd4] sm:$0xf]  ;;  %v7510_v36 = vor.u32 %v9530_v26, %v7507_v29  ;;  %3796 = vmatpush.bf16.msrb.mxu0 %v7254_v48  ;;  %v3582_v26 = vpop.f32.mrf.mxu3  ;;  %v7129_v48 = vld [vmem:[#allocation5 + $0x7d8] sm:$0xf] }
 0x24c   :  { %v7763_v31 = vld [vmem:[#allocation5 + $0xcf0] sm:$0xf0] }
 0x24d   :  { %v9658_v32 = vld [vmem:[#allocation5 + $0xed4] sm:$0xf]  ;;  %v7766_v37 = vor.u32 %v9594_v30, %v7763_v31  ;;  %3809 = vmatpush.bf16.msrb.mxu1 %v7510_v36  ;;  %v9311_v30 = vld [vmem:[#allocation5 + $0x3f4] sm:$0xf0] }
 0x24e   :  { %v8019_v33 = vld [vmem:[#allocation5 + $0xef0] sm:$0xf0]  ;;  %v6873_v31 = vld [vmem:[#allocation5 + $0x5d8] sm:$0xf] }
 0x24f   :  { %v9458_v2 = vld [vmem:[#allocation5 + $0x894] sm:$0xf]  ;;  %v8022_v43 = vor.u32 %v9658_v32, %v8019_v33  ;;  %3822 = vmatpush.bf16.msrb.mxu2 %v7766_v37  ;;  %v9375_v32 = vld [vmem:[#allocation5 + $0x5f4] sm:$0xf0] }
 0x250   :  { %v7219_v50 = vld [vmem:[#allocation5 + $0x8b0] sm:$0xf0]  ;;  %v9439_v36 = vld [vmem:[#allocation5 + $0x7f4] sm:$0xf0] }
 0x251   :  { %v9522_v40 = vld [vmem:[#allocation5 + $0xa94] sm:$0xf]  ;;  %v7222_v56 = vor.u32 %v9458_v2, %v7219_v50  ;;  %3835 = vmatpush.bf16.msrb.mxu3 %v8022_v43  ;;  %v6362_v2 = vor.u32 %v9247_v28, %v6361_v27  ;;  %v6618_v50 = vor.u32 %v9311_v30, %v6617_v1  ;;  %v9239_v43 = vld [vmem:[#allocation5 + $0x1b4] sm:$0xf0]  ;;  %v3606_v30 = vpop.f32.mrf.mxu1 }
 0x252   :  { %v7475_v44 = vld [vmem:[#allocation5 + $0xab0] sm:$0xf0]  ;;  %v6233_v27 = vld [vmem:[#allocation5 + $0xd8] sm:$0xf] }
 0x253   :  { %v9586_v45 = vld [vmem:[#allocation5 + $0xc94] sm:$0xf]  ;;  %v7478_v59 = vor.u32 %v9522_v40, %v7475_v44  ;;  %3797 = vmatpush.bf16.msrb.mxu0 %v7222_v56  ;;  %v6874_v40 = vor.u32 %v9375_v32, %v6873_v31  ;;  %v6585_v44 = vld [vmem:[#allocation5 + $0x398] sm:$0xf]  ;;  %v6330_v56 = vor.u32 %v9239_v43, %v6329_v42 }
 0x254   :  { %v7731_v47 = vld [vmem:[#allocation5 + $0xcb0] sm:$0xf0]  ;;  %v9215_v28 = vld [vmem:[#allocation5 + $0xf4] sm:$0xf0] }
 0x255   :  { %v9650_v54 = vld [vmem:[#allocation5 + $0xe94] sm:$0xf]  ;;  %v7734_v60 = vor.u32 %v9586_v45, %v7731_v47  ;;  %3810 = vmatpush.bf16.msrb.mxu1 %v7478_v59  ;;  %v7130_v45 = vor.u32 %v9439_v36, %v7129_v48  ;;  %v9303_v47 = vld [vmem:[#allocation5 + $0x3b4] sm:$0xf0]  ;;  %v6842_v59 = vor.u32 %v9367_v52, %v6841_v51 }
 0x256   :  { %v7987_v55 = vld [vmem:[#allocation5 + $0xeb0] sm:$0xf0]  ;;  %v6586_v58 = vor.u32 %v9303_v47, %v6585_v44  ;;  %v6489_v1 = vld [vmem:[#allocation5 + $0x2d8] sm:$0xf] }
 0x257   :  { %v9450_v61 = vld [vmem:[#allocation5 + $0x854] sm:$0xf]  ;;  %v7990_v4 = vor.u32 %v9650_v54, %v7987_v55  ;;  %3823 = vmatpush.bf16.msrb.mxu2 %v7734_v60  ;;  %v7097_v54 = vld [vmem:[#allocation5 + $0x798] sm:$0xf] }
 0x258   :  { %v7187_v62 = vld [vmem:[#allocation5 + $0x870] sm:$0xf0]  ;;  %v9431_v55 = vld [vmem:[#allocation5 + $0x7b4] sm:$0xf0] }
 0x259   :  { %v9514_v63 = vld [vmem:[#allocation5 + $0xa54] sm:$0xf]  ;;  %v7190_v12 = vor.u32 %v9450_v61, %v7187_v62  ;;  %3836 = vmatpush.bf16.msrb.mxu3 %v7990_v4  ;;  %v6297_v60 = vld [vmem:[#allocation5 + $0x158] sm:$0xf] }
 0x25a   :  { %v7443_v5 = vld [vmem:[#allocation5 + $0xa70] sm:$0xf0]  ;;  %v9231_v61 = vld [vmem:[#allocation5 + $0x174] sm:$0xf0] }
 0x25b   :  { %v9578_v6 = vld [vmem:[#allocation5 + $0xc54] sm:$0xf]  ;;  %v7446_v15 = vor.u32 %v9514_v63, %v7443_v5  ;;  %3798 = vmatpush.bf16.msrb.mxu0 %v7190_v12  ;;  %v6553_v62 = vld [vmem:[#allocation5 + $0x358] sm:$0xf]  ;;  %v7098_v63 = vor.u32 %v9431_v55, %v7097_v54  ;;  %v3632_v55 = vpop.f32.mrf.mxu3 }
 0x25c   :  { %v7699_v7 = vld [vmem:[#allocation5 + $0xc70] sm:$0xf0]  ;;  %v6809_v4 = vld [vmem:[#allocation5 + $0x558] sm:$0xf] }
 0x25d   :  { %v9642_v9 = vld [vmem:[#allocation5 + $0xe54] sm:$0xf]  ;;  %v7702_v16 = vor.u32 %v9578_v6, %v7699_v7  ;;  %3811 = vmatpush.bf16.msrb.mxu1 %v7446_v15  ;;  %v9359_v5 = vld [vmem:[#allocation5 + $0x574] sm:$0xf0] }
 0x25e   :  { %v7955_v11 = vld [vmem:[#allocation5 + $0xe70] sm:$0xf0]  ;;  %v7065_v6 = vld [vmem:[#allocation5 + $0x758] sm:$0xf]  ;;  %v6810_v12 = vor.u32 %v9359_v5, %v6809_v4 }
 0x25f   :  { %v9442_v13 = vld [vmem:[#allocation5 + $0x814] sm:$0xf]  ;;  %v7958_v8 = vor.u32 %v9642_v9, %v7955_v11  ;;  %3824 = vmatpush.bf16.msrb.mxu2 %v7702_v16  ;;  %v9423_v7 = vld [vmem:[#allocation5 + $0x774] sm:$0xf0]  ;;  %v6298_v9 = vor.u32 %v9231_v61, %v6297_v60  ;;  %v6554_v11 = vor.u32 %v9295_v3, %v6553_v62 }
 0x260   :  { %v7155_v14 = vld [vmem:[#allocation5 + $0x830] sm:$0xf0]  ;;  %v6521_v15 = vld [vmem:[#allocation5 + $0x318] sm:$0xf]  ;;  %v7066_v16 = vor.u32 %v9423_v7, %v7065_v6  ;;  %v3608_v6 = vpop.f32.mrf.mxu1 }
 0x261   :  { %v9506_v19 = vld [vmem:[#allocation5 + $0xa14] sm:$0xf]  ;;  %v7158_v29 = vor.u32 %v9442_v13, %v7155_v14  ;;  %3837 = vmatpush.bf16.msrb.mxu3 %v7958_v8  ;;  %v6265_v13 = vld [vmem:[#allocation5 + $0x118] sm:$0xf] }
 0x262   :  { %v7411_v20 = vld [vmem:[#allocation5 + $0xa30] sm:$0xf0]  ;;  %v9223_v14 = vld [vmem:[#allocation5 + $0x134] sm:$0xf0] }
 0x263   :  { %v9570_v21 = vld [vmem:[#allocation5 + $0xc14] sm:$0xf]  ;;  %v7414_v33 = vor.u32 %v9506_v19, %v7411_v20  ;;  %3799 = vmatpush.bf16.msrb.mxu0 %v7158_v29  ;;  %v9287_v19 = vld [vmem:[#allocation5 + $0x334] sm:$0xf0] }
 0x264   :  { %v7667_v23 = vld [vmem:[#allocation5 + $0xc30] sm:$0xf0]  ;;  %v6777_v20 = vld [vmem:[#allocation5 + $0x518] sm:$0xf] }
 0x265   :  { %v9634_v24 = vld [vmem:[#allocation5 + $0xe14] sm:$0xf]  ;;  %v7670_v34 = vor.u32 %v9570_v21, %v7667_v23  ;;  %3812 = vmatpush.bf16.msrb.mxu1 %v7414_v33  ;;  %v9351_v21 = vld [vmem:[#allocation5 + $0x534] sm:$0xf0]  ;;  %v6266_v23 = vor.u32 %v9223_v14, %v6265_v13 }
 0x266   :  { %v7923_v25 = vld [vmem:[#allocation5 + $0xe30] sm:$0xf0]  ;;  %3800 = vmatmul.bf16.vlgmr.msrb.gmra.mxu0 %v10207_v38  ;;  %v9415_v8 = vld [vmem:[#allocation5 + $0x734] sm:$0xf0]  ;;  %v6778_v26 = vor.u32 %v9351_v21, %v6777_v20 }
 0x267   :  { %v7926_v37 = vor.u32 %v9634_v24, %v7923_v25  ;;  %3825 = vmatpush.bf16.msrb.mxu2 %v7670_v34  ;;  %3844 = vmatpush.bf16.msra.mxu0 %v6362_v2  ;;  %v3593_v24 = vpop.f32.mrf.mxu0  ;;  %v6522_v25 = vor.u32 %v9287_v19, %v6521_v15  ;;  %v7034_v31 = vor.u32 %v9415_v8, %v7033_v22  ;;  %v9279_v32 = vld [vmem:[#allocation5 + $0x2f4] sm:$0xf0] }
 0x268   :  { %3813 = vmatmul.bf16.vlgmr.msrb.gmra.mxu1 %v10211_v41  ;;  %v3594_v29 = vadd.f32 %v3593_v24, %v10276_v57  ;;  %v6745_v33 = vld [vmem:[#allocation5 + $0x4d8] sm:$0xf]  ;;  %v6234_v2 = vor.u32 %v9215_v28, %v6233_v27 }
 0x269   :  { %3838 = vmatpush.bf16.msrb.mxu3 %v7926_v37  ;;  %3857 = vmatpush.bf16.msra.mxu1 %v6618_v50  ;;  %v9343_v34 = vld [vmem:[#allocation5 + $0x4f4] sm:$0xf0]  ;;  %v6490_v50 = vor.u32 %v9279_v32, %v6489_v1  ;;  %v3634_v1 = vpop.f32.mrf.mxu3 }
 0x26a   :  { %3826 = vmatmul.bf16.vlgmr.msrb.gmra.mxu2 %v10205_v35  ;;  %v7001_v48 = vld [vmem:[#allocation5 + $0x6d8] sm:$0xf]  ;;  %v3607_v37 = vadd.f32 %v3606_v30, %v3594_v29 }
 0x26b   :  { %3870 = vmatpush.bf16.msra.mxu2 %v6874_v40  ;;  %3845 = vmatpush.bf16.msra.mxu0 %v6330_v56  ;;  %v9407_v36 = vld [vmem:[#allocation5 + $0x6f4] sm:$0xf0]  ;;  %v6746_v40 = vor.u32 %v9343_v34, %v6745_v33 }
 0x26c   :  { %3839 = vmatmul.bf16.vlgmr.msrb.gmra.mxu3 %v10209_v39  ;;  %v6201_v42 = vld [vmem:[#allocation5 + $0x98] sm:$0xf]  ;;  %v7002_v57 = vor.u32 %v9407_v36, %v7001_v48 }
 0x26d   :  { %3883 = vmatpush.bf16.msra.mxu3 %v7130_v45  ;;  %3858 = vmatpush.bf16.msra.mxu1 %v6586_v58  ;;  %v9207_v43 = vld [vmem:[#allocation5 + $0xb4] sm:$0xf0]  ;;  %v3619_v45 = vpop.f32.mrf.mxu2 }
 0x26e   :  { %v6457_v44 = vld [vmem:[#allocation5 + $0x298] sm:$0xf]  ;;  %v3620_v54 = vadd.f32 %v3619_v45, %v3607_v37 }
 0x26f   :  { %3871 = vmatpush.bf16.msra.mxu2 %v6842_v59  ;;  %3846 = vmatpush.bf16.msra.mxu0 %v6298_v9  ;;  %v9271_v47 = vld [vmem:[#allocation5 + $0x2b4] sm:$0xf0]  ;;  %v6202_v59 = vor.u32 %v9207_v43, %v6201_v42  ;;  %v3595_v61 = vpop.f32.mrf.mxu0 }
 0x270   :  { %v6713_v51 = vld [vmem:[#allocation5 + $0x498] sm:$0xf]  ;;  %v10283_v60 = vadd.f32 %v3632_v55, %v3620_v54  ;;  %v6458_v62 = vor.u32 %v9271_v47, %v6457_v44 }
 0x271   :  { %3884 = vmatpush.bf16.msra.mxu3 %v7098_v63  ;;  %3859 = vmatpush.bf16.msra.mxu1 %v6554_v11  ;;  %v9335_v52 = vld [vmem:[#allocation5 + $0x4b4] sm:$0xf0] }
 0x272   :  { %v6969_v56 = vld [vmem:[#allocation5 + $0x698] sm:$0xf]  ;;  %v6714_v63 = vor.u32 %v9335_v52, %v6713_v51  ;;  %vm4055_vm3 = vcmp.gt.f32.partialorder %v10283_v60, 0.0 }
 0x273   :  { %3872 = vmatpush.bf16.msra.mxu2 %v6810_v12  ;;  %3847 = vmatpush.bf16.msra.mxu0 %v6266_v23  ;;  %v9399_v58 = vld [vmem:[#allocation5 + $0x6b4] sm:$0xf0] }
 0x274   :  { %v6169_v3 = vld [vmem:[#allocation5 + $0x58] sm:$0xf]  ;;  %v6970_v7 = vor.u32 %v9399_v58, %v6969_v56 }
 0x275   :  { %3885 = vmatpush.bf16.msra.mxu3 %v7066_v16  ;;  %3860 = vmatpush.bf16.msra.mxu1 %v6522_v25  ;;  %v9199_v4 = vld [vmem:[#allocation5 + $0x74] sm:$0xf0]  ;;  %v3621_v24 = vpop.f32.mrf.mxu2 }
 0x276   :  { %v6425_v5 = vld [vmem:[#allocation5 + $0x258] sm:$0xf]  ;;  %v6170_v15 = vor.u32 %v9199_v4, %v6169_v3 }
 0x277   :  { %3873 = vmatpush.bf16.msra.mxu2 %v6778_v26  ;;  %3848 = vmatpush.bf16.msra.mxu0 %v6234_v2  ;;  %v9263_v9 = vld [vmem:[#allocation5 + $0x274] sm:$0xf0]  ;;  %v3645_v1 = vpop.f32.mrf.mxu0 }
 0x278   :  { %v6681_v11 = vld [vmem:[#allocation5 + $0x458] sm:$0xf]  ;;  %v6426_v20 = vor.u32 %v9263_v9, %v6425_v5 }
 0x279   :  { %3886 = vmatpush.bf16.msra.mxu3 %v7034_v31  ;;  %3861 = vmatpush.bf16.msra.mxu1 %v6490_v50  ;;  %v9327_v12 = vld [vmem:[#allocation5 + $0x474] sm:$0xf0] }
 0x27a   :  { %v6937_v13 = vld [vmem:[#allocation5 + $0x658] sm:$0xf]  ;;  %v6682_v21 = vor.u32 %v9327_v12, %v6681_v11 }
 0x27b   :  { %3874 = vmatpush.bf16.msra.mxu2 %v6746_v40  ;;  %v9391_v14 = vld [vmem:[#allocation5 + $0x674] sm:$0xf0]  ;;  %3849 = vmatpush.bf16.msra.mxu0 %v6202_v59 }
 0x27c   :  { %v6137_v16 = vld [vmem:[#allocation5 + $0x18] sm:$0xf]  ;;  %v6938_v25 = vor.u32 %v9391_v14, %v6937_v13 }
 0x27d   :  { %3887 = vmatpush.bf16.msra.mxu3 %v7002_v57  ;;  %v9191_v19 = vld [vmem:[#allocation5 + $0x34] sm:$0xf0]  ;;  %3862 = vmatpush.bf16.msra.mxu1 %v6458_v62 }
 0x27e   :  { %v6393_v22 = vld [vmem:[#allocation5 + $0x218] sm:$0xf]  ;;  %v6138_v32 = vor.u32 %v9191_v19, %v6137_v16 }
 0x27f   :  { %3875 = vmatpush.bf16.msra.mxu2 %v6714_v63  ;;  %v9255_v8 = vld [vmem:[#allocation5 + $0x234] sm:$0xf0]  ;;  %3850 = vmatpush.bf16.msra.mxu0 %v6170_v15 }
 0x280   :  { %v6649_v23 = vld [vmem:[#allocation5 + $0x418] sm:$0xf]  ;;  %v6394_v36 = vor.u32 %v9255_v8, %v6393_v22 }
 0x281   :  { %3888 = vmatpush.bf16.msra.mxu3 %v6970_v7  ;;  %v9319_v26 = vld [vmem:[#allocation5 + $0x434] sm:$0xf0]  ;;  %3863 = vmatpush.bf16.msra.mxu1 %v6426_v20 }
 0x282   :  { %v6905_v27 = vld [vmem:[#allocation5 + $0x618] sm:$0xf]  ;;  %v6650_v37 = vor.u32 %v9319_v26, %v6649_v23 }
 0x283   :  { %v9383_v28 = vld [vmem:[#allocation5 + $0x634] sm:$0xf0]  ;;  %3876 = vmatpush.bf16.msra.mxu2 %v6682_v21  ;;  %3851 = vmatpush.bf16.msra.mxu0 %v6138_v32  ;;  %v10289_v21 = vld [vmem:[#allocation7] sm:$0xff] }
 0x284   :  { %v7385_v29 = vld [vmem:[#allocation5 + $0x9d8] sm:$0xf]  ;;  %v6906_v40 = vor.u32 %v9383_v28, %v6905_v27  ;;  %v648_v22 = vperm.slane %v10289_v21, 4 }
 0x285   :  { %v9503_v30 = vld [vmem:[#allocation5 + $0x9f4] sm:$0xf0]  ;;  %3889 = vmatpush.bf16.msra.mxu3 %v6938_v25  ;;  %3864 = vmatpush.bf16.msra.mxu1 %v6394_v36 }
 0x286   :  { %v7641_v31 = vld [vmem:[#allocation5 + $0xbd8] sm:$0xf]  ;;  %v7386_v42 = vor.u32 %v9503_v30, %v7385_v29  ;;  %3852 = vmatmul.bf16.vlgmr.msra.gmra.mxu0 %v10196_v10 }
 0x287   :  { %v9567_v33 = vld [vmem:[#allocation5 + $0xbf4] sm:$0xf0]  ;;  %3877 = vmatpush.bf16.msra.mxu2 %v6650_v37 }
 0x288   :  { %v7897_v34 = vld [vmem:[#allocation5 + $0xdd8] sm:$0xf]  ;;  %v7642_v43 = vor.u32 %v9567_v33, %v7641_v31  ;;  %3896 = vmatpush.bf16.msrb.mxu0 %v7386_v42  ;;  %3865 = vmatmul.bf16.vlgmr.msra.gmra.mxu1 %v10200_v18 }
 0x289   :  { %v9631_v48 = vld [vmem:[#allocation5 + $0xdf4] sm:$0xf0]  ;;  %3890 = vmatpush.bf16.msra.mxu3 %v6906_v40 }
 0x28a   :  { %v8153_v2 = vld [vmem:[#allocation5 + $0xfd8] sm:$0xf]  ;;  %v7898_v44 = vor.u32 %v9631_v48, %v7897_v34  ;;  %3909 = vmatpush.bf16.msrb.mxu1 %v7642_v43  ;;  %3878 = vmatmul.bf16.vlgmr.msra.gmra.mxu2 %v10193_v0  ;;  %v3646_v34 = vadd.f32 %v3645_v1, %v648_v22  ;;  %v3658_v48 = vpop.f32.mrf.mxu1 }
 0x28b   :  { %v9695_v50 = vld [vmem:[#allocation5 + $0xff4] sm:$0xf0] }
 0x28c   :  { %v7353_v45 = vld [vmem:[#allocation5 + $0x998] sm:$0xf]  ;;  %v8154_v51 = vor.u32 %v9695_v50, %v8153_v2  ;;  %3922 = vmatpush.bf16.msrb.mxu2 %v7898_v44  ;;  %3891 = vmatmul.bf16.vlgmr.msra.gmra.mxu3 %v10198_v17  ;;  %v3659_v43 = vadd.f32 %v3658_v48, %v3646_v34 }
 0x28d   :  { %v9495_v57 = vld [vmem:[#allocation5 + $0x9b4] sm:$0xf0] }
 0x28e   :  { %v7609_v47 = vld [vmem:[#allocation5 + $0xb98] sm:$0xf]  ;;  %v7354_v59 = vor.u32 %v9495_v57, %v7353_v45  ;;  %3935 = vmatpush.bf16.msrb.mxu3 %v8154_v51 }
 0x28f   :  { %v9559_v52 = vld [vmem:[#allocation5 + $0xbb4] sm:$0xf0] }
 0x290   :  { %v7865_v54 = vld [vmem:[#allocation5 + $0xd98] sm:$0xf]  ;;  %v7610_v61 = vor.u32 %v9559_v52, %v7609_v47  ;;  %3897 = vmatpush.bf16.msrb.mxu0 %v7354_v59 }
 0x291   :  { %v9623_v55 = vld [vmem:[#allocation5 + $0xdb4] sm:$0xf0] }
 0x292   :  { %v8121_v56 = vld [vmem:[#allocation5 + $0xf98] sm:$0xf]  ;;  %v7866_v62 = vor.u32 %v9623_v55, %v7865_v54  ;;  %3910 = vmatpush.bf16.msrb.mxu1 %v7610_v61  ;;  %v3671_v54 = vpop.f32.mrf.mxu2 }
 0x293   :  { %v9687_v58 = vld [vmem:[#allocation5 + $0xfb4] sm:$0xf0]  ;;  %v3672_v61 = vadd.f32 %v3671_v54, %v3659_v43  ;;  %v6875_v43 = vld [vmem:[#allocation5 + $0x5f8] sm:$0xf0] }
 0x294   :  { %v7321_v63 = vld [vmem:[#allocation5 + $0x958] sm:$0xf]  ;;  %v8122_v5 = vor.u32 %v9687_v58, %v8121_v56  ;;  %3923 = vmatpush.bf16.msrb.mxu2 %v7866_v62  ;;  %v3684_v62 = vpop.f32.mrf.mxu3 }
 0x295   :  { %v9487_v3 = vld [vmem:[#allocation5 + $0x974] sm:$0xf0] }
 0x296   :  { %v7577_v4 = vld [vmem:[#allocation5 + $0xb58] sm:$0xf]  ;;  %v7322_v13 = vor.u32 %v9487_v3, %v7321_v63  ;;  %3936 = vmatpush.bf16.msrb.mxu3 %v8122_v5  ;;  %v10292_v5 = vadd.f32 %v3684_v62, %v3672_v61  ;;  %v6587_v62 = vld [vmem:[#allocation5 + $0x3b8] sm:$0xf0] }
 0x297   :  { %v9551_v6 = vld [vmem:[#allocation5 + $0xb74] sm:$0xf0] }
 0x298   :  { %v7833_v7 = vld [vmem:[#allocation5 + $0xd58] sm:$0xf]  ;;  %v7578_v15 = vor.u32 %v9551_v6, %v7577_v4  ;;  %3898 = vmatpush.bf16.msrb.mxu0 %v7322_v13  ;;  %v3647_v6 = vpop.f32.mrf.mxu0 }
 0x299   :  { %v9615_v9 = vld [vmem:[#allocation5 + $0xd74] sm:$0xf0]  ;;  %v7099_v6 = vld [vmem:[#allocation5 + $0x7b8] sm:$0xf0] }
 0x29a   :  { %v8089_v11 = vld [vmem:[#allocation5 + $0xf58] sm:$0xf]  ;;  %v7834_v16 = vor.u32 %v9615_v9, %v7833_v7  ;;  %3911 = vmatpush.bf16.msrb.mxu1 %v7578_v15 }
 0x29b   :  { %v9679_v12 = vld [vmem:[#allocation5 + $0xf74] sm:$0xf0] }
 0x29c   :  { %v7289_v14 = vld [vmem:[#allocation5 + $0x918] sm:$0xf]  ;;  %v8090_v8 = vor.u32 %v9679_v12, %v8089_v11  ;;  %3924 = vmatpush.bf16.msrb.mxu2 %v7834_v16  ;;  %v3686_v48 = vpop.f32.mrf.mxu3 }
 0x29d   :  { %v9479_v19 = vld [vmem:[#allocation5 + $0x934] sm:$0xf0] }
 0x29e   :  { %v7545_v20 = vld [vmem:[#allocation5 + $0xb18] sm:$0xf]  ;;  %v7290_v28 = vor.u32 %v9479_v19, %v7289_v14  ;;  %3937 = vmatpush.bf16.msrb.mxu3 %v8090_v8  ;;  %v3660_v14 = vpop.f32.mrf.mxu1 }
 0x29f   :  { %v9543_v23 = vld [vmem:[#allocation5 + $0xb34] sm:$0xf0]  ;;  %v9291_v14 = vld [vmem:[#allocation5 + $0x35c] sm:$0xf] }
 0x2a0   :  { %v7801_v24 = vld [vmem:[#allocation5 + $0xd18] sm:$0xf]  ;;  %v7546_v29 = vor.u32 %v9543_v23, %v7545_v20  ;;  %3899 = vmatpush.bf16.msrb.mxu0 %v7290_v28  ;;  %v3697_v48 = vpop.f32.mrf.mxu0 }
 0x2a1   :  { %v9607_v25 = vld [vmem:[#allocation5 + $0xd34] sm:$0xf0] }
 0x2a2   :  { %v8057_v26 = vld [vmem:[#allocation5 + $0xf18] sm:$0xf]  ;;  %v7802_v30 = vor.u32 %v9607_v25, %v7801_v24  ;;  %3912 = vmatpush.bf16.msrb.mxu1 %v7546_v29 }
 0x2a3   :  { %v9671_v27 = vld [vmem:[#allocation5 + $0xf34] sm:$0xf0] }
 0x2a4   :  { %v7257_v31 = vld [vmem:[#allocation5 + $0x8d8] sm:$0xf]  ;;  %v8058_v36 = vor.u32 %v9671_v27, %v8057_v26  ;;  %3925 = vmatpush.bf16.msrb.mxu2 %v7802_v30  ;;  %v3673_v30 = vpop.f32.mrf.mxu2 }
 0x2a5   :  { %v9471_v32 = vld [vmem:[#allocation5 + $0x8f4] sm:$0xf0]  ;;  %v9347_v30 = vld [vmem:[#allocation5 + $0x51c] sm:$0xf] }
 0x2a6   :  { %v7513_v33 = vld [vmem:[#allocation5 + $0xad8] sm:$0xf]  ;;  %v7258_v44 = vor.u32 %v9471_v32, %v7257_v31  ;;  %3938 = vmatpush.bf16.msrb.mxu3 %v8058_v36  ;;  %v9243_v36 = vld [vmem:[#allocation5 + $0x1dc] sm:$0xf] }
 0x2a7   :  { %v9535_v37 = vld [vmem:[#allocation5 + $0xaf4] sm:$0xf0] }
 0x2a8   :  { %v7769_v2 = vld [vmem:[#allocation5 + $0xcd8] sm:$0xf]  ;;  %v7514_v45 = vor.u32 %v9535_v37, %v7513_v33  ;;  %3900 = vmatpush.bf16.msrb.mxu0 %v7258_v44  ;;  %v6363_v37 = vld [vmem:[#allocation5 + $0x1f8] sm:$0xf0] }
 0x2a9   :  { %v9599_v50 = vld [vmem:[#allocation5 + $0xcf4] sm:$0xf0] }
 0x2aa   :  { %v8025_v40 = vld [vmem:[#allocation5 + $0xed8] sm:$0xf]  ;;  %v7770_v57 = vor.u32 %v9599_v50, %v7769_v2  ;;  %3913 = vmatpush.bf16.msrb.mxu1 %v7514_v45  ;;  %v9307_v2 = vld [vmem:[#allocation5 + $0x3dc] sm:$0xf] }
 0x2ab   :  { %v9663_v42 = vld [vmem:[#allocation5 + $0xef4] sm:$0xf0] }
 0x2ac   :  { %v7225_v47 = vld [vmem:[#allocation5 + $0x898] sm:$0xf]  ;;  %v8026_v55 = vor.u32 %v9663_v42, %v8025_v40  ;;  %3926 = vmatpush.bf16.msrb.mxu2 %v7770_v57  ;;  %v6619_v40 = vld [vmem:[#allocation5 + $0x3f8] sm:$0xf0] }
 0x2ad   :  { %v9463_v51 = vld [vmem:[#allocation5 + $0x8b4] sm:$0xf0]  ;;  %v9371_v42 = vld [vmem:[#allocation5 + $0x5dc] sm:$0xf]  ;;  %v6622_v54 = vor.u32 %v9307_v2, %v6619_v40 }
 0x2ae   :  { %v7481_v52 = vld [vmem:[#allocation5 + $0xa98] sm:$0xf]  ;;  %v7226_v4 = vor.u32 %v9463_v51, %v7225_v47  ;;  %3939 = vmatpush.bf16.msrb.mxu3 %v8026_v55  ;;  %v9435_v57 = vld [vmem:[#allocation5 + $0x7dc] sm:$0xf]  ;;  %v6878_v55 = vor.u32 %v9371_v42, %v6875_v43  ;;  %v3698_v42 = vadd.f32 %v3697_v48, %v10292_v5  ;;  %v3710_v43 = vpop.f32.mrf.mxu1 }
 0x2af   :  { %v9527_v56 = vld [vmem:[#allocation5 + $0xab4] sm:$0xf0]  ;;  %v7131_v47 = vld [vmem:[#allocation5 + $0x7f8] sm:$0xf0] }
 0x2b0   :  { %v7737_v58 = vld [vmem:[#allocation5 + $0xc98] sm:$0xf]  ;;  %v7482_v7 = vor.u32 %v9527_v56, %v7481_v52  ;;  %3901 = vmatpush.bf16.msrb.mxu0 %v7226_v4  ;;  %v6366_v52 = vor.u32 %v9243_v36, %v6363_v37  ;;  %v9235_v56 = vld [vmem:[#allocation5 + $0x19c] sm:$0xf]  ;;  %v7134_v61 = vor.u32 %v9435_v57, %v7131_v47 }
 0x2b1   :  { %v9591_v59 = vld [vmem:[#allocation5 + $0xcb4] sm:$0xf0]  ;;  %v9427_v4 = vld [vmem:[#allocation5 + $0x79c] sm:$0xf] }
 0x2b2   :  { %v7993_v63 = vld [vmem:[#allocation5 + $0xe98] sm:$0xf]  ;;  %v7738_v9 = vor.u32 %v9591_v59, %v7737_v58  ;;  %3914 = vmatpush.bf16.msrb.mxu1 %v7482_v7  ;;  %v6331_v58 = vld [vmem:[#allocation5 + $0x1b8] sm:$0xf0] }
 0x2b3   :  { %v9655_v3 = vld [vmem:[#allocation5 + $0xeb4] sm:$0xf0]  ;;  %v9299_v59 = vld [vmem:[#allocation5 + $0x39c] sm:$0xf]  ;;  %v6334_v7 = vor.u32 %v9235_v56, %v6331_v58 }
 0x2b4   :  { %v7193_v11 = vld [vmem:[#allocation5 + $0x858] sm:$0xf]  ;;  %v7994_v15 = vor.u32 %v9655_v3, %v7993_v63  ;;  %3927 = vmatpush.bf16.msrb.mxu2 %v7738_v9  ;;  %v9363_v63 = vld [vmem:[#allocation5 + $0x59c] sm:$0xf]  ;;  %v6590_v9 = vor.u32 %v9299_v59, %v6587_v62 }
 0x2b5   :  { %v9455_v12 = vld [vmem:[#allocation5 + $0x874] sm:$0xf0]  ;;  %v6843_v3 = vld [vmem:[#allocation5 + $0x5b8] sm:$0xf0] }
 0x2b6   :  { %v7449_v13 = vld [vmem:[#allocation5 + $0xa58] sm:$0xf]  ;;  %v7194_v23 = vor.u32 %v9455_v12, %v7193_v11  ;;  %3940 = vmatpush.bf16.msrb.mxu3 %v7994_v15  ;;  %v6846_v11 = vor.u32 %v9363_v63, %v6843_v3  ;;  %v9227_v12 = vld [vmem:[#allocation5 + $0x15c] sm:$0xf]  ;;  %v7102_v15 = vor.u32 %v9427_v4, %v7099_v6  ;;  %v3723_v63 = vpop.f32.mrf.mxu2 }
 0x2b7   :  { %v9519_v16 = vld [vmem:[#allocation5 + $0xa74] sm:$0xf0]  ;;  %v9211_v2 = vld [vmem:[#allocation5 + $0xdc] sm:$0xf] }
 0x2b8   :  { %v7705_v19 = vld [vmem:[#allocation5 + $0xc58] sm:$0xf]  ;;  %v7450_v26 = vor.u32 %v9519_v16, %v7449_v13  ;;  %3902 = vmatpush.bf16.msrb.mxu0 %v7194_v23  ;;  %v6299_v13 = vld [vmem:[#allocation5 + $0x178] sm:$0xf0] }
 0x2b9   :  { %v9583_v20 = vld [vmem:[#allocation5 + $0xc74] sm:$0xf0]  ;;  %v6555_v16 = vld [vmem:[#allocation5 + $0x378] sm:$0xf0]  ;;  %v6302_v23 = vor.u32 %v9227_v12, %v6299_v13 }
 0x2ba   :  { %v7961_v22 = vld [vmem:[#allocation5 + $0xe58] sm:$0xf]  ;;  %v7706_v27 = vor.u32 %v9583_v20, %v7705_v19  ;;  %3915 = vmatpush.bf16.msrb.mxu1 %v7450_v26  ;;  %v9355_v19 = vld [vmem:[#allocation5 + $0x55c] sm:$0xf] }
 0x2bb   :  { %v9647_v8 = vld [vmem:[#allocation5 + $0xe74] sm:$0xf0]  ;;  %v6811_v20 = vld [vmem:[#allocation5 + $0x578] sm:$0xf0] }
 0x2bc   :  { %v7161_v24 = vld [vmem:[#allocation5 + $0x818] sm:$0xf]  ;;  %v7962_v31 = vor.u32 %v9647_v8, %v7961_v22  ;;  %3928 = vmatpush.bf16.msrb.mxu2 %v7706_v27  ;;  %v9419_v22 = vld [vmem:[#allocation5 + $0x75c] sm:$0xf] }
 0x2bd   :  { %v9447_v25 = vld [vmem:[#allocation5 + $0x834] sm:$0xf0]  ;;  %v7067_v8 = vld [vmem:[#allocation5 + $0x778] sm:$0xf0] }
 0x2be   :  { %v7417_v28 = vld [vmem:[#allocation5 + $0xa18] sm:$0xf]  ;;  %v7162_v50 = vor.u32 %v9447_v25, %v7161_v24  ;;  %3941 = vmatpush.bf16.msrb.mxu3 %v7962_v31  ;;  %v6558_v24 = vor.u32 %v9291_v14, %v6555_v16  ;;  %v6814_v25 = vor.u32 %v9355_v19, %v6811_v20  ;;  %v9219_v26 = vld [vmem:[#allocation5 + $0x11c] sm:$0xf] }
 0x2bf   :  { %v9511_v1 = vld [vmem:[#allocation5 + $0xa34] sm:$0xf0]  ;;  %v6267_v27 = vld [vmem:[#allocation5 + $0x138] sm:$0xf0] }
 0x2c0   :  { %v7673_v29 = vld [vmem:[#allocation5 + $0xc18] sm:$0xf]  ;;  %v7418_v44 = vor.u32 %v9511_v1, %v7417_v28  ;;  %3903 = vmatpush.bf16.msrb.mxu0 %v7162_v50  ;;  %v9283_v28 = vld [vmem:[#allocation5 + $0x31c] sm:$0xf]  ;;  %v7070_v1 = vor.u32 %v9419_v22, %v7067_v8 }
 0x2c1   :  { %v9575_v32 = vld [vmem:[#allocation5 + $0xc34] sm:$0xf0]  ;;  %v6779_v31 = vld [vmem:[#allocation5 + $0x538] sm:$0xf0] }
 0x2c2   :  { %v7929_v33 = vld [vmem:[#allocation5 + $0xe18] sm:$0xf]  ;;  %v7674_v45 = vor.u32 %v9575_v32, %v7673_v29  ;;  %3916 = vmatpush.bf16.msrb.mxu1 %v7418_v44  ;;  %v6523_v29 = vld [vmem:[#allocation5 + $0x338] sm:$0xf0]  ;;  %v6782_v37 = vor.u32 %v9347_v30, %v6779_v31 }
 0x2c3   :  { %v9639_v34 = vld [vmem:[#allocation5 + $0xe34] sm:$0xf0]  ;;  %3904 = vmatmul.bf16.vlgmr.msrb.gmra.mxu0 %v10207_v38  ;;  %v9411_v32 = vld [vmem:[#allocation5 + $0x71c] sm:$0xf]  ;;  %v6526_v36 = vor.u32 %v9283_v28, %v6523_v29 }
 0x2c4   :  { %v7930_v51 = vor.u32 %v9639_v34, %v7929_v33  ;;  %3929 = vmatpush.bf16.msrb.mxu2 %v7674_v45  ;;  %3948 = vmatpush.bf16.msra.mxu0 %v6366_v52  ;;  %v7035_v33 = vld [vmem:[#allocation5 + $0x738] sm:$0xf0]  ;;  %v6270_v34 = vor.u32 %v9219_v26, %v6267_v27 }
 0x2c5   :  { %3917 = vmatmul.bf16.vlgmr.msrb.gmra.mxu1 %v10211_v41  ;;  %v6235_v50 = vld [vmem:[#allocation5 + $0xf8] sm:$0xf0]  ;;  %v7038_v44 = vor.u32 %v9411_v32, %v7035_v33 }
 0x2c6   :  { %3942 = vmatpush.bf16.msrb.mxu3 %v7930_v51  ;;  %3961 = vmatpush.bf16.msra.mxu1 %v6622_v54  ;;  %v9275_v40 = vld [vmem:[#allocation5 + $0x2dc] sm:$0xf]  ;;  %v3711_v54 = vadd.f32 %v3710_v43, %v3698_v42 }
 0x2c7   :  { %3930 = vmatmul.bf16.vlgmr.msrb.gmra.mxu2 %v10205_v35  ;;  %v6491_v45 = vld [vmem:[#allocation5 + $0x2f8] sm:$0xf0] }
 0x2c8   :  { %3974 = vmatpush.bf16.msra.mxu2 %v6878_v55  ;;  %3949 = vmatpush.bf16.msra.mxu0 %v6334_v7  ;;  %v9339_v57 = vld [vmem:[#allocation5 + $0x4dc] sm:$0xf]  ;;  %v6238_v55 = vor.u32 %v9211_v2, %v6235_v50  ;;  %v6494_v56 = vor.u32 %v9275_v40, %v6491_v45  ;;  %v3724_v7 = vadd.f32 %v3723_v63, %v3711_v54 }
 0x2c9   :  { %3943 = vmatmul.bf16.vlgmr.msrb.gmra.mxu3 %v10209_v39  ;;  %v6747_v47 = vld [vmem:[#allocation5 + $0x4f8] sm:$0xf0] }
 0x2ca   :  { %3987 = vmatpush.bf16.msra.mxu3 %v7134_v61  ;;  %3962 = vmatpush.bf16.msra.mxu1 %v6590_v9  ;;  %v9403_v51 = vld [vmem:[#allocation5 + $0x6dc] sm:$0xf]  ;;  %v6750_v58 = vor.u32 %v9339_v57, %v6747_v47  ;;  %v3736_v9 = vpop.f32.mrf.mxu3 }
 0x2cb   :  { %v7003_v52 = vld [vmem:[#allocation5 + $0x6f8] sm:$0xf0]  ;;  %v10299_v14 = vadd.f32 %v3736_v9, %v3724_v7 }
 0x2cc   :  { %3975 = vmatpush.bf16.msra.mxu2 %v6846_v11  ;;  %3950 = vmatpush.bf16.msra.mxu0 %v6302_v23  ;;  %v9203_v59 = vld [vmem:[#allocation5 + $0x9c] sm:$0xf]  ;;  %v7006_v5 = vor.u32 %v9403_v51, %v7003_v52  ;;  %v3712_v23 = vpop.f32.mrf.mxu1 }
 0x2cd   :  { %v6203_v61 = vld [vmem:[#allocation5 + $0xb8] sm:$0xf0]  ;;  %vm4056_vm4 = vcmp.gt.f32.partialorder %v10299_v14, 0.0 }
 0x2ce   :  { %3988 = vmatpush.bf16.msra.mxu3 %v7102_v15  ;;  %3963 = vmatpush.bf16.msra.mxu1 %v6558_v24  ;;  %v9267_v62 = vld [vmem:[#allocation5 + $0x29c] sm:$0xf]  ;;  %v6206_v13 = vor.u32 %v9203_v59, %v6203_v61  ;;  %v3699_v15 = vpop.f32.mrf.mxu0 }
 0x2cf   :  { %v6459_v3 = vld [vmem:[#allocation5 + $0x2b8] sm:$0xf0] }
 0x2d0   :  { %3976 = vmatpush.bf16.msra.mxu2 %v6814_v25  ;;  %3951 = vmatpush.bf16.msra.mxu0 %v6270_v34  ;;  %v9331_v4 = vld [vmem:[#allocation5 + $0x49c] sm:$0xf]  ;;  %v6462_v16 = vor.u32 %v9267_v62, %v6459_v3 }
 0x2d1   :  { %v6715_v6 = vld [vmem:[#allocation5 + $0x4b8] sm:$0xf0] }
 0x2d2   :  { %3989 = vmatpush.bf16.msra.mxu3 %v7070_v1  ;;  %3964 = vmatpush.bf16.msra.mxu1 %v6526_v36  ;;  %v9395_v11 = vld [vmem:[#allocation5 + $0x69c] sm:$0xf]  ;;  %v6718_v19 = vor.u32 %v9331_v4, %v6715_v6  ;;  %v3738_v43 = vpop.f32.mrf.mxu3 }
 0x2d3   :  { %v6971_v12 = vld [vmem:[#allocation5 + $0x6b8] sm:$0xf0] }
 0x2d4   :  { %3977 = vmatpush.bf16.msra.mxu2 %v6782_v37  ;;  %3952 = vmatpush.bf16.msra.mxu0 %v6238_v55  ;;  %v9195_v20 = vld [vmem:[#allocation5 + $0x5c] sm:$0xf]  ;;  %v6974_v24 = vor.u32 %v9395_v11, %v6971_v12  ;;  %v3725_v37 = vpop.f32.mrf.mxu2 }
 0x2d5   :  { %v6171_v22 = vld [vmem:[#allocation5 + $0x78] sm:$0xf0] }
 0x2d6   :  { %3990 = vmatpush.bf16.msra.mxu3 %v7038_v44  ;;  %3965 = vmatpush.bf16.msra.mxu1 %v6494_v56  ;;  %v9259_v8 = vld [vmem:[#allocation5 + $0x25c] sm:$0xf]  ;;  %v6174_v29 = vor.u32 %v9195_v20, %v6171_v22 }
 0x2d7   :  { %v6427_v25 = vld [vmem:[#allocation5 + $0x278] sm:$0xf0] }
 0x2d8   :  { %3978 = vmatpush.bf16.msra.mxu2 %v6750_v58  ;;  %v9323_v26 = vld [vmem:[#allocation5 + $0x45c] sm:$0xf]  ;;  %3953 = vmatpush.bf16.msra.mxu0 %v6206_v13  ;;  %v6430_v32 = vor.u32 %v9259_v8, %v6427_v25 }
 0x2d9   :  { %v6683_v27 = vld [vmem:[#allocation5 + $0x478] sm:$0xf0] }
 0x2da   :  { %3991 = vmatpush.bf16.msra.mxu3 %v7006_v5  ;;  %v9387_v28 = vld [vmem:[#allocation5 + $0x65c] sm:$0xf]  ;;  %3966 = vmatpush.bf16.msra.mxu1 %v6462_v16  ;;  %v6686_v33 = vor.u32 %v9323_v26, %v6683_v27 }
 0x2db   :  { %v6939_v1 = vld [vmem:[#allocation5 + $0x678] sm:$0xf0] }
 0x2dc   :  { %v9187_v30 = vld [vmem:[#allocation5 + $0x1c] sm:$0xf]  ;;  %3979 = vmatpush.bf16.msra.mxu2 %v6718_v19  ;;  %v6942_v2 = vor.u32 %v9387_v28, %v6939_v1  ;;  %3954 = vmatpush.bf16.msra.mxu0 %v6174_v29 }
 0x2dd   :  { %v6139_v31 = vld [vmem:[#allocation5 + $0x38] sm:$0xf0] }
 0x2de   :  { %v9251_v34 = vld [vmem:[#allocation5 + $0x21c] sm:$0xf]  ;;  %3992 = vmatpush.bf16.msra.mxu3 %v6974_v24  ;;  %v6142_v47 = vor.u32 %v9187_v30, %v6139_v31  ;;  %3967 = vmatpush.bf16.msra.mxu1 %v6430_v32 }
 0x2df   :  { %v6395_v48 = vld [vmem:[#allocation5 + $0x238] sm:$0xf0] }
 0x2e0   :  { %v9315_v36 = vld [vmem:[#allocation5 + $0x41c] sm:$0xf]  ;;  %3980 = vmatpush.bf16.msra.mxu2 %v6686_v33  ;;  %v6398_v55 = vor.u32 %v9251_v34, %v6395_v48  ;;  %3955 = vmatpush.bf16.msra.mxu0 %v6142_v47 }
 0x2e1   :  { %v6651_v50 = vld [vmem:[#allocation5 + $0x438] sm:$0xf0] }
 0x2e2   :  { %v9379_v40 = vld [vmem:[#allocation5 + $0x61c] sm:$0xf]  ;;  %v6654_v56 = vor.u32 %v9315_v36, %v6651_v50  ;;  %3993 = vmatpush.bf16.msra.mxu3 %v6942_v2  ;;  %3968 = vmatpush.bf16.msra.mxu1 %v6398_v55  ;;  %v10305_v50 = vpop.f32.mrf.mxu0 }
 0x2e3   :  { %v6907_v42 = vld [vmem:[#allocation5 + $0x638] sm:$0xf0]  ;;  %3956 = vmatmul.bf16.vlgmr.msra.gmra.mxu0 %v10196_v10 }
 0x2e4   :  { %v9499_v44 = vld [vmem:[#allocation5 + $0x9dc] sm:$0xf]  ;;  %v6910_v61 = vor.u32 %v9379_v40, %v6907_v42  ;;  %3981 = vmatpush.bf16.msra.mxu2 %v6654_v56 }
 0x2e5   :  { %v7387_v45 = vld [vmem:[#allocation5 + $0x9f8] sm:$0xf0]  ;;  %3969 = vmatmul.bf16.vlgmr.msra.gmra.mxu1 %v10200_v18 }
 0x2e6   :  { %v9563_v57 = vld [vmem:[#allocation5 + $0xbdc] sm:$0xf]  ;;  %v7390_v62 = vor.u32 %v9499_v44, %v7387_v45  ;;  %3994 = vmatpush.bf16.msra.mxu3 %v6910_v61  ;;  %v10307_v45 = vpop.f32.mrf.mxu1 }
 0x2e7   :  { %v7643_v51 = vld [vmem:[#allocation5 + $0xbf8] sm:$0xf0]  ;;  %3982 = vmatmul.bf16.vlgmr.msra.gmra.mxu2 %v10193_v0 }
 0x2e8   :  { %v9627_v52 = vld [vmem:[#allocation5 + $0xddc] sm:$0xf]  ;;  %v7646_v63 = vor.u32 %v9563_v57, %v7643_v51  ;;  %4000 = vmatpush.bf16.msrb.mxu0 %v7390_v62 }
 0x2e9   :  { %v7899_v54 = vld [vmem:[#allocation5 + $0xdf8] sm:$0xf0]  ;;  %3995 = vmatmul.bf16.vlgmr.msra.gmra.mxu3 %v10198_v17 }
 0x2ea   :  { %v9691_v58 = vld [vmem:[#allocation5 + $0xfdc] sm:$0xf]  ;;  %v7902_v5 = vor.u32 %v9627_v52, %v7899_v54  ;;  %4013 = vmatpush.bf16.msrb.mxu1 %v7646_v63 }
 0x2eb   :  { %v8155_v59 = vld [vmem:[#allocation5 + $0xff8] sm:$0xf0] }
 0x2ec   :  { %v9491_v3 = vld [vmem:[#allocation5 + $0x99c] sm:$0xf]  ;;  %v8158_v7 = vor.u32 %v9691_v58, %v8155_v59  ;;  %4026 = vmatpush.bf16.msrb.mxu2 %v7902_v5  ;;  %v10309_v5 = vpop.f32.mrf.mxu2 }
 0x2ed   :  { %v7355_v4 = vld [vmem:[#allocation5 + $0x9b8] sm:$0xf0] }
 0x2ee   :  { %v9555_v6 = vld [vmem:[#allocation5 + $0xb9c] sm:$0xf]  ;;  %v7358_v16 = vor.u32 %v9491_v3, %v7355_v4  ;;  %4039 = vmatpush.bf16.msrb.mxu3 %v8158_v7 }
 0x2ef   :  { %v7611_v9 = vld [vmem:[#allocation5 + $0xbb8] sm:$0xf0] }
 0x2f0   :  { %v9619_v11 = vld [vmem:[#allocation5 + $0xd9c] sm:$0xf]  ;;  %v7614_v19 = vor.u32 %v9555_v6, %v7611_v9  ;;  %4001 = vmatpush.bf16.msrb.mxu0 %v7358_v16  ;;  %v10311_v9 = vpop.f32.mrf.mxu3 }
 0x2f1   :  { %v7867_v12 = vld [vmem:[#allocation5 + $0xdb8] sm:$0xf0] }
 0x2f2   :  { %v9683_v13 = vld [vmem:[#allocation5 + $0xf9c] sm:$0xf]  ;;  %v7870_v20 = vor.u32 %v9619_v11, %v7867_v12  ;;  %4014 = vmatpush.bf16.msrb.mxu1 %v7614_v19 }
 0x2f3   :  { %v8123_v15 = vld [vmem:[#allocation5 + $0xfb8] sm:$0xf0] }
 0x2f4   :  { %v9483_v22 = vld [vmem:[#allocation5 + $0x95c] sm:$0xf]  ;;  %v8126_v24 = vor.u32 %v9683_v13, %v8123_v15  ;;  %4027 = vmatpush.bf16.msrb.mxu2 %v7870_v20  ;;  %v3751_v15 = vpop.f32.mrf.mxu0 }
 0x2f5   :  { %v7323_v8 = vld [vmem:[#allocation5 + $0x978] sm:$0xf0]  ;;  %v9818_v15 = vld [vmem:[#allocation8 + $0x3cc] sm:$0xf0] }
 0x2f6   :  { %v9547_v23 = vld [vmem:[#allocation5 + $0xb5c] sm:$0xf]  ;;  %v7326_v29 = vor.u32 %v9483_v22, %v7323_v8  ;;  %4040 = vmatpush.bf16.msrb.mxu3 %v8126_v24 }
 0x2f7   :  { %v7579_v25 = vld [vmem:[#allocation5 + $0xb78] sm:$0xf0] }
 0x2f8   :  { %v9611_v26 = vld [vmem:[#allocation5 + $0xd5c] sm:$0xf]  ;;  %v7582_v30 = vor.u32 %v9547_v23, %v7579_v25  ;;  %4002 = vmatpush.bf16.msrb.mxu0 %v7326_v29  ;;  %v3764_v23 = vpop.f32.mrf.mxu1 }
 0x2f9   :  { %v7835_v27 = vld [vmem:[#allocation5 + $0xd78] sm:$0xf0]  ;;  %v8369_v23 = vld [vmem:[#allocation8 + $0x1a0] sm:$0xf] }
 0x2fa   :  { %v9675_v28 = vld [vmem:[#allocation5 + $0xf5c] sm:$0xf]  ;;  %v7838_v31 = vor.u32 %v9611_v26, %v7835_v27  ;;  %4015 = vmatpush.bf16.msrb.mxu1 %v7582_v30 }
 0x2fb   :  { %v8091_v1 = vld [vmem:[#allocation5 + $0xf78] sm:$0xf0] }
 0x2fc   :  { %v9475_v32 = vld [vmem:[#allocation5 + $0x91c] sm:$0xf]  ;;  %v8094_v34 = vor.u32 %v9675_v28, %v8091_v1  ;;  %4028 = vmatpush.bf16.msrb.mxu2 %v7838_v31 }
 0x2fd   :  { %v7291_v33 = vld [vmem:[#allocation5 + $0x938] sm:$0xf0] }
 0x2fe   :  { %v9539_v0 = vld [vmem:[#allocation5 + $0xb1c] sm:$0xf]  ;;  %v7294_v17 = vor.u32 %v9475_v32, %v7291_v33  ;;  %4041 = vmatpush.bf16.msrb.mxu3 %v8094_v34 }
 0x2ff   :  { %v7547_v48 = vld [vmem:[#allocation5 + $0xb38] sm:$0xf0] }
 0x300   :  { %v9603_v36 = vld [vmem:[#allocation5 + $0xd1c] sm:$0xf]  ;;  %v7550_v18 = vor.u32 %v9539_v0, %v7547_v48  ;;  %4003 = vmatpush.bf16.msrb.mxu0 %v7294_v17 }
 0x301   :  { %v7803_v37 = vld [vmem:[#allocation5 + $0xd38] sm:$0xf0] }
 0x302   :  { %v9667_v2 = vld [vmem:[#allocation5 + $0xf1c] sm:$0xf]  ;;  %v7806_v40 = vor.u32 %v9603_v36, %v7803_v37  ;;  %4016 = vmatpush.bf16.msrb.mxu1 %v7550_v18  ;;  %v3777_v36 = vpop.f32.mrf.mxu2  ;;  %v3790_v18 = vpop.f32.mrf.mxu3 }
 0x303   :  { %v8059_v10 = vld [vmem:[#allocation5 + $0xf38] sm:$0xf0]  ;;  %v8609_v36 = vld [vmem:[#allocation8 + $0x380] sm:$0xf]  ;;  %v9710_v18 = vld [vmem:[#allocation8 + $0x6c] sm:$0xf0] }
 0x304   :  { %v9467_v42 = vld [vmem:[#allocation5 + $0x8dc] sm:$0xf]  ;;  %v8062_v57 = vor.u32 %v9667_v2, %v8059_v10  ;;  %4029 = vmatpush.bf16.msrb.mxu2 %v7806_v40  ;;  %v8273_v40 = vld [vmem:[#allocation8 + $0xe0] sm:$0xf] }
 0x305   :  { %v7259_v43 = vld [vmem:[#allocation5 + $0x8f8] sm:$0xf0] }
 0x306   :  { %v9531_v44 = vld [vmem:[#allocation5 + $0xadc] sm:$0xf]  ;;  %v7262_v56 = vor.u32 %v9467_v42, %v7259_v43  ;;  %4042 = vmatpush.bf16.msrb.mxu3 %v8062_v57  ;;  %v9726_v42 = vld [vmem:[#allocation8 + $0xec] sm:$0xf0]  ;;  %v8401_v43 = vld [vmem:[#allocation8 + $0x1e0] sm:$0xf] }
 0x307   :  { %v7515_v47 = vld [vmem:[#allocation5 + $0xaf8] sm:$0xf0]  ;;  %v9758_v57 = vld [vmem:[#allocation8 + $0x1ec] sm:$0xf0] }
 0x308   :  { %v9595_v51 = vld [vmem:[#allocation5 + $0xcdc] sm:$0xf]  ;;  %v7518_v58 = vor.u32 %v9531_v44, %v7515_v47  ;;  %4004 = vmatpush.bf16.msrb.mxu0 %v7262_v56  ;;  %v8529_v47 = vld [vmem:[#allocation8 + $0x2e0] sm:$0xf]  ;;  %v9822_v56 = vld [vmem:[#allocation8 + $0x3ec] sm:$0xf0] }
 0x309   :  { %v7771_v52 = vld [vmem:[#allocation5 + $0xcf8] sm:$0xf0] }
 0x30a   :  { %v9659_v54 = vld [vmem:[#allocation5 + $0xedc] sm:$0xf]  ;;  %v7774_v59 = vor.u32 %v9595_v51, %v7771_v52  ;;  %4017 = vmatpush.bf16.msrb.mxu1 %v7518_v58  ;;  %v9790_v51 = vld [vmem:[#allocation8 + $0x2ec] sm:$0xf0] }
 0x30b   :  { %v8027_v55 = vld [vmem:[#allocation5 + $0xef8] sm:$0xf0] }
 0x30c   :  { %v9459_v61 = vld [vmem:[#allocation5 + $0x89c] sm:$0xf]  ;;  %v8030_v3 = vor.u32 %v9659_v54, %v8027_v55  ;;  %4030 = vmatpush.bf16.msrb.mxu2 %v7774_v59  ;;  %v8657_v55 = vld [vmem:[#allocation8 + $0x3e0] sm:$0xf]  ;;  %v8274_v59 = vor.u32 %v9726_v42, %v8273_v40  ;;  %v10319_v42 = vpop.f32.mrf.mxu1 }
 0x30d   :  { %v7227_v62 = vld [vmem:[#allocation5 + $0x8b8] sm:$0xf0]  ;;  %v8337_v40 = vld [vmem:[#allocation8 + $0x160] sm:$0xf] }
 0x30e   :  { %v9523_v63 = vld [vmem:[#allocation5 + $0xa9c] sm:$0xf]  ;;  %v7230_v13 = vor.u32 %v9459_v61, %v7227_v62  ;;  %4043 = vmatpush.bf16.msrb.mxu3 %v8030_v3  ;;  %v8402_v61 = vor.u32 %v9758_v57, %v8401_v43  ;;  %v8530_v62 = vor.u32 %v9790_v51, %v8529_v47  ;;  %v9722_v3 = vld [vmem:[#allocation8 + $0xcc] sm:$0xf0]  ;;  %v8465_v57 = vld [vmem:[#allocation8 + $0x260] sm:$0xf] }
 0x30f   :  { %v7483_v4 = vld [vmem:[#allocation5 + $0xab8] sm:$0xf0]  ;;  %v9774_v47 = vld [vmem:[#allocation8 + $0x26c] sm:$0xf0]  ;;  %v8593_v51 = vld [vmem:[#allocation8 + $0x360] sm:$0xf] }
 0x310   :  { %v9587_v6 = vld [vmem:[#allocation5 + $0xc9c] sm:$0xf]  ;;  %v7486_v16 = vor.u32 %v9523_v63, %v7483_v4  ;;  %4005 = vmatpush.bf16.msrb.mxu0 %v7230_v13  ;;  %v8257_v63 = vld [vmem:[#allocation8 + $0xc0] sm:$0xf] }
 0x311   :  { %v7739_v7 = vld [vmem:[#allocation5 + $0xcb8] sm:$0xf0]  ;;  %v8385_v4 = vld [vmem:[#allocation8 + $0x1c0] sm:$0xf] }
 0x312   :  { %v9651_v11 = vld [vmem:[#allocation5 + $0xe9c] sm:$0xf]  ;;  %v7742_v19 = vor.u32 %v9587_v6, %v7739_v7  ;;  %4018 = vmatpush.bf16.msrb.mxu1 %v7486_v16  ;;  %v8658_v6 = vor.u32 %v9822_v56, %v8657_v55  ;;  %v9754_v7 = vld [vmem:[#allocation8 + $0x1cc] sm:$0xf0]  ;;  %v8641_v13 = vld [vmem:[#allocation8 + $0x3c0] sm:$0xf]  ;;  %v8258_v16 = vor.u32 %v9722_v3, %v8257_v63  ;;  %v10322_v63 = vpop.f32.mrf.mxu2 }
 0x313   :  { %v7995_v12 = vld [vmem:[#allocation5 + $0xeb8] sm:$0xf0] }
 0x314   :  { %v9451_v20 = vld [vmem:[#allocation5 + $0x85c] sm:$0xf]  ;;  %v7998_v24 = vor.u32 %v9651_v11, %v7995_v12  ;;  %4031 = vmatpush.bf16.msrb.mxu2 %v7742_v19  ;;  %v8513_v11 = vld [vmem:[#allocation8 + $0x2c0] sm:$0xf]  ;;  %v9786_v12 = vld [vmem:[#allocation8 + $0x2cc] sm:$0xf0]  ;;  %v8386_v19 = vor.u32 %v9754_v7, %v8385_v4 }
 0x315   :  { %v7195_v22 = vld [vmem:[#allocation5 + $0x878] sm:$0xf0]  ;;  %v9738_v4 = vld [vmem:[#allocation8 + $0x14c] sm:$0xf0] }
 0x316   :  { %v9515_v8 = vld [vmem:[#allocation5 + $0xa5c] sm:$0xf]  ;;  %v7198_v29 = vor.u32 %v9451_v20, %v7195_v22  ;;  %4044 = vmatpush.bf16.msrb.mxu3 %v7998_v24  ;;  %v8514_v20 = vor.u32 %v9786_v12, %v8513_v11  ;;  %v8241_v22 = vld [vmem:[#allocation8 + $0xa0] sm:$0xf]  ;;  %v8642_v24 = vor.u32 %v9818_v15, %v8641_v13  ;;  %v9770_v7 = vld [vmem:[#allocation8 + $0x24c] sm:$0xf0]  ;;  %v10324_v11 = vpop.f32.mrf.mxu3 }
 0x317   :  { %v7451_v25 = vld [vmem:[#allocation5 + $0xa78] sm:$0xf0]  ;;  %v8577_v12 = vld [vmem:[#allocation8 + $0x340] sm:$0xf]  ;;  %v9802_v13 = vld [vmem:[#allocation8 + $0x34c] sm:$0xf0] }
 0x318   :  { %v9579_v26 = vld [vmem:[#allocation5 + $0xc5c] sm:$0xf]  ;;  %v7454_v32 = vor.u32 %v9515_v8, %v7451_v25  ;;  %4006 = vmatpush.bf16.msrb.mxu0 %v7198_v29  ;;  %v9718_v8 = vld [vmem:[#allocation8 + $0xac] sm:$0xf0]  ;;  %v4061_v15 = vmul.f32 0.2, %v10253_v46 }
 0x319   :  { %v7707_v27 = vld [vmem:[#allocation5 + $0xc78] sm:$0xf0]  ;;  %v9750_v25 = vld [vmem:[#allocation8 + $0x1ac] sm:$0xf0]  ;;  %v8242_v29 = vor.u32 %v9718_v8, %v8241_v22 }
 0x31a   :  { %v9643_v28 = vld [vmem:[#allocation5 + $0xe5c] sm:$0xf]  ;;  %v7710_v33 = vor.u32 %v9579_v26, %v7707_v27  ;;  %4019 = vmatpush.bf16.msrb.mxu1 %v7454_v32  ;;  %v8497_v26 = vld [vmem:[#allocation8 + $0x2a0] sm:$0xf]  ;;  %v9782_v27 = vld [vmem:[#allocation8 + $0x2ac] sm:$0xf0] }
 0x31b   :  { %v7963_v1 = vld [vmem:[#allocation5 + $0xe78] sm:$0xf0]  ;;  %v8225_v32 = vld [vmem:[#allocation8 + $0x80] sm:$0xf] }
 0x31c   :  { %v9443_v30 = vld [vmem:[#allocation5 + $0x81c] sm:$0xf]  ;;  %v7966_v37 = vor.u32 %v9643_v28, %v7963_v1  ;;  %4032 = vmatpush.bf16.msrb.mxu2 %v7710_v33  ;;  %v8625_v28 = vld [vmem:[#allocation8 + $0x3a0] sm:$0xf]  ;;  %v9814_v1 = vld [vmem:[#allocation8 + $0x3ac] sm:$0xf0] }
 0x31d   :  { %v7163_v31 = vld [vmem:[#allocation5 + $0x838] sm:$0xf0]  ;;  %v8353_v33 = vld [vmem:[#allocation8 + $0x180] sm:$0xf] }
 0x31e   :  { %v9507_v0 = vld [vmem:[#allocation5 + $0xa1c] sm:$0xf]  ;;  %v7166_v44 = vor.u32 %v9443_v30, %v7163_v31  ;;  %4045 = vmatpush.bf16.msrb.mxu3 %v7966_v37  ;;  %v8370_v30 = vor.u32 %v9750_v25, %v8369_v23  ;;  %v8498_v31 = vor.u32 %v9782_v27, %v8497_v26  ;;  %v8177_v23 = vld [vmem:[#allocation8 + $0x20] sm:$0xf]  ;;  %v3816_v26 = vpop.f32.mrf.mxu1  ;;  %v8578_v27 = vor.u32 %v9802_v13, %v8577_v12  ;;  %v9850_v12 = vld [vmem:[#allocation8 + $0x4cc] sm:$0xf0] }
 0x31f   :  { %v7419_v34 = vld [vmem:[#allocation5 + $0xa38] sm:$0xf0]  ;;  %v8305_v25 = vld [vmem:[#allocation8 + $0x120] sm:$0xf] }
 0x320   :  { %v9571_v48 = vld [vmem:[#allocation5 + $0xc1c] sm:$0xf]  ;;  %v7422_v52 = vor.u32 %v9507_v0, %v7419_v34  ;;  %4007 = vmatpush.bf16.msrb.mxu0 %v7166_v44  ;;  %v8626_v0 = vor.u32 %v9814_v1, %v8625_v28  ;;  %v9746_v34 = vld [vmem:[#allocation8 + $0x18c] sm:$0xf0]  ;;  %v8433_v1 = vld [vmem:[#allocation8 + $0x220] sm:$0xf] }
 0x321   :  { %v7675_v2 = vld [vmem:[#allocation5 + $0xc38] sm:$0xf0]  ;;  %v9742_v44 = vld [vmem:[#allocation8 + $0x16c] sm:$0xf0]  ;;  %v8897_v13 = vld [vmem:[#allocation8 + $0x5c0] sm:$0xf] }
 0x322   :  { %v9635_v10 = vld [vmem:[#allocation5 + $0xe1c] sm:$0xf]  ;;  %v7678_v54 = vor.u32 %v9571_v48, %v7675_v2  ;;  %4020 = vmatpush.bf16.msrb.mxu1 %v7422_v52  ;;  %v8481_v48 = vld [vmem:[#allocation8 + $0x280] sm:$0xf]  ;;  %v10317_v2 = vpop.f32.mrf.mxu0  ;;  %v9806_v52 = vld [vmem:[#allocation8 + $0x36c] sm:$0xf0]  ;;  %v8338_v56 = vor.u32 %v9742_v44, %v8337_v40 }
 0x323   :  { %v7931_v17 = vld [vmem:[#allocation5 + $0xe38] sm:$0xf0]  ;;  %4008 = vmatmul.bf16.vlgmr.msrb.gmra.mxu0 %v10207_v38  ;;  %v9714_v38 = vld [vmem:[#allocation8 + $0x8c] sm:$0xf0]  ;;  %v8594_v3 = vor.u32 %v9806_v52, %v8593_v51  ;;  %v8785_v44 = vld [vmem:[#allocation8 + $0x4e0] sm:$0xf] }
 0x324   :  { %v7934_v58 = vor.u32 %v9635_v10, %v7931_v17  ;;  %4033 = vmatpush.bf16.msrb.mxu2 %v7678_v54  ;;  %5630 = vmatpush.bf16.msra.mxu0 %v8274_v59  ;;  %v8226_v37 = vor.u32 %v9714_v38, %v8225_v32  ;;  %v8209_v17 = vld [vmem:[#allocation8 + $0x60] sm:$0xf]  ;;  %v649_v54 = vperm.slane %v10289_v21, 5  ;;  %v4060_v21 = vmul.f32 0.2, %v10239_v49 }
 0x325   :  { %4021 = vmatmul.bf16.vlgmr.msrb.gmra.mxu1 %v10211_v41  ;;  %v9778_v41 = vld [vmem:[#allocation8 + $0x28c] sm:$0xf0]  ;;  %v8210_v55 = vor.u32 %v9710_v18, %v8209_v17  ;;  %v8193_v59 = vld [vmem:[#allocation8 + $0x40] sm:$0xf]  ;;  %v4063_v38 = vmul.f32 0.2, %v10283_v60 }
 0x326   :  { %4046 = vmatpush.bf16.msrb.mxu3 %v7934_v58  ;;  %5643 = vmatpush.bf16.msra.mxu1 %v8402_v61  ;;  %v8482_v10 = vor.u32 %v9778_v41, %v8481_v48  ;;  %v8466_v58 = vor.u32 %v9774_v47, %v8465_v57  ;;  %v9706_v61 = vld [vmem:[#allocation8 + $0x4c] sm:$0xf0]  ;;  %v8545_v18 = vld [vmem:[#allocation8 + $0x300] sm:$0xf] }
 0x327   :  { %4034 = vmatmul.bf16.vlgmr.msrb.gmra.mxu2 %v10205_v35  ;;  %v9810_v35 = vld [vmem:[#allocation8 + $0x38c] sm:$0xf0]  ;;  %v8913_v47 = vld [vmem:[#allocation8 + $0x5e0] sm:$0xf] }
 0x328   :  { %5656 = vmatpush.bf16.msra.mxu2 %v8530_v62  ;;  %5631 = vmatpush.bf16.msra.mxu0 %v8258_v16  ;;  %v8610_v43 = vor.u32 %v9810_v35, %v8609_v36  ;;  %v8321_v62 = vld [vmem:[#allocation8 + $0x140] sm:$0xf]  ;;  %v8194_v16 = vor.u32 %v9706_v61, %v8193_v59  ;;  %v9734_v28 = vld [vmem:[#allocation8 + $0x12c] sm:$0xf0]  ;;  %v4068_v59 = vsel %vm4052_vm0, %v10239_v49, %v4060_v21 }
 0x329   :  { %4047 = vmatmul.bf16.vlgmr.msrb.gmra.mxu3 %v10209_v39  ;;  %v8354_v39 = vor.u32 %v9746_v34, %v8353_v33  ;;  %v8322_v22 = vor.u32 %v9738_v4, %v8321_v62  ;;  %v9798_v32 = vld [vmem:[#allocation8 + $0x32c] sm:$0xf0]  ;;  %v8161_v33 = vld [vmem:[#allocation8] sm:$0xf]  ;;  %v8306_v48 = vor.u32 %v9734_v28, %v8305_v25  ;;  %v4071_v49 = vsel %vm4055_vm3, %v10283_v60, %v4063_v38 }
 0x32a   :  { %5669 = vmatpush.bf16.msra.mxu3 %v8658_v6  ;;  %5644 = vmatpush.bf16.msra.mxu1 %v8386_v19  ;;  %v8449_v6 = vld [vmem:[#allocation8 + $0x240] sm:$0xf]  ;;  %v3803_v19 = vpop.f32.mrf.mxu0  ;;  %v9730_v35 = vld [vmem:[#allocation8 + $0x10c] sm:$0xf0] }
 0x32b   :  { %v8450_v8 = vor.u32 %v9770_v7, %v8449_v6  ;;  %v8289_v36 = vld [vmem:[#allocation8 + $0x100] sm:$0xf]  ;;  %v9762_v17 = vld [vmem:[#allocation8 + $0x20c] sm:$0xf0] }
 0x32c   :  { %5657 = vmatpush.bf16.msra.mxu2 %v8514_v20  ;;  %5632 = vmatpush.bf16.msra.mxu0 %v8242_v29  ;;  %v3750_v20 = vadd.f32 %v10305_v50, %v649_v54  ;;  %v9766_v29 = vld [vmem:[#allocation8 + $0x22c] sm:$0xf0]  ;;  %v9041_v52 = vld [vmem:[#allocation8 + $0x6e0] sm:$0xf] }
 0x32d   :  { %v8434_v41 = vor.u32 %v9766_v29, %v8433_v1  ;;  %v9794_v40 = vld [vmem:[#allocation8 + $0x30c] sm:$0xf0]  ;;  %v8769_v7 = vld [vmem:[#allocation8 + $0x4c0] sm:$0xf] }
 0x32e   :  { %5670 = vmatpush.bf16.msra.mxu3 %v8642_v24  ;;  %5645 = vmatpush.bf16.msra.mxu1 %v8370_v30  ;;  %v9702_v24 = vld [vmem:[#allocation8 + $0x2c] sm:$0xf0]  ;;  %v4062_v30 = vmul.f32 0.2, %v10269_v53  ;;  %v3763_v34 = vadd.f32 %v10307_v45, %v3750_v20  ;;  %v8546_v61 = vor.u32 %v9794_v40, %v8545_v18  ;;  %v10349_v20 = vpack.c.bf16 %v4068_v59, %v4068_v59  ;;  %v8881_v26 = vld [vmem:[#allocation8 + $0x5a0] sm:$0xf] }
 0x32f   :  { %v8178_v50 = vor.u32 %v9702_v24, %v8177_v23  ;;  %v9854_v57 = vld [vmem:[#allocation8 + $0x4ec] sm:$0xf0]  ;;  %v8753_v24 = vld [vmem:[#allocation8 + $0x4a0] sm:$0xf] }
 0x330   :  { %5658 = vmatpush.bf16.msra.mxu2 %v8498_v31  ;;  %5633 = vmatpush.bf16.msra.mxu0 %v8226_v37  ;;  %v8561_v31 = vld [vmem:[#allocation8 + $0x320] sm:$0xf]  ;;  %v9886_v45 = vld [vmem:[#allocation8 + $0x5ec] sm:$0xf0]  ;;  %v8786_v62 = vor.u32 %v9854_v57, %v8785_v44  ;;  %v4070_v4 = vsel %vm4054_vm2, %v10269_v53, %v4062_v30 }
 0x331   :  { %v8417_v37 = vld [vmem:[#allocation8 + $0x200] sm:$0xf]  ;;  %v9918_v54 = vld [vmem:[#allocation8 + $0x6ec] sm:$0xf0] }
 0x332   :  { %5671 = vmatpush.bf16.msra.mxu3 %v8626_v0  ;;  %5646 = vmatpush.bf16.msra.mxu1 %v8354_v39  ;;  %v9698_v0 = vld [vmem:[#allocation8 + $0xc] sm:$0xf0]  ;;  %v3829_v39 = vpop.f32.mrf.mxu2  ;;  %v9042_v6 = vor.u32 %v9918_v54, %v9041_v52  ;;  %v8977_v40 = vld [vmem:[#allocation8 + $0x660] sm:$0xf] }
 0x333   :  { %v8162_v51 = vor.u32 %v9698_v0, %v8161_v33  ;;  %v9882_v21 = vld [vmem:[#allocation8 + $0x5cc] sm:$0xf0]  ;;  %v8993_v0 = vld [vmem:[#allocation8 + $0x680] sm:$0xf] }
 0x334   :  { %5659 = vmatpush.bf16.msra.mxu2 %v8482_v10  ;;  %5634 = vmatpush.bf16.msra.mxu0 %v8210_v55  ;;  %v8562_v10 = vor.u32 %v9798_v32, %v8561_v31  ;;  %v3776_v55 = vadd.f32 %v10309_v5, %v3763_v34  ;;  %v8914_v5 = vor.u32 %v9886_v45, %v8913_v47  ;;  %v9914_v19 = vld [vmem:[#allocation8 + $0x6cc] sm:$0xf0]  ;;  %v8737_v32 = vld [vmem:[#allocation8 + $0x480] sm:$0xf] }
 0x335   :  { %v8898_v60 = vor.u32 %v9882_v21, %v8897_v13  ;;  %v9846_v25 = vld [vmem:[#allocation8 + $0x4ac] sm:$0xf0]  ;;  %v8833_v52 = vld [vmem:[#allocation8 + $0x540] sm:$0xf] }
 0x336   :  { %5672 = vmatpush.bf16.msra.mxu3 %v8610_v43  ;;  %5647 = vmatpush.bf16.msra.mxu1 %v8338_v56  ;;  %v3842_v43 = vpop.f32.mrf.mxu3  ;;  %v8290_v56 = vor.u32 %v9730_v35, %v8289_v36  ;;  %v9910_v28 = vld [vmem:[#allocation8 + $0x6ac] sm:$0xf0]  ;;  %v8754_v29 = vor.u32 %v9846_v25, %v8753_v24  ;;  %v8801_v24 = vld [vmem:[#allocation8 + $0x500] sm:$0xf] }
 0x337   :  { %v9842_v38 = vld [vmem:[#allocation8 + $0x48c] sm:$0xf0] }
 0x338   :  { %5660 = vmatpush.bf16.msra.mxu2 %v8466_v58  ;;  %5635 = vmatpush.bf16.msra.mxu0 %v8194_v16  ;;  %v8418_v58 = vor.u32 %v9762_v17, %v8417_v37  ;;  %v9025_v16 = vld [vmem:[#allocation8 + $0x6c0] sm:$0xf]  ;;  %v9874_v33 = vld [vmem:[#allocation8 + $0x58c] sm:$0xf0]  ;;  %v10366_v17 = vpop.f32.mrf.mxu1 }
 0x339   :  { %v9026_v23 = vor.u32 %v9914_v19, %v9025_v16  ;;  %v9906_v34 = vld [vmem:[#allocation8 + $0x68c] sm:$0xf0]  ;;  %v8721_v37 = vld [vmem:[#allocation8 + $0x460] sm:$0xf]  ;;  %v4064_v16 = vmul.f32 0.2, %v10299_v14 }
 0x33a   :  { %5673 = vmatpush.bf16.msra.mxu3 %v8594_v3  ;;  %5648 = vmatpush.bf16.msra.mxu1 %v8322_v22  ;;  %v4069_v3 = vsel %vm4053_vm1, %v10253_v46, %v4061_v15  ;;  %v3789_v46 = vadd.f32 %v10311_v9, %v3776_v55  ;;  %v10354_v15 = vpack.c.bf16 %v4070_v4, %v4070_v4  ;;  %v9878_v9 = vld [vmem:[#allocation8 + $0x5ac] sm:$0xf0]  ;;  %v10369_v54 = vpop.f32.mrf.mxu2 }
 0x33b   :  { %v10352_v53 = vpack.c.bf16 %v4069_v3, %v4069_v3  ;;  %v8770_v22 = vor.u32 %v9850_v12, %v8769_v7  ;;  %v8882_v30 = vor.u32 %v9878_v9, %v8881_v26  ;;  %v8994_v35 = vor.u32 %v9906_v34, %v8993_v0  ;;  %v9838_v39 = vld [vmem:[#allocation8 + $0x46c] sm:$0xf0]  ;;  %v8817_v7 = vld [vmem:[#allocation8 + $0x520] sm:$0xf] }
 0x33c   :  { %5661 = vmatpush.bf16.msra.mxu2 %v8450_v8  ;;  %5636 = vmatpush.bf16.msra.mxu0 %v8178_v50  ;;  %v10356_v8 = vpack.c.bf16 %v4071_v49, %v4071_v49  ;;  %v3802_v1 = vadd.f32 %v10317_v2, %v3789_v46  ;;  %v8865_v50 = vld [vmem:[#allocation8 + $0x580] sm:$0xf]  ;;  %v8738_v2 = vor.u32 %v9842_v38, %v8737_v32  ;;  %v9870_v18 = vld [vmem:[#allocation8 + $0x56c] sm:$0xf0] }
 0x33d   :  { %v8866_v36 = vor.u32 %v9874_v33, %v8865_v50  ;;  %v9902_v43 = vld [vmem:[#allocation8 + $0x66c] sm:$0xf0]  ;;  %v8945_v49 = vld [vmem:[#allocation8 + $0x620] sm:$0xf]  ;;  %v8403_v50 = vld [vmem:[#allocation8 + $0x1f0] sm:$0xf0] }
 0x33e   :  { %5674 = vmatpush.bf16.msra.mxu3 %v8578_v27  ;;  %5649 = vmatpush.bf16.msra.mxu1 %v8306_v48  ;;  %v9009_v27 = vld [vmem:[#allocation8 + $0x6a0] sm:$0xf]  ;;  %v3815_v48 = vadd.f32 %v10319_v42, %v3802_v1  ;;  %v8722_v42 = vor.u32 %v9838_v39, %v8721_v37  ;;  %v8978_v47 = vor.u32 %v9902_v43, %v8977_v40  ;;  %v9834_v45 = vld [vmem:[#allocation8 + $0x44c] sm:$0xf0]  ;;  %v10371_v59 = vpop.f32.mrf.mxu3  ;;  %v8259_v40 = vld [vmem:[#allocation8 + $0xd0] sm:$0xf0] }
 0x33f   :  { %v9010_v31 = vor.u32 %v9910_v28, %v9009_v27  ;;  %v9866_v55 = vld [vmem:[#allocation8 + $0x54c] sm:$0xf0]  ;;  %v8929_v27 = vld [vmem:[#allocation8 + $0x600] sm:$0xf]  ;;  %v4072_v39 = vsel %vm4056_vm4, %v10299_v14, %v4064_v16 }
 0x340   :  { %5662 = vmatpush.bf16.msra.mxu2 %v8434_v41  ;;  %5637 = vmatpush.bf16.msra.mxu0 %v8162_v51  ;;  %v10364_v41 = vpop.f32.mrf.mxu0  ;;  %v3828_v44 = vadd.f32 %v10322_v63, %v3815_v48  ;;  %v8705_v51 = vld [vmem:[#allocation8 + $0x440] sm:$0xf]  ;;  %v8834_v3 = vor.u32 %v9866_v55, %v8833_v52  ;;  %v3868_v12 = vpop.f32.mrf.mxu1  ;;  %v9862_v13 = vld [vmem:[#allocation8 + $0x52c] sm:$0xf0]  ;;  %v9788_v48 = vld [vmem:[#allocation8 + $0x2e4] sm:$0xf] }
 0x341   :  { %v8706_v63 = vor.u32 %v9834_v45, %v8705_v51  ;;  %v9894_v21 = vld [vmem:[#allocation8 + $0x62c] sm:$0xf0]  ;;  %v8818_v25 = vor.u32 %v9862_v13, %v8817_v7  ;;  %v9169_v33 = vld [vmem:[#allocation8 + $0x7e0] sm:$0xf]  ;;  %v9784_v45 = vld [vmem:[#allocation8 + $0x2c4] sm:$0xf] }
 0x342   :  { %5675 = vmatpush.bf16.msra.mxu3 %v8562_v10  ;;  %5650 = vmatpush.bf16.msra.mxu1 %v8290_v56  ;;  %v8849_v10 = vld [vmem:[#allocation8 + $0x560] sm:$0xf]  ;;  %v8946_v26 = vor.u32 %v9894_v21, %v8945_v49  ;;  %v9858_v9 = vld [vmem:[#allocation8 + $0x50c] sm:$0xf0]  ;;  %v3881_v1 = vpop.f32.mrf.mxu2  ;;  %v8515_v52 = vld [vmem:[#allocation8 + $0x2d0] sm:$0xf0] }
 0x343   :  { %5638 = vmatmul.bf16.vlgmr.msra.gmra.mxu0 %v10349_v20  ;;  %v8850_v57 = vor.u32 %v9870_v18, %v8849_v10  ;;  %v8961_v56 = vld [vmem:[#allocation8 + $0x640] sm:$0xf]  ;;  %v9890_v28 = vld [vmem:[#allocation8 + $0x60c] sm:$0xf0]  ;;  %v9780_v13 = vld [vmem:[#allocation8 + $0x2a4] sm:$0xf] }
 0x344   :  { %5663 = vmatpush.bf16.msra.mxu2 %v8418_v58  ;;  %5682 = vmatpush.bf16.msrb.mxu0 %v8786_v62  ;;  %v9898_v58 = vld [vmem:[#allocation8 + $0x64c] sm:$0xf0]  ;;  %v8930_v37 = vor.u32 %v9890_v28, %v8929_v27  ;;  %v9153_v51 = vld [vmem:[#allocation8 + $0x7c0] sm:$0xf]  ;;  %v8499_v49 = vld [vmem:[#allocation8 + $0x2b0] sm:$0xf0] }
 0x345   :  { %5651 = vmatmul.bf16.vlgmr.msra.gmra.mxu1 %v10352_v53  ;;  %v8962_v4 = vor.u32 %v9898_v58, %v8961_v56  ;;  %v9950_v0 = vld [vmem:[#allocation8 + $0x7ec] sm:$0xf0]  ;;  %v10385_v56 = vpack.c.bf16 %v4072_v39, %v4072_v39  ;;  %v9137_v7 = vld [vmem:[#allocation8 + $0x7a0] sm:$0xf]  ;;  %v8483_v27 = vld [vmem:[#allocation8 + $0x290] sm:$0xf0] }
 0x346   :  { %5676 = vmatpush.bf16.msra.mxu3 %v8546_v61  ;;  %5695 = vmatpush.bf16.msrb.mxu1 %v8914_v5  ;;  %v3841_v61 = vadd.f32 %v10324_v11, %v3828_v44  ;;  %v8689_v5 = vld [vmem:[#allocation8 + $0x420] sm:$0xf]  ;;  %v10376_v11 = vld [vmem:[#allocation7] sm:$0xff]  ;;  %v3894_v32 = vpop.f32.mrf.mxu3  ;;  %v9946_v55 = vld [vmem:[#allocation8 + $0x7cc] sm:$0xf0] }
 0x347   :  { %5664 = vmatmul.bf16.vlgmr.msra.gmra.mxu2 %v10354_v15  ;;  %v650_v46 = vperm.slane %v10376_v11, 6  ;;  %v9154_v14 = vor.u32 %v9946_v55, %v9153_v51  ;;  %v9942_v12 = vld [vmem:[#allocation8 + $0x7ac] sm:$0xf0]  ;;  %v8211_v32 = vld [vmem:[#allocation8 + $0x70] sm:$0xf0] }
 0x348   :  { %5708 = vmatpush.bf16.msrb.mxu2 %v9042_v6  ;;  %5683 = vmatpush.bf16.msrb.mxu0 %v8770_v22  ;;  %v3855_v62 = vpop.f32.mrf.mxu0  ;;  %v9830_v6 = vld [vmem:[#allocation8 + $0x42c] sm:$0xf0]  ;;  %v4065_v19 = vmul.f32 0.2, %v3841_v61  ;;  %vm4057_vm5 = vcmp.gt.f32.partialorder %v3841_v61, 0.0  ;;  %v9138_v21 = vor.u32 %v9942_v12, %v9137_v7 }
 0x349   :  { %5677 = vmatmul.bf16.vlgmr.msra.gmra.mxu3 %v10356_v8  ;;  %v8690_v22 = vor.u32 %v9830_v6, %v8689_v5  ;;  %v3854_v38 = vadd.f32 %v10364_v41, %v650_v46  ;;  %v9720_v41 = vld [vmem:[#allocation8 + $0xc4] sm:$0xf]  ;;  %v8243_v62 = vld [vmem:[#allocation8 + $0xb0] sm:$0xf0]  ;;  %v8518_v5 = vor.u32 %v9784_v45, %v8515_v52 }
 0x34a   :  { %5696 = vmatpush.bf16.msrb.mxu1 %v8898_v60  ;;  %v8673_v60 = vld [vmem:[#allocation8 + $0x400] sm:$0xf]  ;;  %v4073_v43 = vsel %vm4057_vm5, %v3841_v61, %v4065_v19  ;;  %v8262_v61 = vor.u32 %v9720_v41, %v8259_v40  ;;  %v8371_v6 = vld [vmem:[#allocation8 + $0x1b0] sm:$0xf0]  ;;  %v9712_v46 = vld [vmem:[#allocation8 + $0x84] sm:$0xf] }
 0x34b   :  { %v3867_v44 = vadd.f32 %v10366_v17, %v3854_v38  ;;  %v10387_v58 = vpack.c.bf16 %v4073_v43, %v4073_v43  ;;  %v9716_v17 = vld [vmem:[#allocation8 + $0xa4] sm:$0xf]  ;;  %v8195_v41 = vld [vmem:[#allocation8 + $0x50] sm:$0xf0] }
 0x34c   :  { %5709 = vmatpush.bf16.msrb.mxu2 %v9026_v23  ;;  %5684 = vmatpush.bf16.msrb.mxu0 %v8754_v29  ;;  %v9826_v23 = vld [vmem:[#allocation8 + $0x40c] sm:$0xf0]  ;;  %v9724_v29 = vld [vmem:[#allocation8 + $0xe4] sm:$0xf]  ;;  %v8246_v16 = vor.u32 %v9716_v17, %v8243_v62  ;;  %v8451_v55 = vld [vmem:[#allocation8 + $0x250] sm:$0xf0] }
 0x34d   :  { %v8674_v34 = vor.u32 %v9826_v23, %v8673_v60  ;;  %v9744_v60 = vld [vmem:[#allocation8 + $0x184] sm:$0xf]  ;;  %v8502_v23 = vor.u32 %v9780_v13, %v8499_v49  ;;  %v9073_v49 = vld [vmem:[#allocation8 + $0x720] sm:$0xf] }
 0x34e   :  { %5697 = vmatpush.bf16.msrb.mxu1 %v8882_v30  ;;  %v8275_v30 = vld [vmem:[#allocation8 + $0xf0] sm:$0xf0]  ;;  %v9740_v38 = vld [vmem:[#allocation8 + $0x164] sm:$0xf]  ;;  %v3944_v45 = vpop.f32.mrf.mxu3 }
 0x34f   :  { %v8278_v10 = vor.u32 %v9724_v29, %v8275_v30  ;;  %v9736_v40 = vld [vmem:[#allocation8 + $0x144] sm:$0xf] }
 0x350   :  { %5710 = vmatpush.bf16.msrb.mxu2 %v9010_v31  ;;  %5685 = vmatpush.bf16.msrb.mxu0 %v8738_v2  ;;  %v9756_v31 = vld [vmem:[#allocation8 + $0x1e4] sm:$0xf]  ;;  %v8531_v2 = vld [vmem:[#allocation8 + $0x2f0] sm:$0xf0]  ;;  %v3905_v30 = vpop.f32.mrf.mxu0 }
 0x351   :  { %v8406_v18 = vor.u32 %v9756_v31, %v8403_v50  ;;  %v9708_v31 = vld [vmem:[#allocation8 + $0x64] sm:$0xf] }
 0x352   :  { %5698 = vmatpush.bf16.msrb.mxu1 %v8866_v36  ;;  %v9170_v36 = vor.u32 %v9950_v0, %v9169_v33  ;;  %v3918_v33 = vpop.f32.mrf.mxu1  ;;  %v8339_v0 = vld [vmem:[#allocation8 + $0x170] sm:$0xf0]  ;;  %v8214_v39 = vor.u32 %v9708_v31, %v8211_v32  ;;  %v9768_v52 = vld [vmem:[#allocation8 + $0x244] sm:$0xf]  ;;  %v9057_v32 = vld [vmem:[#allocation8 + $0x700] sm:$0xf] }
 0x353   :  { %v8454_v7 = vor.u32 %v9768_v52, %v8451_v55  ;;  %v9764_v12 = vld [vmem:[#allocation8 + $0x224] sm:$0xf]  ;;  %v8643_v52 = vld [vmem:[#allocation8 + $0x3d0] sm:$0xf0] }
 0x354   :  { %5711 = vmatpush.bf16.msrb.mxu2 %v8994_v35  ;;  %5686 = vmatpush.bf16.msrb.mxu0 %v8722_v42  ;;  %v8802_v35 = vor.u32 %v9858_v9, %v8801_v24  ;;  %v8534_v42 = vor.u32 %v9788_v48, %v8531_v2  ;;  %v8355_v24 = vld [vmem:[#allocation8 + $0x190] sm:$0xf0]  ;;  %v9776_v9 = vld [vmem:[#allocation8 + $0x284] sm:$0xf]  ;;  %v9934_v48 = vld [vmem:[#allocation8 + $0x76c] sm:$0xf0] }
 0x355   :  { %5721 = vmatpush.bf16.msrb.mxu3 %v9170_v36  ;;  %v8358_v29 = vor.u32 %v9744_v60, %v8355_v24  ;;  %v8486_v50 = vor.u32 %v9776_v9, %v8483_v27  ;;  %v9772_v2 = vld [vmem:[#allocation8 + $0x264] sm:$0xf]  ;;  %v8467_v36 = vld [vmem:[#allocation8 + $0x270] sm:$0xf0] }
 0x356   :  { %5699 = vmatpush.bf16.msrb.mxu1 %v8850_v57  ;;  %v9752_v57 = vld [vmem:[#allocation8 + $0x1c4] sm:$0xf]  ;;  %v8470_v43 = vor.u32 %v9772_v2, %v8467_v36  ;;  %v8163_v60 = vld [vmem:[#allocation8 + $0x10] sm:$0xf0] }
 0x357   :  { %v9760_v9 = vld [vmem:[#allocation8 + $0x204] sm:$0xf]  ;;  %v8419_v27 = vld [vmem:[#allocation8 + $0x210] sm:$0xf0] }
 0x358   :  { %5712 = vmatpush.bf16.msrb.mxu2 %v8978_v47  ;;  %5687 = vmatpush.bf16.msrb.mxu0 %v8706_v63  ;;  %v8387_v47 = vld [vmem:[#allocation8 + $0x1d0] sm:$0xf0]  ;;  %v9916_v2 = vld [vmem:[#allocation8 + $0x6e4] sm:$0xf] }
 0x359   :  { %v8390_v63 = vor.u32 %v9752_v57, %v8387_v47  ;;  %5722 = vmatpush.bf16.msrb.mxu3 %v9154_v14  ;;  %v9089_v57 = vld [vmem:[#allocation8 + $0x740] sm:$0xf]  ;;  %v9930_v47 = vld [vmem:[#allocation8 + $0x74c] sm:$0xf0]  ;;  %v9043_v36 = vld [vmem:[#allocation8 + $0x6f0] sm:$0xf0] }
 0x35a   :  { %5700 = vmatpush.bf16.msrb.mxu1 %v8834_v3  ;;  %v9748_v3 = vld [vmem:[#allocation8 + $0x1a4] sm:$0xf]  ;;  %v9090_v14 = vor.u32 %v9930_v47, %v9089_v57  ;;  %v3920_v13 = vpop.f32.mrf.mxu1  ;;  %v8899_v57 = vld [vmem:[#allocation8 + $0x5d0] sm:$0xf0] }
 0x35b   :  { %v8374_v19 = vor.u32 %v9748_v3, %v8371_v6  ;;  %v8179_v3 = vld [vmem:[#allocation8 + $0x30] sm:$0xf0]  ;;  %v3907_v6 = vpop.f32.mrf.mxu0  ;;  %v9912_v47 = vld [vmem:[#allocation8 + $0x6c4] sm:$0xf] }
 0x35c   :  { %5713 = vmatpush.bf16.msrb.mxu2 %v8962_v4  ;;  %5688 = vmatpush.bf16.msrb.mxu0 %v8690_v22  ;;  %v3880_v4 = vadd.f32 %v10369_v54, %v3867_v44  ;;  %v8227_v22 = vld [vmem:[#allocation8 + $0x90] sm:$0xf0]  ;;  %v3931_v44 = vpop.f32.mrf.mxu2 }
 0x35d   :  { %5723 = vmatpush.bf16.msrb.mxu3 %v9138_v21  ;;  %v8230_v1 = vor.u32 %v9712_v46, %v8227_v22  ;;  %v9926_v21 = vld [vmem:[#allocation8 + $0x72c] sm:$0xf0]  ;;  %v9696_v22 = vld [vmem:[#allocation8 + $0x4] sm:$0xf]  ;;  %v9011_v6 = vld [vmem:[#allocation8 + $0x6b0] sm:$0xf0] }
 0x35e   :  { %5701 = vmatpush.bf16.msrb.mxu1 %v8818_v25  ;;  %v3893_v54 = vadd.f32 %v10371_v59, %v3880_v4  ;;  %v9121_v25 = vld [vmem:[#allocation8 + $0x780] sm:$0xf]  ;;  %v9732_v4 = vld [vmem:[#allocation8 + $0x124] sm:$0xf]  ;;  %v9074_v46 = vor.u32 %v9926_v21, %v9073_v49 }
 0x35f   :  { %v9840_v21 = vld [vmem:[#allocation8 + $0x484] sm:$0xf] }
 0x360   :  { %5714 = vmatpush.bf16.msrb.mxu2 %v8946_v26  ;;  %5689 = vmatpush.bf16.msrb.mxu0 %v8674_v34  ;;  %v9938_v26 = vld [vmem:[#allocation8 + $0x78c] sm:$0xf0]  ;;  %v3906_v59 = vadd.f32 %v3905_v30, %v3893_v54  ;;  %v9105_v34 = vld [vmem:[#allocation8 + $0x760] sm:$0xf]  ;;  %v9728_v54 = vld [vmem:[#allocation8 + $0x104] sm:$0xf] }
 0x361   :  { %v9122_v28 = vor.u32 %v9938_v26, %v9121_v25  ;;  %v8787_v30 = vld [vmem:[#allocation8 + $0x4f0] sm:$0xf0] }
 0x362   :  { %5702 = vmatpush.bf16.msrb.mxu1 %v8802_v35  ;;  %v9106_v35 = vor.u32 %v9934_v48, %v9105_v34  ;;  %v8659_v34 = vld [vmem:[#allocation8 + $0x3f0] sm:$0xf0] }
 0x363   :  { %5690 = vmatmul.bf16.vlgmr.msrb.gmra.mxu0 %v10385_v56  ;;  %5724 = vmatpush.bf16.msrb.mxu3 %v9122_v28  ;;  %v9852_v28 = vld [vmem:[#allocation8 + $0x4e4] sm:$0xf]  ;;  %v8915_v48 = vld [vmem:[#allocation8 + $0x5f0] sm:$0xf0] }
 0x364   :  { %5715 = vmatpush.bf16.msrb.mxu2 %v8930_v37  ;;  %5734 = vmatpush.bf16.msra.mxu0 %v8278_v10  ;;  %v3919_v37 = vadd.f32 %v3918_v33, %v3906_v59  ;;  %v8342_v10 = vor.u32 %v9740_v38, %v8339_v0  ;;  %v3933_v31 = vpop.f32.mrf.mxu2  ;;  %v9922_v38 = vld [vmem:[#allocation8 + $0x70c] sm:$0xf0]  ;;  %v3946_v59 = vpop.f32.mrf.mxu3  ;;  %v9820_v0 = vld [vmem:[#allocation8 + $0x3e4] sm:$0xf] }
 0x365   :  { %5703 = vmatmul.bf16.vlgmr.msrb.gmra.mxu1 %v10387_v58  ;;  %v9058_v33 = vor.u32 %v9922_v38, %v9057_v32  ;;  %v9868_v31 = vld [vmem:[#allocation8 + $0x564] sm:$0xf]  ;;  %v8851_v32 = vld [vmem:[#allocation8 + $0x570] sm:$0xf0] }
 0x366   :  { %5747 = vmatpush.bf16.msra.mxu1 %v8406_v18  ;;  %v9704_v18 = vld [vmem:[#allocation8 + $0x44] sm:$0xf]  ;;  %v3932_v51 = vadd.f32 %v3931_v44, %v3919_v37  ;;  %v8166_v37 = vor.u32 %v9696_v22, %v8163_v60  ;;  %v9046_v44 = vor.u32 %v9916_v2, %v9043_v36  ;;  %v8867_v60 = vld [vmem:[#allocation8 + $0x590] sm:$0xf0] }
 0x367   :  { %5725 = vmatpush.bf16.msrb.mxu3 %v9106_v35  ;;  %v8198_v17 = vor.u32 %v9704_v18, %v8195_v41  ;;  %v8662_v35 = vor.u32 %v9820_v0, %v8659_v34  ;;  %v8790_v18 = vor.u32 %v9852_v28, %v8787_v30  ;;  %v9848_v41 = vld [vmem:[#allocation8 + $0x4c4] sm:$0xf]  ;;  %v8723_v28 = vld [vmem:[#allocation8 + $0x470] sm:$0xf0] }
 0x368   :  { %5760 = vmatpush.bf16.msra.mxu2 %v8534_v42  ;;  %5735 = vmatpush.bf16.msra.mxu0 %v8262_v61  ;;  %v8323_v42 = vld [vmem:[#allocation8 + $0x150] sm:$0xf0]  ;;  %v9700_v61 = vld [vmem:[#allocation8 + $0x24] sm:$0xf] }
 0x369   :  { %v8326_v62 = vor.u32 %v9736_v40, %v8323_v42  ;;  %v8182_v25 = vor.u32 %v9700_v61, %v8179_v3  ;;  %v8771_v40 = vld [vmem:[#allocation8 + $0x4d0] sm:$0xf0]  ;;  %v9880_v42 = vld [vmem:[#allocation8 + $0x5c4] sm:$0xf] }
 0x36a   :  { %5748 = vmatpush.bf16.msra.mxu1 %v8390_v63  ;;  %v3945_v63 = vadd.f32 %v3944_v45, %v3932_v51  ;;  %v9027_v51 = vld [vmem:[#allocation8 + $0x6d0] sm:$0xf0]  ;;  %v9816_v45 = vld [vmem:[#allocation8 + $0x3c4] sm:$0xf] }
 0x36b   :  { %5726 = vmatpush.bf16.msrb.mxu3 %v9090_v14  ;;  %v8646_v55 = vor.u32 %v9816_v45, %v8643_v52  ;;  %v8774_v14 = vor.u32 %v9848_v41, %v8771_v40  ;;  %v9844_v61 = vld [vmem:[#allocation8 + $0x4a4] sm:$0xf]  ;;  %v8979_v59 = vld [vmem:[#allocation8 + $0x670] sm:$0xf0] }
 0x36c   :  { %5761 = vmatpush.bf16.msra.mxu2 %v8518_v5  ;;  %5736 = vmatpush.bf16.msra.mxu0 %v8246_v16  ;;  %v8307_v5 = vld [vmem:[#allocation8 + $0x130] sm:$0xf0]  ;;  %vm4058_vm6 = vcmp.gt.f32.partialorder %v3945_v63, 0.0  ;;  %v4066_v16 = vmul.f32 0.2, %v3945_v63 }
 0x36d   :  { %v8310_v26 = vor.u32 %v9732_v4, %v8307_v5  ;;  %v9876_v3 = vld [vmem:[#allocation8 + $0x5a4] sm:$0xf]  ;;  %v8883_v4 = vld [vmem:[#allocation8 + $0x5b0] sm:$0xf0] }
 0x36e   :  { %5749 = vmatpush.bf16.msra.mxu1 %v8374_v19  ;;  %v8435_v19 = vld [vmem:[#allocation8 + $0x230] sm:$0xf0]  ;;  %v4074_v24 = vsel %vm4058_vm6, %v3945_v63, %v4066_v16  ;;  %v9908_v5 = vld [vmem:[#allocation8 + $0x6a4] sm:$0xf] }
 0x36f   :  { %5727 = vmatpush.bf16.msrb.mxu3 %v9074_v46  ;;  %v8755_v63 = vld [vmem:[#allocation8 + $0x4b0] sm:$0xf0]  ;;  %v9014_v46 = vor.u32 %v9908_v5, %v9011_v6  ;;  %v9872_v22 = vld [vmem:[#allocation8 + $0x584] sm:$0xf] }
 0x370   :  { %5762 = vmatpush.bf16.msra.mxu2 %v8502_v23  ;;  %5737 = vmatpush.bf16.msra.mxu0 %v8230_v1  ;;  %v8291_v23 = vld [vmem:[#allocation8 + $0x110] sm:$0xf0]  ;;  %v10393_v1 = vpack.c.bf16 %v4074_v24, %v4074_v24  ;;  %v8758_v49 = vor.u32 %v9844_v61, %v8755_v63  ;;  %v9808_v24 = vld [vmem:[#allocation8 + $0x384] sm:$0xf] }
 0x371   :  { %v8739_v16 = vld [vmem:[#allocation8 + $0x490] sm:$0xf0]  ;;  %v9900_v38 = vld [vmem:[#allocation8 + $0x664] sm:$0xf] }
 0x372   :  { %5750 = vmatpush.bf16.msra.mxu1 %v8358_v29  ;;  %v8438_v29 = vor.u32 %v9764_v12, %v8435_v19  ;;  %5716 = vmatmul.bf16.vlgmr.msrb.gmra.mxu2 %v10393_v1  ;;  %v8627_v12 = vld [vmem:[#allocation8 + $0x3b0] sm:$0xf0]  ;;  %v8886_v19 = vor.u32 %v9876_v3, %v8883_v4  ;;  %v9804_v0 = vld [vmem:[#allocation8 + $0x364] sm:$0xf] }
 0x373   :  { %5728 = vmatpush.bf16.msrb.mxu3 %v9058_v33  ;;  %v10401_v33 = vpop.f32.mrf.mxu1  ;;  %v8595_v34 = vld [vmem:[#allocation8 + $0x370] sm:$0xf0]  ;;  %v9832_v36 = vld [vmem:[#allocation8 + $0x444] sm:$0xf] }
 0x374   :  { %5763 = vmatpush.bf16.msra.mxu2 %v8486_v50  ;;  %5738 = vmatpush.bf16.msra.mxu0 %v8214_v39  ;;  %v9884_v50 = vld [vmem:[#allocation8 + $0x5e4] sm:$0xf]  ;;  %v8294_v39 = vor.u32 %v9728_v54, %v8291_v23  ;;  %v8995_v23 = vld [vmem:[#allocation8 + $0x690] sm:$0xf0] }
 0x375   :  { %v9904_v54 = vld [vmem:[#allocation8 + $0x684] sm:$0xf]  ;;  %v8963_v40 = vld [vmem:[#allocation8 + $0x650] sm:$0xf0] }
 0x376   :  { %5751 = vmatpush.bf16.msra.mxu1 %v8342_v10  ;;  %v8422_v10 = vor.u32 %v9760_v9, %v8419_v27  ;;  %v8742_v9 = vor.u32 %v9840_v21, %v8739_v16  ;;  %v9836_v27 = vld [vmem:[#allocation8 + $0x464] sm:$0xf]  ;;  %v8998_v30 = vor.u32 %v9904_v54, %v8995_v23  ;;  %v8691_v52 = vld [vmem:[#allocation8 + $0x430] sm:$0xf0]  ;;  %v8281_v23 = vld [vmem:[#allocation8 + $0xe8] sm:$0xf] }
 0x377   :  { %5773 = vmatpush.bf16.msra.mxu3 %v8662_v35  ;;  %v8726_v2 = vor.u32 %v9836_v27, %v8723_v28  ;;  %v8707_v35 = vld [vmem:[#allocation8 + $0x450] sm:$0xf0]  ;;  %v9896_v41 = vld [vmem:[#allocation8 + $0x644] sm:$0xf]  ;;  %v9759_v27 = vld [vmem:[#allocation8 + $0x1f4] sm:$0xf0] }
 0x378   :  { %5764 = vmatpush.bf16.msra.mxu2 %v8470_v43  ;;  %5739 = vmatpush.bf16.msra.mxu0 %v8198_v17  ;;  %v8918_v43 = vor.u32 %v9884_v50, %v8915_v48  ;;  %v8902_v17 = vor.u32 %v9880_v42, %v8899_v57  ;;  %v10398_v50 = vpop.f32.mrf.mxu0  ;;  %v8598_v48 = vor.u32 %v9804_v0, %v8595_v34  ;;  %v8579_v42 = vld [vmem:[#allocation8 + $0x350] sm:$0xf0]  ;;  %v10405_v57 = vpop.f32.mrf.mxu3  ;;  %v9828_v45 = vld [vmem:[#allocation8 + $0x424] sm:$0xf] }
 0x379   :  { %v9860_v61 = vld [vmem:[#allocation8 + $0x524] sm:$0xf]  ;;  %v8819_v63 = vld [vmem:[#allocation8 + $0x530] sm:$0xf0] }
 0x37a   :  { %5752 = vmatpush.bf16.msra.mxu1 %v8326_v62  ;;  %v9030_v62 = vor.u32 %v9912_v47, %v9027_v51  ;;  %v8710_v51 = vor.u32 %v9832_v36, %v8707_v35  ;;  %v8947_v3 = vld [vmem:[#allocation8 + $0x630] sm:$0xf0]  ;;  %v9796_v5 = vld [vmem:[#allocation8 + $0x324] sm:$0xf]  ;;  %v9723_v35 = vld [vmem:[#allocation8 + $0xd4] sm:$0xf0] }
 0x37b   :  { %5774 = vmatpush.bf16.msra.mxu3 %v8646_v55  ;;  %v3972_v4 = vpop.f32.mrf.mxu1  ;;  %v8563_v6 = vld [vmem:[#allocation8 + $0x330] sm:$0xf0]  ;;  %v9856_v16 = vld [vmem:[#allocation8 + $0x504] sm:$0xf] }
 0x37c   :  { %5765 = vmatpush.bf16.msra.mxu2 %v8454_v7  ;;  %5740 = vmatpush.bf16.msra.mxu0 %v8182_v25  ;;  %v9812_v7 = vld [vmem:[#allocation8 + $0x3a4] sm:$0xf]  ;;  %v8611_v25 = vld [vmem:[#allocation8 + $0x390] sm:$0xf0]  ;;  %v9747_v4 = vld [vmem:[#allocation8 + $0x194] sm:$0xf0] }
 0x37d   :  { %v8630_v13 = vor.u32 %v9812_v7, %v8627_v12  ;;  %v651_v7 = vperm.slane %v10376_v11, 7  ;;  %v8566_v12 = vor.u32 %v9796_v5, %v8563_v6  ;;  %v8675_v21 = vld [vmem:[#allocation8 + $0x410] sm:$0xf0]  ;;  %v8409_v11 = vld [vmem:[#allocation8 + $0x1e8] sm:$0xf] }
 0x37e   :  { %5753 = vmatpush.bf16.msra.mxu1 %v8310_v26  ;;  %v8614_v26 = vor.u32 %v9808_v24, %v8611_v25  ;;  %v8931_v54 = vld [vmem:[#allocation8 + $0x610] sm:$0xf0]  ;;  %v9792_v25 = vld [vmem:[#allocation8 + $0x304] sm:$0xf]  ;;  %v8489_v5 = vld [vmem:[#allocation8 + $0x288] sm:$0xf] }
 0x37f   :  { %5775 = vmatpush.bf16.msra.mxu3 %v8630_v13  ;;  %v8694_v13 = vor.u32 %v9828_v45, %v8691_v52  ;;  %v3958_v0 = vadd.f32 %v10398_v50, %v651_v7  ;;  %v8249_v50 = vld [vmem:[#allocation8 + $0xa8] sm:$0xf]  ;;  %v9751_v45 = vld [vmem:[#allocation8 + $0x1b4] sm:$0xf0] }
 0x380   :  { %5766 = vmatpush.bf16.msra.mxu2 %v8438_v29  ;;  %5741 = vmatpush.bf16.msra.mxu0 %v8166_v37  ;;  %v8870_v29 = vor.u32 %v9872_v22, %v8867_v60  ;;  %v8854_v37 = vor.u32 %v9868_v31, %v8851_v32  ;;  %v8803_v22 = vld [vmem:[#allocation8 + $0x510] sm:$0xf0]  ;;  %v9888_v60 = vld [vmem:[#allocation8 + $0x604] sm:$0xf]  ;;  %v3998_v28 = vpop.f32.mrf.mxu3  ;;  %v8537_v31 = vld [vmem:[#allocation8 + $0x2e8] sm:$0xf] }
 0x381   :  { %v9791_v32 = vld [vmem:[#allocation8 + $0x2f4] sm:$0xf0]  ;;  %v8505_v52 = vld [vmem:[#allocation8 + $0x2a8] sm:$0xf] }
 0x382   :  { %5754 = vmatpush.bf16.msra.mxu1 %v8294_v39  ;;  %v8982_v39 = vor.u32 %v9900_v38, %v8979_v59  ;;  %v8806_v38 = vor.u32 %v9856_v16, %v8803_v22  ;;  %v8934_v59 = vor.u32 %v9888_v60, %v8931_v54  ;;  %v8538_v36 = vor.u32 %v9791_v32, %v8537_v31  ;;  %v9779_v6 = vld [vmem:[#allocation8 + $0x294] sm:$0xf0]  ;;  %v8473_v54 = vld [vmem:[#allocation8 + $0x268] sm:$0xf] }
 0x383   :  { %5742 = vmatmul.bf16.vlgmr.msra.gmra.mxu0 %v10349_v20  ;;  %5776 = vmatpush.bf16.msra.mxu3 %v8614_v26  ;;  %v8547_v26 = vld [vmem:[#allocation8 + $0x310] sm:$0xf0]  ;;  %v8490_v16 = vor.u32 %v9779_v6, %v8489_v5  ;;  %v9743_v22 = vld [vmem:[#allocation8 + $0x174] sm:$0xf0] }
 0x384   :  { %5767 = vmatpush.bf16.msra.mxu2 %v8422_v10  ;;  %5786 = vmatpush.bf16.msrb.mxu0 %v8790_v18  ;;  %v9864_v10 = vld [vmem:[#allocation8 + $0x544] sm:$0xf]  ;;  %v8835_v18 = vld [vmem:[#allocation8 + $0x550] sm:$0xf0] }
 0x385   :  { %5755 = vmatmul.bf16.vlgmr.msra.gmra.mxu1 %v10352_v53  ;;  %v8838_v55 = vor.u32 %v9864_v10, %v8835_v18  ;;  %v8521_v10 = vld [vmem:[#allocation8 + $0x2c8] sm:$0xf]  ;;  %v9787_v18 = vld [vmem:[#allocation8 + $0x2d4] sm:$0xf0] }
 0x386   :  { %5799 = vmatpush.bf16.msrb.mxu1 %v8918_v43  ;;  %v10403_v43 = vpop.f32.mrf.mxu2 }
 0x387   :  { %5768 = vmatmul.bf16.vlgmr.msra.gmra.mxu2 %v10354_v15  ;;  %5777 = vmatpush.bf16.msra.mxu3 %v8598_v48  ;;  %v8410_v48 = vor.u32 %v9759_v27, %v8409_v11  ;;  %v8329_v11 = vld [vmem:[#allocation8 + $0x148] sm:$0xf]  ;;  %v9739_v27 = vld [vmem:[#allocation8 + $0x154] sm:$0xf0] }
 0x388   :  { %5812 = vmatpush.bf16.msrb.mxu2 %v9046_v44  ;;  %5787 = vmatpush.bf16.msrb.mxu0 %v8774_v14  ;;  %v9800_v44 = vld [vmem:[#allocation8 + $0x344] sm:$0xf]  ;;  %v8966_v14 = vor.u32 %v9896_v41, %v8963_v40  ;;  %v3971_v41 = vadd.f32 %v10401_v33, %v3958_v0 }
 0x389   :  { %v8582_v47 = vor.u32 %v9800_v44, %v8579_v42  ;;  %v8522_v42 = vor.u32 %v9787_v18, %v8521_v10  ;;  %v8441_v18 = vld [vmem:[#allocation8 + $0x228] sm:$0xf] }
 0x38a   :  { %5800 = vmatpush.bf16.msrb.mxu1 %v8902_v17  ;;  %v9892_v17 = vld [vmem:[#allocation8 + $0x624] sm:$0xf]  ;;  %v3984_v33 = vadd.f32 %v10403_v43, %v3971_v41  ;;  %v8217_v43 = vld [vmem:[#allocation8 + $0x68] sm:$0xf]  ;;  %v9767_v41 = vld [vmem:[#allocation8 + $0x234] sm:$0xf0] }
 0x38b   :  { %5778 = vmatpush.bf16.msra.mxu3 %v8582_v47  ;;  %v9719_v47 = vld [vmem:[#allocation8 + $0xb4] sm:$0xf0] }
 0x38c   :  { %5813 = vmatpush.bf16.msrb.mxu2 %v9030_v62  ;;  %5788 = vmatpush.bf16.msrb.mxu0 %v8758_v49  ;;  %v3959_v62 = vpop.f32.mrf.mxu0  ;;  %v9824_v49 = vld [vmem:[#allocation8 + $0x404] sm:$0xf]  ;;  %v3997_v7 = vadd.f32 %v10405_v57, %v3984_v33  ;;  %v8201_v57 = vld [vmem:[#allocation8 + $0x48] sm:$0xf]  ;;  %v9731_v33 = vld [vmem:[#allocation8 + $0x114] sm:$0xf0] }
 0x38d   :  { %v9715_v62 = vld [vmem:[#allocation8 + $0x94] sm:$0xf0] }
 0x38e   :  { %5801 = vmatpush.bf16.msrb.mxu1 %v8886_v19  ;;  %v8822_v19 = vor.u32 %v9860_v61, %v8819_v63  ;;  %v3985_v24 = vpop.f32.mrf.mxu2  ;;  %v8233_v63 = vld [vmem:[#allocation8 + $0x88] sm:$0xf] }
 0x38f   :  { %5779 = vmatpush.bf16.msra.mxu3 %v8566_v12 }
 0x390   :  { %5814 = vmatpush.bf16.msrb.mxu2 %v9014_v46  ;;  %5789 = vmatpush.bf16.msrb.mxu0 %v8742_v9  ;;  %v8950_v46 = vor.u32 %v9892_v17, %v8947_v3  ;;  %v9727_v9 = vld [vmem:[#allocation8 + $0xf4] sm:$0xf0]  ;;  %v8361_v3 = vld [vmem:[#allocation8 + $0x188] sm:$0xf] }
 0x391   :  { %v8282_v34 = vor.u32 %v9727_v9, %v8281_v23  ;;  %v9775_v23 = vld [vmem:[#allocation8 + $0x274] sm:$0xf0] }
 0x392   :  { %5802 = vmatpush.bf16.msrb.mxu1 %v8870_v29  ;;  %v8550_v29 = vor.u32 %v9792_v25, %v8547_v26  ;;  %v8474_v26 = vor.u32 %v9775_v23, %v8473_v54  ;;  %v9707_v9 = vld [vmem:[#allocation8 + $0x54] sm:$0xf0]  ;;  %v8777_v23 = vld [vmem:[#allocation8 + $0x4c8] sm:$0xf] }
 0x393   :  { %v8202_v0 = vor.u32 %v9707_v9, %v8201_v57  ;;  %v9033_v9 = vld [vmem:[#allocation8 + $0x6c8] sm:$0xf] }
 0x394   :  { %5815 = vmatpush.bf16.msrb.mxu2 %v8998_v30  ;;  %5790 = vmatpush.bf16.msrb.mxu0 %v8726_v2  ;;  %v8678_v30 = vor.u32 %v9824_v49, %v8675_v21  ;;  %v8265_v2 = vld [vmem:[#allocation8 + $0xc8] sm:$0xf]  ;;  %v8362_v49 = vor.u32 %v9747_v4, %v8361_v3  ;;  %v9855_v3 = vld [vmem:[#allocation8 + $0x4f4] sm:$0xf0] }
 0x395   :  { %5780 = vmatpush.bf16.msra.mxu3 %v8550_v29  ;;  %v8266_v40 = vor.u32 %v9723_v35, %v8265_v2  ;;  %v8457_v29 = vld [vmem:[#allocation8 + $0x248] sm:$0xf]  ;;  %v9703_v35 = vld [vmem:[#allocation8 + $0x34] sm:$0xf0] }
 0x396   :  { %5803 = vmatpush.bf16.msrb.mxu1 %v8854_v37  ;;  %v8393_v37 = vld [vmem:[#allocation8 + $0x1c8] sm:$0xf] }
 0x397   :  { %v8921_v4 = vld [vmem:[#allocation8 + $0x5e8] sm:$0xf] }
 0x398   :  { %5816 = vmatpush.bf16.msrb.mxu2 %v8982_v39  ;;  %5791 = vmatpush.bf16.msrb.mxu0 %v8710_v51  ;;  %v9755_v39 = vld [vmem:[#allocation8 + $0x1d4] sm:$0xf0]  ;;  %v8377_v51 = vld [vmem:[#allocation8 + $0x1a8] sm:$0xf] }
 0x399   :  { %v8394_v44 = vor.u32 %v9755_v39, %v8393_v37  ;;  %v8378_v61 = vor.u32 %v9751_v45, %v8377_v51  ;;  %v8313_v37 = vld [vmem:[#allocation8 + $0x128] sm:$0xf]  ;;  %v9735_v39 = vld [vmem:[#allocation8 + $0x134] sm:$0xf0] }
 0x39a   :  { %5804 = vmatpush.bf16.msrb.mxu1 %v8838_v55  ;;  %v9783_v55 = vld [vmem:[#allocation8 + $0x2b4] sm:$0xf0]  ;;  %v8314_v45 = vor.u32 %v9735_v39, %v8313_v37  ;;  %v9123_v37 = vld [vmem:[#allocation8 + $0x790] sm:$0xf0] }
 0x39b   :  { %v8506_v17 = vor.u32 %v9783_v55, %v8505_v52  ;;  %v8297_v52 = vld [vmem:[#allocation8 + $0x108] sm:$0xf]  ;;  %v8442_v55 = vor.u32 %v9767_v41, %v8441_v18 }
 0x39c   :  { %5817 = vmatpush.bf16.msrb.mxu2 %v8966_v14  ;;  %5792 = vmatpush.bf16.msrb.mxu0 %v8694_v13  ;;  %v8250_v14 = vor.u32 %v9719_v47, %v8249_v50  ;;  %v8234_v13 = vor.u32 %v9715_v62, %v8233_v63  ;;  %v8169_v50 = vld [vmem:[#allocation8 + $0x8] sm:$0xf] }
 0x39d   :  { %v8793_v62 = vld [vmem:[#allocation8 + $0x4e8] sm:$0xf] }
 0x39e   :  { %5805 = vmatpush.bf16.msrb.mxu1 %v8822_v19  ;;  %v9711_v19 = vld [vmem:[#allocation8 + $0x74] sm:$0xf0] }
 0x39f   :  { %v8218_v24 = vor.u32 %v9711_v19, %v8217_v43  ;;  %v9155_v19 = vld [vmem:[#allocation8 + $0x7d0] sm:$0xf0] }
 0x3a0   :  { %5818 = vmatpush.bf16.msrb.mxu2 %v8950_v46  ;;  %5793 = vmatpush.bf16.msrb.mxu0 %v8678_v30  ;;  %v4009_v12 = vpop.f32.mrf.mxu0  ;;  %v8345_v46 = vld [vmem:[#allocation8 + $0x168] sm:$0xf]  ;;  %v9771_v30 = vld [vmem:[#allocation8 + $0x254] sm:$0xf0] }
 0x3a1   :  { %v4010_v60 = vadd.f32 %v4009_v12, %v3997_v7  ;;  %v8346_v25 = vor.u32 %v9743_v22, %v8345_v46  ;;  %v9887_v7 = vld [vmem:[#allocation8 + $0x5f4] sm:$0xf0]  ;;  %v9049_v12 = vld [vmem:[#allocation8 + $0x6e8] sm:$0xf]  ;;  %v8794_v22 = vor.u32 %v9855_v3, %v8793_v62 }
 0x3a2   :  { %5806 = vmatpush.bf16.msrb.mxu1 %v8806_v38  ;;  %v4022_v21 = vpop.f32.mrf.mxu1  ;;  %v8729_v62 = vld [vmem:[#allocation8 + $0x468] sm:$0xf]  ;;  %v9839_v3 = vld [vmem:[#allocation8 + $0x474] sm:$0xf0] }
 0x3a3   :  { %5794 = vmatmul.bf16.vlgmr.msrb.gmra.mxu0 %v10385_v56  ;;  %v4023_v28 = vadd.f32 %v4022_v21, %v4010_v60  ;;  %v8298_v21 = vor.u32 %v9731_v33, %v8297_v52  ;;  %v8922_v60 = vor.u32 %v9887_v7, %v8921_v4  ;;  %v9932_v52 = vld [vmem:[#allocation8 + $0x764] sm:$0xf]  ;;  %v8857_v4 = vld [vmem:[#allocation8 + $0x568] sm:$0xf] }
 0x3a4   :  { %5819 = vmatpush.bf16.msrb.mxu2 %v8934_v59  ;;  %5838 = vmatpush.bf16.msra.mxu0 %v8282_v34  ;;  %v8330_v34 = vor.u32 %v9739_v27, %v8329_v11  ;;  %v9915_v11 = vld [vmem:[#allocation8 + $0x6d4] sm:$0xf0]  ;;  %v9940_v27 = vld [vmem:[#allocation8 + $0x7a4] sm:$0xf] }
 0x3a5   :  { %5807 = vmatmul.bf16.vlgmr.msrb.gmra.mxu1 %v10387_v58 }
 0x3a6   :  { %5851 = vmatpush.bf16.msra.mxu1 %v8410_v48  ;;  %v8185_v48 = vld [vmem:[#allocation8 + $0x28] sm:$0xf] }
 0x3a7   :  { %5820 = vmatmul.bf16.vlgmr.msrb.gmra.mxu2 %v10393_v1  ;;  %v8186_v51 = vor.u32 %v9703_v35, %v8185_v48  ;;  %v9017_v48 = vld [vmem:[#allocation8 + $0x6a8] sm:$0xf]  ;;  %v9936_v35 = vld [vmem:[#allocation8 + $0x784] sm:$0xf] }
 0x3a8   :  { %5864 = vmatpush.bf16.msra.mxu2 %v8538_v36  ;;  %5839 = vmatpush.bf16.msra.mxu0 %v8266_v40  ;;  %v4011_v59 = vpop.f32.mrf.mxu0  ;;  %v8458_v36 = vor.u32 %v9771_v30, %v8457_v29  ;;  %v9948_v40 = vld [vmem:[#allocation8 + $0x7e4] sm:$0xf]  ;;  %v8761_v30 = vld [vmem:[#allocation8 + $0x4a8] sm:$0xf] }
 0x3a9   :  { %v8889_v59 = vld [vmem:[#allocation8 + $0x5a8] sm:$0xf] }
 0x3aa   :  { %5852 = vmatpush.bf16.msra.mxu1 %v8394_v44  ;;  %v4035_v31 = vpop.f32.mrf.mxu2  ;;  %v4024_v2 = vpop.f32.mrf.mxu1  ;;  %v9171_v44 = vld [vmem:[#allocation8 + $0x7f0] sm:$0xf0] }
 0x3ab   :  { %v4036_v32 = vadd.f32 %v4035_v31, %v4023_v28  ;;  %v9139_v28 = vld [vmem:[#allocation8 + $0x7b0] sm:$0xf0]  ;;  %v9911_v2 = vld [vmem:[#allocation8 + $0x6b4] sm:$0xf0] }
 0x3ac   :  { %5865 = vmatpush.bf16.msra.mxu2 %v8522_v42  ;;  %5840 = vmatpush.bf16.msra.mxu0 %v8250_v14  ;;  %v4048_v38 = vpop.f32.mrf.mxu3  ;;  %v9699_v42 = vld [vmem:[#allocation8 + $0x14] sm:$0xf0]  ;;  %v8425_v14 = vld [vmem:[#allocation8 + $0x208] sm:$0xf]  ;;  %v9018_v41 = vor.u32 %v9911_v2, %v9017_v48 }
 0x3ad   :  { %v4049_v10 = vadd.f32 %v4048_v38, %v4036_v32  ;;  %v8170_v43 = vor.u32 %v9699_v42, %v8169_v50  ;;  %v9034_v32 = vor.u32 %v9915_v11, %v9033_v9  ;;  %v9847_v38 = vld [vmem:[#allocation8 + $0x4b4] sm:$0xf0]  ;;  %v8873_v50 = vld [vmem:[#allocation8 + $0x588] sm:$0xf]  ;;  %v9126_v42 = vor.u32 %v9936_v35, %v9123_v37  ;;  %v9924_v9 = vld [vmem:[#allocation8 + $0x724] sm:$0xf] }
 0x3ae   :  { %5853 = vmatpush.bf16.msra.mxu1 %v8378_v61  ;;  %v9763_v61 = vld [vmem:[#allocation8 + $0x214] sm:$0xf0]  ;;  %v8762_v39 = vor.u32 %v9847_v38, %v8761_v30  ;;  %v9075_v11 = vld [vmem:[#allocation8 + $0x730] sm:$0xf0]  ;;  %v8825_v48 = vld [vmem:[#allocation8 + $0x528] sm:$0xf] }
 0x3af   :  { %vm4059_vm7 = vcmp.gt.f32.partialorder %v4049_v10, 0.0  ;;  %v4067_v47 = vmul.f32 0.2, %v4049_v10  ;;  %v8426_v46 = vor.u32 %v9763_v61, %v8425_v14  ;;  %v9078_v2 = vor.u32 %v9924_v9, %v9075_v11  ;;  %v9863_v35 = vld [vmem:[#allocation8 + $0x534] sm:$0xf0] }
 0x3b0   :  { %5866 = vmatpush.bf16.msra.mxu2 %v8506_v17  ;;  %5841 = vmatpush.bf16.msra.mxu0 %v8234_v13  ;;  %v9174_v17 = vor.u32 %v9948_v40, %v9171_v44  ;;  %v9919_v13 = vld [vmem:[#allocation8 + $0x6f4] sm:$0xf0]  ;;  %v8953_v37 = vld [vmem:[#allocation8 + $0x628] sm:$0xf]  ;;  %v8523_v9 = vld [vmem:[#allocation8 + $0x2d8] sm:$0xf0] }
 0x3b1   :  { %v4075_v63 = vsel %vm4059_vm7, %v4049_v10, %v4067_v47  ;;  %v9050_v54 = vor.u32 %v9919_v13, %v9049_v12  ;;  %v8745_v10 = vld [vmem:[#allocation8 + $0x488] sm:$0xf]  ;;  %v9843_v44 = vld [vmem:[#allocation8 + $0x494] sm:$0xf0] }
 0x3b2   :  { %5854 = vmatpush.bf16.msra.mxu1 %v8362_v49  ;;  %v10415_v5 = vpack.c.bf16 %v4075_v63, %v4075_v63  ;;  %v4037_v6 = vpop.f32.mrf.mxu2  ;;  %v9875_v47 = vld [vmem:[#allocation8 + $0x594] sm:$0xf0]  ;;  %v8746_v33 = vor.u32 %v9843_v44, %v8745_v10  ;;  %v8985_v13 = vld [vmem:[#allocation8 + $0x668] sm:$0xf] }
 0x3b3   :  { %v8874_v63 = vor.u32 %v9875_v47, %v8873_v50  ;;  %v9871_v12 = vld [vmem:[#allocation8 + $0x574] sm:$0xf0]  ;;  %v8665_v44 = vld [vmem:[#allocation8 + $0x3e8] sm:$0xf]  ;;  %v8826_v47 = vor.u32 %v9863_v35, %v8825_v48  ;;  %v8507_v48 = vld [vmem:[#allocation8 + $0x2b8] sm:$0xf0] }
 0x3b4   :  { %5867 = vmatpush.bf16.msra.mxu2 %v8490_v16  ;;  %5842 = vmatpush.bf16.msra.mxu0 %v8218_v24  ;;  %v4050_v49 = vpop.f32.mrf.mxu3  ;;  %v9944_v16 = vld [vmem:[#allocation8 + $0x7c4] sm:$0xf]  ;;  %v9851_v24 = vld [vmem:[#allocation8 + $0x4d4] sm:$0xf0]  ;;  %v8633_v11 = vld [vmem:[#allocation8 + $0x3a8] sm:$0xf] }
 0x3b5   :  { %5729 = vmatmul.bf16.vlgmr.msrb.gmra.mxu3 %v10415_v5  ;;  %v9158_v57 = vor.u32 %v9944_v16, %v9155_v19  ;;  %v8778_v29 = vor.u32 %v9851_v24, %v8777_v23  ;;  %v9903_v49 = vld [vmem:[#allocation8 + $0x674] sm:$0xf0]  ;;  %v8730_v19 = vor.u32 %v9839_v3, %v8729_v62  ;;  %v8841_v23 = vld [vmem:[#allocation8 + $0x548] sm:$0xf]  ;;  %v8283_v62 = vld [vmem:[#allocation8 + $0xf8] sm:$0xf0] }
 0x3b6   :  { %5855 = vmatpush.bf16.msra.mxu1 %v8346_v25  ;;  %5825 = vmatpush.bf16.msrb.mxu3 %v9174_v17  ;;  %v8905_v25 = vld [vmem:[#allocation8 + $0x5c8] sm:$0xf]  ;;  %v9823_v50 = vld [vmem:[#allocation8 + $0x3f4] sm:$0xf0]  ;;  %v9757_v3 = vld [vmem:[#allocation8 + $0x1ec] sm:$0xf] }
 0x3b7   :  { %v9811_v35 = vld [vmem:[#allocation8 + $0x394] sm:$0xf0] }
 0x3b8   :  { %5868 = vmatpush.bf16.msra.mxu2 %v8474_v26  ;;  %5843 = vmatpush.bf16.msra.mxu0 %v8202_v0  ;;  %v9883_v26 = vld [vmem:[#allocation8 + $0x5d4] sm:$0xf0] }
 0x3b9   :  { %v8906_v31 = vor.u32 %v9883_v26, %v8905_v25  ;;  %v9879_v0 = vld [vmem:[#allocation8 + $0x5b4] sm:$0xf0] }
 0x3ba   :  { %5856 = vmatpush.bf16.msra.mxu1 %v8330_v34  ;;  %5826 = vmatpush.bf16.msrb.mxu3 %v9158_v57  ;;  %v9142_v34 = vor.u32 %v9940_v27, %v9139_v28  ;;  %v8890_v18 = vor.u32 %v9879_v0, %v8889_v59  ;;  %v9867_v25 = vld [vmem:[#allocation8 + $0x554] sm:$0xf0]  ;;  %v8969_v57 = vld [vmem:[#allocation8 + $0x648] sm:$0xf] }
 0x3bb   :  { %v9899_v26 = vld [vmem:[#allocation8 + $0x654] sm:$0xf0]  ;;  %v8842_v38 = vor.u32 %v9867_v25, %v8841_v23  ;;  %v8697_v0 = vld [vmem:[#allocation8 + $0x428] sm:$0xf]  ;;  %v8267_v23 = vld [vmem:[#allocation8 + $0xd8] sm:$0xf0] }
 0x3bc   :  { %5869 = vmatpush.bf16.msra.mxu2 %v8458_v36  ;;  %5844 = vmatpush.bf16.msra.mxu0 %v8186_v51  ;;  %v10419_v36 = vld [vmem:[#allocation10] sm:$0xf]  ;;  %v9001_v51 = vld [vmem:[#allocation8 + $0x688] sm:$0xf]  ;;  %v8970_v59 = vor.u32 %v9899_v26, %v8969_v57  ;;  %v8395_v25 = vld [vmem:[#allocation8 + $0x1d8] sm:$0xf0] }
 0x3bd   :  { %v4342_v40 = vperm.slane %v10419_v36, 0  ;;  %v9785_v26 = vld [vmem:[#allocation8 + $0x2cc] sm:$0xf] }
 0x3be   :  { %5857 = vmatpush.bf16.msra.mxu1 %v8314_v45  ;;  %5827 = vmatpush.bf16.msrb.mxu3 %v9142_v34  ;;  %v9907_v45 = vld [vmem:[#allocation8 + $0x694] sm:$0xf0] }
 0x3bf   :  { %v9002_v17 = vor.u32 %v9907_v45, %v9001_v51  ;;  %v9831_v34 = vld [vmem:[#allocation8 + $0x434] sm:$0xf0] }
 0x3c0   :  { %5870 = vmatpush.bf16.msra.mxu2 %v8442_v55  ;;  %5845 = vmatpush.bf16.msra.mxu0 %v8170_v43  ;;  %v9107_v55 = vld [vmem:[#allocation8 + $0x770] sm:$0xf0]  ;;  %v5639_v14 = vpop.f32.mrf.mxu0  ;;  %v9928_v43 = vld [vmem:[#allocation8 + $0x744] sm:$0xf]  ;;  %v9827_v45 = vld [vmem:[#allocation8 + $0x414] sm:$0xf0] }
 0x3c1   :  { %v5640_v6 = vadd.f32 %v5639_v14, %v4342_v40  ;;  %v9110_v7 = vor.u32 %v9932_v52, %v9107_v55  ;;  %v8698_v40 = vor.u32 %v9831_v34, %v8697_v0  ;;  %v8809_v52 = vld [vmem:[#allocation8 + $0x508] sm:$0xf]  ;;  %v9859_v55 = vld [vmem:[#allocation8 + $0x514] sm:$0xf0]  ;;  %v9781_v34 = vld [vmem:[#allocation8 + $0x2ac] sm:$0xf] }
 0x3c2   :  { %5858 = vmatpush.bf16.msra.mxu1 %v8298_v21  ;;  %v5652_v61 = vpop.f32.mrf.mxu1  ;;  %5828 = vmatpush.bf16.msrb.mxu3 %v9126_v42  ;;  %v9091_v21 = vld [vmem:[#allocation8 + $0x750] sm:$0xf0]  ;;  %v8681_v42 = vld [vmem:[#allocation8 + $0x408] sm:$0xf] }
 0x3c3   :  { %5846 = vmatmul.bf16.vlgmr.msra.gmra.mxu0 %v10349_v20  ;;  %v5653_v16 = vadd.f32 %v5652_v61, %v5640_v6  ;;  %v9094_v24 = vor.u32 %v9928_v43, %v9091_v21  ;;  %v8937_v14 = vld [vmem:[#allocation8 + $0x608] sm:$0xf]  ;;  %v9891_v61 = vld [vmem:[#allocation8 + $0x614] sm:$0xf0]  ;;  %v8810_v43 = vor.u32 %v9859_v55, %v8809_v52 }
 0x3c4   :  { %5871 = vmatpush.bf16.msra.mxu2 %v8426_v46  ;;  %5890 = vmatpush.bf16.msrb.mxu0 %v8794_v22  ;;  %v8858_v46 = vor.u32 %v9871_v12, %v8857_v4  ;;  %v8986_v22 = vor.u32 %v9903_v49, %v8985_v13  ;;  %v8411_v4 = vld [vmem:[#allocation8 + $0x1f8] sm:$0xf0]  ;;  %v8682_v12 = vor.u32 %v9827_v45, %v8681_v42  ;;  %v9789_v13 = vld [vmem:[#allocation8 + $0x2ec] sm:$0xf]  ;;  %v8601_v45 = vld [vmem:[#allocation8 + $0x368] sm:$0xf] }
 0x3c5   :  { %5859 = vmatmul.bf16.vlgmr.msra.gmra.mxu1 %v10352_v53  ;;  %5781 = vmatmul.bf16.vlgmr.msra.gmra.mxu3 %v10356_v8  ;;  %v8539_v49 = vld [vmem:[#allocation8 + $0x2f8] sm:$0xf0]  ;;  %v8938_v21 = vor.u32 %v9891_v61, %v8937_v14  ;;  %v9807_v52 = vld [vmem:[#allocation8 + $0x374] sm:$0xf0]  ;;  %v9709_v61 = vld [vmem:[#allocation8 + $0x6c] sm:$0xf] }
 0x3c6   :  { %5903 = vmatpush.bf16.msrb.mxu1 %v8922_v60  ;;  %v8713_v60 = vld [vmem:[#allocation8 + $0x448] sm:$0xf]  ;;  %5829 = vmatpush.bf16.msrb.mxu3 %v9110_v7 }
 0x3c7   :  { %5872 = vmatmul.bf16.vlgmr.msra.gmra.mxu2 %v10354_v15 }
 0x3c8   :  { %5916 = vmatpush.bf16.msrb.mxu2 %v9050_v54  ;;  %5891 = vmatpush.bf16.msrb.mxu0 %v8778_v29  ;;  %v9835_v54 = vld [vmem:[#allocation8 + $0x454] sm:$0xf0] }
 0x3c9   :  { %v8714_v29 = vor.u32 %v9835_v54, %v8713_v60  ;;  %v9721_v60 = vld [vmem:[#allocation8 + $0xcc] sm:$0xf]  ;;  %v8542_v54 = vor.u32 %v9789_v13, %v8539_v49  ;;  %v8475_v13 = vld [vmem:[#allocation8 + $0x278] sm:$0xf0] }
 0x3ca   :  { %5904 = vmatpush.bf16.msrb.mxu1 %v8906_v31  ;;  %v5665_v27 = vpop.f32.mrf.mxu2  ;;  %v5641_v31 = vpop.f32.mrf.mxu0  ;;  %5830 = vmatpush.bf16.msrb.mxu3 %v9094_v24  ;;  %v9753_v24 = vld [vmem:[#allocation8 + $0x1cc] sm:$0xf] }
 0x3cb   :  { %v5666_v30 = vadd.f32 %v5665_v27, %v5653_v16  ;;  %v8649_v16 = vld [vmem:[#allocation8 + $0x3c8] sm:$0xf]  ;;  %v9815_v27 = vld [vmem:[#allocation8 + $0x3b4] sm:$0xf0]  ;;  %v8526_v31 = vor.u32 %v9785_v26, %v8523_v9 }
 0x3cc   :  { %5917 = vmatpush.bf16.msrb.mxu2 %v9034_v32  ;;  %5892 = vmatpush.bf16.msrb.mxu0 %v8762_v39  ;;  %v5678_v28 = vpop.f32.mrf.mxu3  ;;  %v5654_v32 = vpop.f32.mrf.mxu1  ;;  %v9895_v39 = vld [vmem:[#allocation8 + $0x634] sm:$0xf0]  ;;  %v8634_v0 = vor.u32 %v9815_v27, %v8633_v11 }
 0x3cd   :  { %v10425_v10 = vadd.f32 %v5678_v28, %v5666_v30  ;;  %v8954_v51 = vor.u32 %v9895_v39, %v8953_v37  ;;  %v8270_v28 = vor.u32 %v9721_v60, %v8267_v23  ;;  %v9717_v30 = vld [vmem:[#allocation8 + $0xac] sm:$0xf]  ;;  %v8251_v32 = vld [vmem:[#allocation8 + $0xb8] sm:$0xf0]  ;;  %v9799_v26 = vld [vmem:[#allocation8 + $0x334] sm:$0xf0] }
 0x3ce   :  { %5905 = vmatpush.bf16.msrb.mxu1 %v8890_v18  ;;  %v9920_v18 = vld [vmem:[#allocation8 + $0x704] sm:$0xf]  ;;  %5831 = vmatpush.bf16.msrb.mxu3 %v9078_v2  ;;  %v8617_v2 = vld [vmem:[#allocation8 + $0x388] sm:$0xf]  ;;  %v8254_v37 = vor.u32 %v9717_v30, %v8251_v32  ;;  %v9737_v60 = vld [vmem:[#allocation8 + $0x14c] sm:$0xf] }
 0x3cf   :  { %v8618_v42 = vor.u32 %v9811_v35, %v8617_v2  ;;  %v9733_v32 = vld [vmem:[#allocation8 + $0x12c] sm:$0xf]  ;;  %v9795_v2 = vld [vmem:[#allocation8 + $0x314] sm:$0xf0]  ;;  %v9177_v35 = vld [vmem:[#allocation8 + $0x7e8] sm:$0xf] }
 0x3d0   :  { %5918 = vmatpush.bf16.msrb.mxu2 %v9018_v41  ;;  %5893 = vmatpush.bf16.msrb.mxu0 %v8746_v33  ;;  %v9059_v41 = vld [vmem:[#allocation8 + $0x710] sm:$0xf0] }
 0x3d1   :  { %v9062_v33 = vor.u32 %v9920_v18, %v9059_v41  ;;  %v9713_v18 = vld [vmem:[#allocation8 + $0x8c] sm:$0xf]  ;;  %v8510_v41 = vor.u32 %v9781_v34, %v8507_v48  ;;  %v8443_v34 = vld [vmem:[#allocation8 + $0x238] sm:$0xf0]  ;;  %v8553_v48 = vld [vmem:[#allocation8 + $0x308] sm:$0xf] }
 0x3d2   :  { %5906 = vmatpush.bf16.msrb.mxu1 %v8874_v63  ;;  %v9725_v63 = vld [vmem:[#allocation8 + $0xec] sm:$0xf]  ;;  %v5667_v6 = vpop.f32.mrf.mxu2 }
 0x3d3   :  { %5832 = vmatpush.bf16.msrb.mxu3 %v9062_v33  ;;  %v8347_v6 = vld [vmem:[#allocation8 + $0x178] sm:$0xf0] }
 0x3d4   :  { %5919 = vmatpush.bf16.msrb.mxu2 %v9002_v17  ;;  %5894 = vmatpush.bf16.msrb.mxu0 %v8730_v19  ;;  %v8666_v17 = vor.u32 %v9823_v50, %v8665_v44  ;;  %v5680_v7 = vpop.f32.mrf.mxu3  ;;  %v9819_v19 = vld [vmem:[#allocation8 + $0x3d4] sm:$0xf0]  ;;  %v9745_v44 = vld [vmem:[#allocation8 + $0x18c] sm:$0xf]  ;;  %v8363_v50 = vld [vmem:[#allocation8 + $0x198] sm:$0xf0] }
 0x3d5   :  { %v8650_v57 = vor.u32 %v9819_v19, %v8649_v16  ;;  %v8366_v14 = vor.u32 %v9745_v44, %v8363_v50  ;;  %v8602_v7 = vor.u32 %v9807_v52, %v8601_v45  ;;  %v9729_v50 = vld [vmem:[#allocation8 + $0x10c] sm:$0xf]  ;;  %v8427_v45 = vld [vmem:[#allocation8 + $0x218] sm:$0xf0] }
 0x3d6   :  { %5907 = vmatpush.bf16.msrb.mxu1 %v8858_v46  ;;  %v8286_v46 = vor.u32 %v9725_v63, %v8283_v62  ;;  %5833 = vmatmul.bf16.vlgmr.msrb.gmra.mxu3 %v10415_v5  ;;  %v9853_v52 = vld [vmem:[#allocation8 + $0x4ec] sm:$0xf] }
 0x3d7   :  { %5877 = vmatpush.bf16.msra.mxu3 %v8666_v17 }
 0x3d8   :  { %5920 = vmatpush.bf16.msrb.mxu2 %v8986_v22  ;;  %5895 = vmatpush.bf16.msrb.mxu0 %v8714_v29  ;;  %v8414_v22 = vor.u32 %v9757_v3, %v8411_v4  ;;  %v8398_v29 = vor.u32 %v9753_v24, %v8395_v25  ;;  %v8219_v3 = vld [vmem:[#allocation8 + $0x78] sm:$0xf0]  ;;  %v9741_v4 = vld [vmem:[#allocation8 + $0x16c] sm:$0xf] }
 0x3d9   :  { %v8222_v16 = vor.u32 %v9709_v61, %v8219_v3  ;;  %v8350_v19 = vor.u32 %v9741_v4, %v8347_v6  ;;  %v9769_v24 = vld [vmem:[#allocation8 + $0x24c] sm:$0xf]  ;;  %v8459_v25 = vld [vmem:[#allocation8 + $0x258] sm:$0xf0]  ;;  %v9161_v4 = vld [vmem:[#allocation8 + $0x7c8] sm:$0xf] }
 0x3da   :  { %5908 = vmatpush.bf16.msrb.mxu1 %v8842_v38  ;;  %v9749_v38 = vld [vmem:[#allocation8 + $0x1ac] sm:$0xf]  ;;  %v8462_v30 = vor.u32 %v9769_v24, %v8459_v25  ;;  %v8923_v61 = vld [vmem:[#allocation8 + $0x5f8] sm:$0xf0]  ;;  %v9947_v6 = vld [vmem:[#allocation8 + $0x7d4] sm:$0xf0] }
 0x3db   :  { %5878 = vmatpush.bf16.msra.mxu3 %v8650_v57  ;;  %v8569_v57 = vld [vmem:[#allocation8 + $0x328] sm:$0xf]  ;;  %v9051_v3 = vld [vmem:[#allocation8 + $0x6f8] sm:$0xf0] }
 0x3dc   :  { %5921 = vmatpush.bf16.msrb.mxu2 %v8970_v59  ;;  %5896 = vmatpush.bf16.msrb.mxu0 %v8698_v40  ;;  %v8379_v59 = vld [vmem:[#allocation8 + $0x1b8] sm:$0xf0] }
 0x3dd   :  { %v8382_v39 = vor.u32 %v9749_v38, %v8379_v59  ;;  %v8235_v40 = vld [vmem:[#allocation8 + $0x98] sm:$0xf0]  ;;  %v8570_v59 = vor.u32 %v9799_v26, %v8569_v57  ;;  %v9845_v57 = vld [vmem:[#allocation8 + $0x4ac] sm:$0xf] }
 0x3de   :  { %5909 = vmatpush.bf16.msrb.mxu1 %v8826_v47  ;;  %v9777_v47 = vld [vmem:[#allocation8 + $0x28c] sm:$0xf]  ;;  %v8238_v33 = vor.u32 %v9713_v18, %v8235_v40  ;;  %v8315_v38 = vld [vmem:[#allocation8 + $0x138] sm:$0xf0]  ;;  %v9951_v18 = vld [vmem:[#allocation8 + $0x7f4] sm:$0xf0] }
 0x3df   :  { %5879 = vmatpush.bf16.msra.mxu3 %v8634_v0  ;;  %v9765_v0 = vld [vmem:[#allocation8 + $0x22c] sm:$0xf]  ;;  %v8171_v40 = vld [vmem:[#allocation8 + $0x18] sm:$0xf0] }
 0x3e0   :  { %5922 = vmatpush.bf16.msrb.mxu2 %v8954_v51  ;;  %5897 = vmatpush.bf16.msrb.mxu0 %v8682_v12  ;;  %v8491_v51 = vld [vmem:[#allocation8 + $0x298] sm:$0xf0]  ;;  %v5691_v55 = vpop.f32.mrf.mxu0  ;;  %v9773_v12 = vld [vmem:[#allocation8 + $0x26c] sm:$0xf]  ;;  %v8446_v44 = vor.u32 %v9765_v0, %v8443_v34  ;;  %v4343_v0 = vperm.slane %v10419_v36, 1 }
 0x3e1   :  { %v5692_v63 = vadd.f32 %v5691_v55, %v10425_v10  ;;  %v8494_v62 = vor.u32 %v9777_v47, %v8491_v51  ;;  %v8478_v10 = vor.u32 %v9773_v12, %v8475_v13  ;;  %v9761_v47 = vld [vmem:[#allocation8 + $0x20c] sm:$0xf]  ;;  %v8554_v51 = vor.u32 %v9795_v2, %v8553_v48  ;;  %v8795_v55 = vld [vmem:[#allocation8 + $0x4f8] sm:$0xf0] }
 0x3e2   :  { %5910 = vmatpush.bf16.msrb.mxu1 %v8810_v43  ;;  %v5704_v17 = vpop.f32.mrf.mxu1  ;;  %v8585_v43 = vld [vmem:[#allocation8 + $0x348] sm:$0xf]  ;;  %v8798_v12 = vor.u32 %v9853_v52, %v8795_v55  ;;  %v8763_v26 = vld [vmem:[#allocation8 + $0x4b8] sm:$0xf0]  ;;  %v9841_v34 = vld [vmem:[#allocation8 + $0x48c] sm:$0xf] }
 0x3e3   :  { %5898 = vmatmul.bf16.vlgmr.msrb.gmra.mxu0 %v10385_v56  ;;  %5880 = vmatpush.bf16.msra.mxu3 %v8618_v42  ;;  %v10432_v49 = vadd.f32 %v5704_v17, %v5692_v63  ;;  %v8299_v42 = vld [vmem:[#allocation8 + $0x118] sm:$0xf0]  ;;  %v9917_v63 = vld [vmem:[#allocation8 + $0x6ec] sm:$0xf] }
 0x3e4   :  { %5923 = vmatpush.bf16.msrb.mxu2 %v8938_v21  ;;  %5942 = vmatpush.bf16.msra.mxu0 %v8286_v46  ;;  %v9803_v21 = vld [vmem:[#allocation8 + $0x354] sm:$0xf0]  ;;  %v9705_v46 = vld [vmem:[#allocation8 + $0x4c] sm:$0xf]  ;;  %v8747_v48 = vld [vmem:[#allocation8 + $0x498] sm:$0xf0] }
 0x3e5   :  { %5911 = vmatmul.bf16.vlgmr.msrb.gmra.mxu1 %v10387_v58  ;;  %v8586_v23 = vor.u32 %v9803_v21, %v8585_v43  ;;  %v9849_v43 = vld [vmem:[#allocation8 + $0x4cc] sm:$0xf]  ;;  %v8779_v21 = vld [vmem:[#allocation8 + $0x4d8] sm:$0xf0] }
 0x3e6   :  { %5955 = vmatpush.bf16.msra.mxu1 %v8414_v22  ;;  %v8203_v22 = vld [vmem:[#allocation8 + $0x58] sm:$0xf0]  ;;  %v8782_v24 = vor.u32 %v9849_v43, %v8779_v21  ;;  %v9865_v21 = vld [vmem:[#allocation8 + $0x54c] sm:$0xf] }
 0x3e7   :  { %5924 = vmatmul.bf16.vlgmr.msrb.gmra.mxu2 %v10393_v1  ;;  %5881 = vmatpush.bf16.msra.mxu3 %v8602_v7  ;;  %v8206_v11 = vor.u32 %v9705_v46, %v8203_v22  ;;  %v8430_v7 = vor.u32 %v9761_v47, %v8427_v45  ;;  %v9881_v46 = vld [vmem:[#allocation8 + $0x5cc] sm:$0xf]  ;;  %v8731_v45 = vld [vmem:[#allocation8 + $0x478] sm:$0xf0] }
 0x3e8   :  { %5968 = vmatpush.bf16.msra.mxu2 %v8542_v54  ;;  %5943 = vmatpush.bf16.msra.mxu0 %v8270_v28  ;;  %v8331_v54 = vld [vmem:[#allocation8 + $0x158] sm:$0xf0]  ;;  %v5693_v9 = vpop.f32.mrf.mxu0  ;;  %v9701_v28 = vld [vmem:[#allocation8 + $0x2c] sm:$0xf] }
 0x3e9   :  { %v8334_v27 = vor.u32 %v9737_v60, %v8331_v54  ;;  %v9913_v22 = vld [vmem:[#allocation8 + $0x6cc] sm:$0xf]  ;;  %v9035_v60 = vld [vmem:[#allocation8 + $0x6d8] sm:$0xf0]  ;;  %v9145_v54 = vld [vmem:[#allocation8 + $0x7a8] sm:$0xf] }
 0x3ea   :  { %5956 = vmatpush.bf16.msra.mxu1 %v8398_v29  ;;  %v5706_v29 = vpop.f32.mrf.mxu1  ;;  %v9038_v9 = vor.u32 %v9913_v22, %v9035_v60  ;;  %v9081_v22 = vld [vmem:[#allocation8 + $0x728] sm:$0xf]  ;;  %v9927_v60 = vld [vmem:[#allocation8 + $0x734] sm:$0xf0] }
 0x3eb   :  { %5882 = vmatpush.bf16.msra.mxu3 %v8586_v23  ;;  %v9943_v23 = vld [vmem:[#allocation8 + $0x7b4] sm:$0xf0]  ;;  %v9909_v29 = vld [vmem:[#allocation8 + $0x6ac] sm:$0xf] }
 0x3ec   :  { %5969 = vmatpush.bf16.msra.mxu2 %v8526_v31  ;;  %5944 = vmatpush.bf16.msra.mxu0 %v8254_v37  ;;  %v8187_v31 = vld [vmem:[#allocation8 + $0x38] sm:$0xf0] }
 0x3ed   :  { %v8190_v37 = vor.u32 %v9701_v28, %v8187_v31  ;;  %v8891_v28 = vld [vmem:[#allocation8 + $0x5b8] sm:$0xf0]  ;;  %v9129_v31 = vld [vmem:[#allocation8 + $0x788] sm:$0xf] }
 0x3ee   :  { %5957 = vmatpush.bf16.msra.mxu1 %v8382_v39  ;;  %v8318_v39 = vor.u32 %v9733_v32, %v8315_v38  ;;  %v9939_v32 = vld [vmem:[#allocation8 + $0x794] sm:$0xf0]  ;;  %v8766_v38 = vor.u32 %v9845_v57, %v8763_v26  ;;  %v9829_v57 = vld [vmem:[#allocation8 + $0x42c] sm:$0xf]  ;;  %v8699_v26 = vld [vmem:[#allocation8 + $0x438] sm:$0xf0] }
 0x3ef   :  { %5883 = vmatpush.bf16.msra.mxu3 %v8570_v59 }
 0x3f0   :  { %5970 = vmatpush.bf16.msra.mxu2 %v8510_v41  ;;  %5945 = vmatpush.bf16.msra.mxu0 %v8238_v33  ;;  %v9697_v41 = vld [vmem:[#allocation8 + $0xc] sm:$0xf]  ;;  %v9178_v33 = vor.u32 %v9951_v18, %v9177_v35  ;;  %v9130_v35 = vor.u32 %v9939_v32, %v9129_v31  ;;  %v9065_v31 = vld [vmem:[#allocation8 + $0x708] sm:$0xf]  ;;  %v9923_v32 = vld [vmem:[#allocation8 + $0x714] sm:$0xf0] }
 0x3f1   :  { %v8174_v17 = vor.u32 %v9697_v41, %v8171_v40  ;;  %v9113_v41 = vld [vmem:[#allocation8 + $0x768] sm:$0xf]  ;;  %v9935_v40 = vld [vmem:[#allocation8 + $0x774] sm:$0xf0] }
 0x3f2   :  { %5958 = vmatpush.bf16.msra.mxu1 %v8366_v14  ;;  %v9885_v14 = vld [vmem:[#allocation8 + $0x5ec] sm:$0xf] }
 0x3f3   :  { %5884 = vmatpush.bf16.msra.mxu3 %v8554_v51  ;;  %v8926_v13 = vor.u32 %v9885_v14, %v8923_v61  ;;  %v9837_v51 = vld [vmem:[#allocation8 + $0x46c] sm:$0xf]  ;;  %v8859_v61 = vld [vmem:[#allocation8 + $0x578] sm:$0xf0] }
 0x3f4   :  { %5971 = vmatpush.bf16.msra.mxu2 %v8494_v62  ;;  %5946 = vmatpush.bf16.msra.mxu0 %v8222_v16  ;;  %v8302_v62 = vor.u32 %v9729_v50, %v8299_v42  ;;  %v9054_v16 = vor.u32 %v9917_v63, %v9051_v3  ;;  %v8750_v42 = vor.u32 %v9841_v34, %v8747_v48  ;;  %v9869_v14 = vld [vmem:[#allocation8 + $0x56c] sm:$0xf] }
 0x3f5   :  { %v5717_v18 = vpop.f32.mrf.mxu2  ;;  %v9901_v63 = vld [vmem:[#allocation8 + $0x66c] sm:$0xf] }
 0x3f6   :  { %5959 = vmatpush.bf16.msra.mxu1 %v8350_v19  ;;  %v9162_v19 = vor.u32 %v9947_v6, %v9161_v4  ;;  %5885 = vmatmul.bf16.vlgmr.msra.gmra.mxu3 %v10356_v8  ;;  %v8734_v4 = vor.u32 %v9837_v51, %v8731_v45  ;;  %v8862_v6 = vor.u32 %v9869_v14, %v8859_v61  ;;  %v9825_v48 = vld [vmem:[#allocation8 + $0x40c] sm:$0xf] }
 0x3f7   :  { %5929 = vmatpush.bf16.msrb.mxu3 %v9178_v33  ;;  %v9114_v33 = vor.u32 %v9935_v40, %v9113_v41  ;;  %v8939_v41 = vld [vmem:[#allocation8 + $0x618] sm:$0xf0] }
 0x3f8   :  { %5972 = vmatpush.bf16.msra.mxu2 %v8478_v10  ;;  %5947 = vmatpush.bf16.msra.mxu0 %v8206_v11  ;;  %v8907_v10 = vld [vmem:[#allocation8 + $0x5d8] sm:$0xf0]  ;;  %v9146_v11 = vor.u32 %v9943_v23, %v9145_v54 }
 0x3f9   :  { %v8910_v25 = vor.u32 %v9881_v46, %v8907_v10  ;;  %v8971_v46 = vld [vmem:[#allocation8 + $0x658] sm:$0xf0] }
 0x3fa   :  { %5960 = vmatpush.bf16.msra.mxu1 %v8334_v27  ;;  %v9877_v27 = vld [vmem:[#allocation8 + $0x5ac] sm:$0xf] }
 0x3fb   :  { %5930 = vmatpush.bf16.msrb.mxu3 %v9162_v19  ;;  %v8894_v59 = vor.u32 %v9877_v27, %v8891_v28  ;;  %v9897_v19 = vld [vmem:[#allocation8 + $0x64c] sm:$0xf]  ;;  %v8827_v28 = vld [vmem:[#allocation8 + $0x538] sm:$0xf0] }
 0x3fc   :  { %5973 = vmatpush.bf16.msra.mxu2 %v8462_v30  ;;  %5948 = vmatpush.bf16.msra.mxu0 %v8190_v37  ;;  %v9019_v30 = vld [vmem:[#allocation8 + $0x6b8] sm:$0xf0]  ;;  %v9861_v27 = vld [vmem:[#allocation8 + $0x52c] sm:$0xf] }
 0x3fd   :  { %v9022_v2 = vor.u32 %v9909_v29, %v9019_v30  ;;  %v8875_v37 = vld [vmem:[#allocation8 + $0x598] sm:$0xf0]  ;;  %v5719_v10 = vpop.f32.mrf.mxu2  ;;  %v9893_v29 = vld [vmem:[#allocation8 + $0x62c] sm:$0xf]  ;;  %v8830_v34 = vor.u32 %v9861_v27, %v8827_v28 }
 0x3fe   :  { %5961 = vmatpush.bf16.msra.mxu1 %v8318_v39  ;;  %v9003_v39 = vld [vmem:[#allocation8 + $0x698] sm:$0xf0]  ;;  %v9937_v28 = vld [vmem:[#allocation8 + $0x78c] sm:$0xf] }
 0x3ff   :  { %5931 = vmatpush.bf16.msrb.mxu3 %v9146_v11  ;;  %v9082_v11 = vor.u32 %v9927_v60, %v9081_v22  ;;  %v8955_v30 = vld [vmem:[#allocation8 + $0x638] sm:$0xf0]  ;;  %v9949_v22 = vld [vmem:[#allocation8 + $0x7ec] sm:$0xf] }
 0x400   :  { %5974 = vmatpush.bf16.msra.mxu2 %v8446_v44  ;;  %5949 = vmatpush.bf16.msra.mxu0 %v8174_v17  ;;  %v5743_v44 = vpop.f32.mrf.mxu0  ;;  %v8987_v17 = vld [vmem:[#allocation8 + $0x678] sm:$0xf0] }
 0x401   :  { %v5744_v52 = vadd.f32 %v5743_v44, %v4343_v0  ;;  %v8702_v0 = vor.u32 %v9829_v57, %v8699_v26  ;;  %v8555_v10 = vld [vmem:[#allocation8 + $0x318] sm:$0xf0] }
 0x402   :  { %5962 = vmatpush.bf16.msra.mxu1 %v8302_v62  ;;  %v5756_v50 = vpop.f32.mrf.mxu1  ;;  %v9097_v62 = vld [vmem:[#allocation8 + $0x748] sm:$0xf]  ;;  %v9179_v60 = vld [vmem:[#allocation8 + $0x7f8] sm:$0xf0] }
 0x403   :  { %5950 = vmatmul.bf16.vlgmr.msra.gmra.mxu0 %v10349_v20  ;;  %v9873_v20 = vld [vmem:[#allocation8 + $0x58c] sm:$0xf]  ;;  %5932 = vmatpush.bf16.msrb.mxu3 %v9130_v35  ;;  %v5757_v3 = vadd.f32 %v5756_v50, %v5744_v52  ;;  %v9066_v35 = vor.u32 %v9923_v32, %v9065_v31  ;;  %v9163_v57 = vld [vmem:[#allocation8 + $0x7d8] sm:$0xf0]  ;;  %v4344_v31 = vperm.slane %v10419_v36, 2 }
 0x404   :  { %5975 = vmatpush.bf16.msra.mxu2 %v8430_v7  ;;  %5994 = vmatpush.bf16.msrb.mxu0 %v8798_v12  ;;  %v8878_v47 = vor.u32 %v9873_v20, %v8875_v37  ;;  %v9833_v7 = vld [vmem:[#allocation8 + $0x44c] sm:$0xf]  ;;  %v8715_v12 = vld [vmem:[#allocation8 + $0x458] sm:$0xf0] }
 0x405   :  { %5963 = vmatmul.bf16.vlgmr.msra.gmra.mxu1 %v10352_v53  ;;  %v9905_v53 = vld [vmem:[#allocation8 + $0x68c] sm:$0xf]  ;;  %v8683_v20 = vld [vmem:[#allocation8 + $0x418] sm:$0xf0] }
 0x406   :  { %6007 = vmatpush.bf16.msrb.mxu1 %v8926_v13  ;;  %v9006_v55 = vor.u32 %v9905_v53, %v9003_v39  ;;  %v8990_v13 = vor.u32 %v9901_v63, %v8987_v17  ;;  %v9857_v37 = vld [vmem:[#allocation8 + $0x50c] sm:$0xf]  ;;  %v8811_v53 = vld [vmem:[#allocation8 + $0x518] sm:$0xf0] }
 0x407   :  { %5976 = vmatmul.bf16.vlgmr.msra.gmra.mxu2 %v10354_v15  ;;  %v10440_v15 = vadd.f32 %v5717_v18, %v10432_v49  ;;  %v9931_v49 = vld [vmem:[#allocation8 + $0x754] sm:$0xf0]  ;;  %5933 = vmatpush.bf16.msrb.mxu3 %v9114_v33  ;;  %v9889_v18 = vld [vmem:[#allocation8 + $0x60c] sm:$0xf]  ;;  %v8814_v51 = vor.u32 %v9857_v37, %v8811_v53  ;;  %v8635_v33 = vld [vmem:[#allocation8 + $0x3b8] sm:$0xf0] }
 0x408   :  { %6020 = vmatpush.bf16.msrb.mxu2 %v9054_v16  ;;  %5995 = vmatpush.bf16.msrb.mxu0 %v8782_v24  ;;  %v9098_v43 = vor.u32 %v9931_v49, %v9097_v62  ;;  %v8843_v16 = vld [vmem:[#allocation8 + $0x558] sm:$0xf0]  ;;  %v5745_v54 = vpop.f32.mrf.mxu0  ;;  %v8718_v24 = vor.u32 %v9833_v7, %v8715_v12  ;;  %v9817_v50 = vld [vmem:[#allocation8 + $0x3cc] sm:$0xf]  ;;  %v8942_v45 = vor.u32 %v9889_v18, %v8939_v41 }
 0x409   :  { %v9809_v63 = vld [vmem:[#allocation8 + $0x38c] sm:$0xf]  ;;  %v8619_v17 = vld [vmem:[#allocation8 + $0x398] sm:$0xf0] }
 0x40a   :  { %6008 = vmatpush.bf16.msrb.mxu1 %v8910_v25  ;;  %v5758_v23 = vpop.f32.mrf.mxu1  ;;  %v8846_v25 = vor.u32 %v9865_v21, %v8843_v16  ;;  %v5769_v40 = vpop.f32.mrf.mxu2  ;;  %v8622_v62 = vor.u32 %v9809_v63, %v8619_v17  ;;  %v9805_v49 = vld [vmem:[#allocation8 + $0x36c] sm:$0xf]  ;;  %v9083_v18 = vld [vmem:[#allocation8 + $0x738] sm:$0xf0] }
 0x40b   :  { %5934 = vmatpush.bf16.msrb.mxu3 %v9098_v43  ;;  %v10442_v44 = vadd.f32 %v5769_v40, %v5757_v3  ;;  %v8603_v3 = vld [vmem:[#allocation8 + $0x378] sm:$0xf0]  ;;  %v9801_v12 = vld [vmem:[#allocation8 + $0x34c] sm:$0xf]  ;;  %v9182_v23 = vor.u32 %v9949_v22, %v9179_v60  ;;  %v4345_v60 = vperm.slane %v10419_v36, 3 }
 0x40c   :  { %6021 = vmatpush.bf16.msrb.mxu2 %v9038_v9  ;;  %5996 = vmatpush.bf16.msrb.mxu0 %v8766_v38  ;;  %v8974_v9 = vor.u32 %v9897_v19, %v8971_v46  ;;  %v9821_v38 = vld [vmem:[#allocation8 + $0x3ec] sm:$0xf]  ;;  %v8606_v7 = vor.u32 %v9805_v49, %v8603_v3 }
 0x40d   :  { %v9797_v43 = vld [vmem:[#allocation8 + $0x32c] sm:$0xf] }
 0x40e   :  { %6009 = vmatpush.bf16.msrb.mxu1 %v8894_v59  ;;  %v8667_v59 = vld [vmem:[#allocation8 + $0x3f8] sm:$0xf0]  ;;  %v9793_v46 = vld [vmem:[#allocation8 + $0x30c] sm:$0xf] }
 0x40f   :  { %5935 = vmatpush.bf16.msrb.mxu3 %v9082_v11  ;;  %v8670_v39 = vor.u32 %v9821_v38, %v8667_v59  ;;  %v8558_v54 = vor.u32 %v9793_v46, %v8555_v10  ;;  %v9147_v11 = vld [vmem:[#allocation8 + $0x7b8] sm:$0xf0]  ;;  %v9933_v32 = vld [vmem:[#allocation8 + $0x76c] sm:$0xf] }
 0x410   :  { %6022 = vmatpush.bf16.msrb.mxu2 %v9022_v2  ;;  %5997 = vmatpush.bf16.msrb.mxu0 %v8750_v42  ;;  %v8958_v2 = vor.u32 %v9893_v29, %v8955_v30  ;;  %v8651_v42 = vld [vmem:[#allocation8 + $0x3d8] sm:$0xf0] }
 0x411   :  { %v8654_v52 = vor.u32 %v9817_v50, %v8651_v42  ;;  %v9131_v29 = vld [vmem:[#allocation8 + $0x798] sm:$0xf0] }
 0x412   :  { %6010 = vmatpush.bf16.msrb.mxu1 %v8878_v47  ;;  %v8686_v47 = vor.u32 %v9825_v48, %v8683_v20  ;;  %v5771_v61 = vpop.f32.mrf.mxu2  ;;  %v9134_v30 = vor.u32 %v9937_v28, %v9131_v29  ;;  %v9115_v38 = vld [vmem:[#allocation8 + $0x778] sm:$0xf0]  ;;  %v9929_v20 = vld [vmem:[#allocation8 + $0x74c] sm:$0xf] }
 0x413   :  { %5936 = vmatpush.bf16.msrb.mxu3 %v9066_v35 }
 0x414   :  { %6023 = vmatpush.bf16.msrb.mxu2 %v9006_v55  ;;  %5998 = vmatpush.bf16.msrb.mxu0 %v8734_v4  ;;  %v9813_v55 = vld [vmem:[#allocation8 + $0x3ac] sm:$0xf] }
 0x415   :  { %v8638_v14 = vor.u32 %v9813_v55, %v8635_v33 }
 0x416   :  { %6011 = vmatpush.bf16.msrb.mxu1 %v8862_v6  ;;  %5937 = vmatmul.bf16.vlgmr.msrb.gmra.mxu3 %v10415_v5 }
 0x417   :  { %5981 = vmatpush.bf16.msra.mxu3 %v8670_v39  ;;  %v9925_v39 = vld [vmem:[#allocation8 + $0x72c] sm:$0xf] }
 0x418   :  { %6024 = vmatpush.bf16.msrb.mxu2 %v8990_v13  ;;  %5999 = vmatpush.bf16.msrb.mxu0 %v8718_v24  ;;  %v8587_v13 = vld [vmem:[#allocation8 + $0x358] sm:$0xf0] }
 0x41a   :  { %6012 = vmatpush.bf16.msrb.mxu1 %v8846_v25  ;;  %v9945_v25 = vld [vmem:[#allocation8 + $0x7cc] sm:$0xf] }
 0x41b   :  { %5982 = vmatpush.bf16.msra.mxu3 %v8654_v52  ;;  %v9166_v26 = vor.u32 %v9945_v25, %v9163_v57  ;;  %v9067_v52 = vld [vmem:[#allocation8 + $0x718] sm:$0xf0] }
 0x41c   :  { %6025 = vmatpush.bf16.msrb.mxu2 %v8974_v9  ;;  %6000 = vmatpush.bf16.msrb.mxu0 %v8702_v0  ;;  %v9941_v9 = vld [vmem:[#allocation8 + $0x7ac] sm:$0xf] }
 0x41d   :  { %v9150_v27 = vor.u32 %v9941_v9, %v9147_v11 }
 0x41e   :  { %6013 = vmatpush.bf16.msrb.mxu1 %v8830_v34  ;;  %v9118_v34 = vor.u32 %v9933_v32, %v9115_v38 }
 0x41f   :  { %5983 = vmatpush.bf16.msra.mxu3 %v8638_v14 }
 0x420   :  { %6026 = vmatpush.bf16.msrb.mxu2 %v8958_v2  ;;  %6001 = vmatpush.bf16.msrb.mxu0 %v8686_v47  ;;  %v10448_v4 = vpop.f32.mrf.mxu0  ;;  %v9086_v47 = vor.u32 %v9925_v39, %v9083_v18 }
 0x422   :  { %6014 = vmatpush.bf16.msrb.mxu1 %v8814_v51  ;;  %v10450_v6 = vpop.f32.mrf.mxu1 }
 0x423   :  { %6002 = vmatmul.bf16.vlgmr.msrb.gmra.mxu0 %v10385_v56  ;;  %5984 = vmatpush.bf16.msra.mxu3 %v8622_v62  ;;  %v8590_v56 = vor.u32 %v9801_v12, %v8587_v13  ;;  %v6058_v12 = vld [vmem:[#allocation11] sm:$0xf] }
 0x424   :  { %6027 = vmatpush.bf16.msrb.mxu2 %v8942_v45  ;;  %v9921_v45 = vld [vmem:[#allocation8 + $0x70c] sm:$0xf]  ;;  %v6062_v36 = vperm.slane %v6058_v12, 2 }
 0x425   :  { %6015 = vmatmul.bf16.vlgmr.msrb.gmra.mxu1 %v10387_v58  ;;  %v8571_v58 = vld [vmem:[#allocation8 + $0x338] sm:$0xf0]  ;;  %v9070_v55 = vor.u32 %v9921_v45, %v9067_v52 }
 0x426   :  { %v8574_v19 = vor.u32 %v9797_v43, %v8571_v58  ;;  %v6060_v58 = vperm.slane %v6058_v12, 0 }
 0x427   :  { %6028 = vmatmul.bf16.vlgmr.msrb.gmra.mxu2 %v10393_v1  ;;  %5985 = vmatpush.bf16.msra.mxu3 %v8606_v7 }
 0x428   :  { %v5797_v16 = vpop.f32.mrf.mxu0 }
 0x429   :  { %v6061_v16 = vperm.slane %v6058_v12, 1 }
 0x42a   :  { %v5821_v21 = vpop.f32.mrf.mxu2  ;;  %v5810_v1 = vpop.f32.mrf.mxu1 }
 0x42b   :  { %5986 = vmatpush.bf16.msra.mxu3 %v8590_v56 }
 0x42f   :  { %5987 = vmatpush.bf16.msra.mxu3 %v8574_v19 }
 0x432   :  { %v5823_v24 = vpop.f32.mrf.mxu2 }
 0x433   :  { %5988 = vmatpush.bf16.msra.mxu3 %v8558_v54 }
 0x436   :  { %5989 = vmatmul.bf16.vlgmr.msra.gmra.mxu3 %v10356_v8  ;;  %v9099_v8 = vld [vmem:[#allocation8 + $0x758] sm:$0xf0] }
 0x437   :  { %6033 = vmatpush.bf16.msrb.mxu3 %v9182_v23  ;;  %v9102_v53 = vor.u32 %v9929_v20, %v9099_v8 }
 0x438   :  { %v5730_v0 = vpop.f32.mrf.mxu3 }
 0x439   :  { %v5731_v35 = vadd.f32 %v5730_v0, %v10440_v15 }
 0x43b   :  { %6034 = vmatpush.bf16.msrb.mxu3 %v9166_v26  ;;  %v6050_v7 = vmul.f32 0.2, %v5731_v35  ;;  %vm6046_vm8 = vcmp.gt.f32.partialorder %v5731_v35, 0.0 }
 0x43d   :  { %v6054_v1 = vsel %vm6046_vm8, %v5731_v35, %v6050_v7 }
 0x43e   :  { %v6068_v46 = vmul.f32 %v6060_v58, %v6054_v1 }
 0x43f   :  { %6035 = vmatpush.bf16.msrb.mxu3 %v9150_v27 }
 0x440   :  { %v5847_v59 = vpop.f32.mrf.mxu0  ;;  %v5732_v42 = vpop.f32.mrf.mxu3 }
 0x441   :  { %v5848_v48 = vadd.f32 %v5847_v59, %v4344_v31 }
 0x442   :  { %v5860_v2 = vpop.f32.mrf.mxu1 }
 0x443   :  { %6036 = vmatpush.bf16.msrb.mxu3 %v9134_v30  ;;  %v5861_v37 = vadd.f32 %v5860_v2, %v5848_v48 }
 0x447   :  { %6037 = vmatpush.bf16.msrb.mxu3 %v9118_v34 }
 0x448   :  { %v5849_v50 = vpop.f32.mrf.mxu0  ;;  %v5782_v15 = vpop.f32.mrf.mxu3 }
 0x449   :  { %v5783_v14 = vadd.f32 %v5782_v15, %v10442_v44 }
 0x44a   :  { %v5873_v41 = vpop.f32.mrf.mxu2  ;;  %v5862_v51 = vpop.f32.mrf.mxu1 }
 0x44b   :  { %v5874_v40 = vadd.f32 %v5873_v41, %v5861_v37  ;;  %6038 = vmatpush.bf16.msrb.mxu3 %v9102_v53  ;;  %v5796_v61 = vadd.f32 %v10448_v4, %v5783_v14 }
 0x44d   :  { %v5809_v63 = vadd.f32 %v10450_v6, %v5796_v61 }
 0x44f   :  { %6039 = vmatpush.bf16.msrb.mxu3 %v9086_v47  ;;  %v5822_v17 = vadd.f32 %v5821_v21, %v5809_v63 }
 0x450   :  { %v5784_v62 = vpop.f32.mrf.mxu3 }
 0x451   :  { %v9962_v62 = vld [vmem:[#allocation2] ss:$0 sm:$0xff] }
 0x452   :  { %v5875_v33 = vpop.f32.mrf.mxu2 }
 0x453   :  { %6040 = vmatpush.bf16.msrb.mxu3 %v9070_v55  ;;  %v6063_v33 = vperm.slane %v6058_v12, 3 }
 0x456   :  { %6041 = vmatmul.bf16.vlgmr.msrb.gmra.mxu3 %v10415_v5 }
 0x459   :  { %v5834_v13 = vpop.f32.mrf.mxu3 }
 0x45a   :  { %v5835_v56 = vadd.f32 %v5834_v13, %v5822_v17 }
 0x45c   :  { %vm6047_vm9 = vcmp.gt.f32.partialorder %v5835_v56, 0.0  ;;  %v6051_v44 = vmul.f32 0.2, %v5835_v56 }
 0x45e   :  { %v6055_v5 = vsel %vm6047_vm9, %v5835_v56, %v6051_v44 }
 0x45f   :  { %v6069_v6 = vmul.f32 %v6061_v16, %v6055_v5 }
 0x460   :  { %v5899_v49 = vpop.f32.mrf.mxu0 }
 0x461   :  { %v5836_v21 = vpop.f32.mrf.mxu3  ;;  %v6072_v10 = vadd.f32 %v6069_v6, %v6068_v46 }
 0x462   :  { %v5912_v3 = vpop.f32.mrf.mxu1 }
 0x468   :  { %v5901_v4 = vpop.f32.mrf.mxu0 }
 0x46a   :  { %v5925_v43 = vpop.f32.mrf.mxu2  ;;  %v5914_v19 = vpop.f32.mrf.mxu1 }
 0x472   :  { %v5927_v22 = vpop.f32.mrf.mxu2 }
 0x479   :  { %v5886_v57 = vpop.f32.mrf.mxu3 }
 0x47a   :  { %v5887_v26 = vadd.f32 %v5886_v57, %v5874_v40 }
 0x47c   :  { %v5900_v9 = vadd.f32 %v5899_v49, %v5887_v26 }
 0x47e   :  { %v5913_v30 = vadd.f32 %v5912_v3, %v5900_v9 }
 0x480   :  { %v5951_v54 = vpop.f32.mrf.mxu0  ;;  %v5926_v31 = vadd.f32 %v5925_v43, %v5913_v30 }
 0x481   :  { %v5952_v24 = vadd.f32 %v5951_v54, %v4345_v60  ;;  %v5888_v32 = vpop.f32.mrf.mxu3 }
 0x482   :  { %v5964_v23 = vpop.f32.mrf.mxu1 }
 0x483   :  { %v5965_v25 = vadd.f32 %v5964_v23, %v5952_v24 }
 0x488   :  { %v5953_v28 = vpop.f32.mrf.mxu0 }
 0x48a   :  { %v5977_v11 = vpop.f32.mrf.mxu2  ;;  %v5966_v29 = vpop.f32.mrf.mxu1 }
 0x48b   :  { %v5978_v27 = vadd.f32 %v5977_v11, %v5965_v25 }
 0x492   :  { %v5979_v38 = vpop.f32.mrf.mxu2 }
 0x499   :  { %v5938_v34 = vpop.f32.mrf.mxu3 }
 0x49a   :  { %v5939_v48 = vadd.f32 %v5938_v34, %v5926_v31 }
 0x49c   :  { %vm6048_vm10 = vcmp.gt.f32.partialorder %v5939_v48, 0.0  ;;  %v6052_v2 = vmul.f32 0.2, %v5939_v48 }
 0x49e   :  { %v6056_v37 = vsel %vm6048_vm10, %v5939_v48, %v6052_v2 }
 0x49f   :  { %v6070_v53 = vmul.f32 %v6062_v36, %v6056_v37 }
 0x4a0   :  { %v6003_v59 = vpop.f32.mrf.mxu0 }
 0x4a1   :  { %v5940_v39 = vpop.f32.mrf.mxu3  ;;  %v6073_v18 = vadd.f32 %v6072_v10, %v6070_v53 }
 0x4a2   :  { %v6016_v0 = vpop.f32.mrf.mxu1 }
 0x4a8   :  { %v6005_v20 = vpop.f32.mrf.mxu0 }
 0x4aa   :  { %v6029_v35 = vpop.f32.mrf.mxu2  ;;  %v6018_v8 = vpop.f32.mrf.mxu1 }
 0x4b2   :  { %v6031_v41 = vpop.f32.mrf.mxu2 }
 0x4b9   :  { %v5990_v40 = vpop.f32.mrf.mxu3 }
 0x4ba   :  { %v5991_v42 = vadd.f32 %v5990_v40, %v5978_v27 }
 0x4bc   :  { %v6004_v47 = vadd.f32 %v6003_v59, %v5991_v42 }
 0x4be   :  { %v6017_v51 = vadd.f32 %v6016_v0, %v6004_v47 }
 0x4c0   :  { %v6030_v45 = vadd.f32 %v6029_v35, %v6017_v51 }
 0x4c1   :  { %v5992_v50 = vpop.f32.mrf.mxu3 }
 0x4d9   :  { %v6042_v52 = vpop.f32.mrf.mxu3 }
 0x4da   :  { %v6043_v55 = vadd.f32 %v6042_v52, %v6030_v45 }
 0x4dc   :  { %vm6049_vm11 = vcmp.gt.f32.partialorder %v6043_v55, 0.0  ;;  %v6053_v15 = vmul.f32 0.2, %v6043_v55 }
 0x4de   :  { %v6057_v14 = vsel %vm6049_vm11, %v6043_v55, %v6053_v15 }
 0x4df   :  { %v6071_v61 = vmul.f32 %v6063_v33, %v6057_v14 }
 0x4e1   :  { %v6044_v63 = vpop.f32.mrf.mxu3  ;;  %v6074_v17 = vadd.f32 %v6073_v18, %v6071_v61 }
 0x4e3   :  { %6075 = vadd.xlane.f32.xlu0 %v6074_v17 }
 0x556   :  { %v6076_v49 = vpop.xlane.xlu0 %6075 }
 0x557   :  { %v6081_v3 = vadd.f32 %v9962_v62, %v6076_v49 }
 0x559   :  { %v9183_v7 = vmul.f32 -1.442695, %v6081_v3 }
 0x55b   :  { %9963 = vpow2.f32 %v9183_v7 }
 0x561   :  { %v9964_v13 = vpop.eup %9963 }
 0x562   :  { %v6085_v56 = vadd.f32 1.0, %v9964_v13 }
 0x564   :  { %9965 = vrcp.f32 %v6085_v56  ;;  %v6097_v1 = vand.u32 2147483648, %v6085_v56  ;;  %v6095_v44 = vand.u32 2147483647, %v6085_v56  ;;  %vm6091_vm13 = vweird.f32 %v6085_v56 }
 0x566   :  { %v6098_v19 = vor.u32 1.1754944e-38, %v6097_v1  ;;  %vm6096_vm0 = vcmp.eq.f32.partialorder %v6095_v44, 8.507059e+37 }
 0x56a   :  { %v9966_v43 = vpop.eup %9965 }
 0x56b   :  { %v6087_v58 = vmul.f32 %v9966_v43, %v6085_v56  ;;  %vm6092_vm12 = vweird.f32 %v9966_v43 }
 0x56c   :  { %vm6093_vm14 = vmor %vm6091_vm13, %vm6092_vm12 }
 0x56d   :  { %v6088_v16 = vsub.f32 1.0, %v6087_v58 }
 0x56f   :  { %v6089_v12 = vmul.f32 %v9966_v43, %v6088_v16 }
 0x571   :  { %v6090_v4 = vadd.f32 %v9966_v43, %v6089_v12 }
 0x573   :  { %v6094_v5 = vsel %vm6093_vm14, %v9966_v43, %v6090_v4 }
 0x574   :  { %v6099_v46 = vsel %vm6096_vm0, %v6098_v19, %v6094_v5 }
 0x575   :  { %6102 = vst.msk [vmem:[%s10470_s7] sm:$0xff] %vm6101_vm15, %v6099_v46 }
 0x576   :  { %6107 = vsyncpa [#allocation4], 1 }
 0x577   :  { %6108 = vsyncpa [#allocation6], 1 }
 0x578   :  { %6109 = vsyncpa [#allocation9], 1 }
 0x579   :  { %6110 = vsyncpa [#allocation12], 1 }

</bundles_post_ra>
